<compile_context>
chip_gen: v5e
topology: v5e:2x2
jax: 0.10.0
libtpu: 0.0.40
codegen_flags: <defaults>
</compile_context>

<pallas_src>
import jax
import jax.numpy as jnp
from jax.experimental import pallas as pl
from jax.experimental.pallas import tpu as pltpu


# ---------------------------------------------------------------------------
# Host-side constant helpers (folded as constants under jit).
# ---------------------------------------------------------------------------
def _pool_select_matrix(H, W):
    """(H*W, (H/2)*(W/2)) exact 0/1 f32 matrix.  Column g has a single 1 at the
    flat index of the top-left ("anchor") pixel of 2x2 pooling window g, so
    (C, H*W) @ S compacts the per-anchor window maxima into (C, H*W/4)."""
    Ho, Wo = H // 2, W // 2
    g = jnp.arange(Ho * Wo, dtype=jnp.int32)
    anchor = 2 * (g // Wo) * W + 2 * (g % Wo)
    f = jnp.arange(H * W, dtype=jnp.int32)
    return (f[:, None] == anchor[None, :]).astype(jnp.float32)


def _col_index(H, W):
    """(1, H*W) f32: the column index w of every flat pixel (conv edge masks)."""
    return jnp.tile(jnp.arange(W, dtype=jnp.float32), H).reshape(1, H * W)


# ---------------------------------------------------------------------------
# Fused forward kernel.
# ---------------------------------------------------------------------------
def _build_fused_forward(H, W, cin, hidden, out_dim):
    H2, W2 = H // 2, W // 2
    HW1, HW2 = H * W, H2 * W2
    HW4 = (H2 // 2) * (W2 // 2)
    M1, M2 = W + 1, W2 + 1          # flat zero margins (>= one image row + 1)

    def conv3x3_relu(src, margin, width, hw, cin_l, pbuf, w_ref, b_ref, col):
        """3x3 / stride 1 / pad 1 conv + ReLU on a lane-dense (Cin, H*W) slab.

        src  : (cin_l, hw + 2*margin) zero-margined flat input scratch
        pbuf : (>= 9*cin_l, hw) im2col patch scratch
        w_ref: (cout, 9*cin_l) packed weights; b_ref: (cout, 1); col: (1, hw)
        """
        for kh in range(3):
            for kw in range(3):
                k = kh * 3 + kw
                s = (kh - 1) * width + (kw - 1)
                slab = src[:, margin + s: margin + s + hw]          # (cin_l, hw)
                if kw == 0:       # input col w-1 < 0 at the left image edge
                    slab = jnp.where(col >= 1.0, slab, 0.0)
                elif kw == 2:     # input col w+1 >= width at the right edge
                    slab = jnp.where(col <= float(width - 2), slab, 0.0)
                pbuf[k * cin_l:(k + 1) * cin_l, :] = slab
        patch = pbuf[0:9 * cin_l, :]                                # (9*cin_l, hw)
        acc = jnp.dot(w_ref[...], patch, preferred_element_type=jnp.float32)
        return jnp.maximum(acc + b_ref[...], 0.0)                   # (cout, hw)

    def maxpool2x2(src, margin, width, hw, sel_ref):
        """MaxPool2d(2, 2): shifted-slab max + 0/1 anchor-selection matmul."""
        a = src[:, margin:margin + hw]
        b = src[:, margin + 1:margin + 1 + hw]
        c = src[:, margin + width:margin + width + hw]
        d = src[:, margin + width + 1:margin + width + 1 + hw]
        m = jnp.maximum(jnp.maximum(a, b), jnp.maximum(c, d))       # (C, hw)
        return jnp.dot(m, sel_ref[...], preferred_element_type=jnp.float32)

    def kernel(label_ref, lw_ref, lb_ref,                           # SMEM scalars
               x_ref, w1_ref, b1_ref, w2_ref, b2_ref,
               w3_ref, b3_ref, w4_ref, b4_ref, wc_ref, bc_ref,
               s1_ref, s2_ref, col1_ref, col2_ref,                  # VMEM inputs
               o_ref,                                               # output
               bx, bh1, bh2, bp1, bh3, bh4, pbuf1, pbuf2, fbuf):    # VMEM scratch
        # Zero the margined slabs once: margins act as the conv zero padding
        # (and as out-of-image rows for the pooling shifts).
        bx[...] = jnp.zeros_like(bx)
        bh1[...] = jnp.zeros_like(bh1)
        bh2[...] = jnp.zeros_like(bh2)
        bp1[...] = jnp.zeros_like(bp1)
        bh3[...] = jnp.zeros_like(bh3)
        bh4[...] = jnp.zeros_like(bh4)

        col1 = col1_ref[...]
        col2 = col2_ref[...]

        # ---- video block: Conv+ReLU, Conv+ReLU, MaxPool(2) ----
        bx[:, M1:M1 + HW1] = x_ref[...]
        h1 = conv3x3_relu(bx, M1, W, HW1, cin, pbuf1, w1_ref, b1_ref, col1)
        bh1[:, M1:M1 + HW1] = h1
        h2 = conv3x3_relu(bh1, M1, W, HW1, hidden, pbuf1, w2_ref, b2_ref, col1)
        bh2[:, M1:M1 + HW1] = h2
        p1 = maxpool2x2(bh2, M1, W, HW1, s1_ref)                    # (hidden, HW2)

        # ---- label block: Linear(1,1) + ReLU, broadcast to a channel plane ----
        lab = jnp.zeros((1, HW2), jnp.float32) + label_ref[0]
        label_plane = jnp.maximum(lab * lw_ref[0] + lb_ref[0], 0.0)

        # ---- channel concat (video ++ label) + common block ----
        bp1[0:hidden, M2:M2 + HW2] = p1
        bp1[hidden:hidden + 1, M2:M2 + HW2] = label_plane
        h3 = conv3x3_relu(bp1, M2, W2, HW2, hidden + 1, pbuf2, w3_ref, b3_ref, col2)
        bh3[:, M2:M2 + HW2] = h3
        h4 = conv3x3_relu(bh3, M2, W2, HW2, hidden, pbuf2, w4_ref, b4_ref, col2)
        bh4[:, M2:M2 + HW2] = h4
        p2 = maxpool2x2(bh4, M2, W2, HW2, s2_ref)                   # (hidden, HW4)

        # ---- classifier: flatten in (C, H/4, W/4) order + Linear ----
        for c in range(hidden):
            fbuf[:, c * HW4:(c + 1) * HW4] = p2[c:c + 1, :]
        o_ref[...] = (jnp.dot(fbuf[...], wc_ref[...],
                              preferred_element_type=jnp.float32) + bc_ref[...])

    smem = pl.BlockSpec(memory_space=pltpu.MemorySpace.SMEM)
    vmem = pl.BlockSpec(memory_space=pltpu.MemorySpace.VMEM)

    return pl.pallas_call(
        kernel,
        out_shape=jax.ShapeDtypeStruct((1, out_dim), jnp.float32),
        in_specs=[smem, smem, smem] + [vmem] * 15,
        out_specs=vmem,
        scratch_shapes=[
            pltpu.VMEM((cin, HW1 + 2 * M1), jnp.float32),            # bx
            pltpu.VMEM((hidden, HW1 + 2 * M1), jnp.float32),         # bh1
            pltpu.VMEM((hidden, HW1 + 2 * M1), jnp.float32),         # bh2
            pltpu.VMEM((hidden + 1, HW2 + 2 * M2), jnp.float32),     # bp1
            pltpu.VMEM((hidden, HW2 + 2 * M2), jnp.float32),         # bh3
            pltpu.VMEM((hidden, HW2 + 2 * M2), jnp.float32),         # bh4
            pltpu.VMEM((9 * max(cin, hidden), HW1), jnp.float32),    # pbuf1
            pltpu.VMEM((9 * (hidden + 1), HW2), jnp.float32),        # pbuf2
            pltpu.VMEM((1, hidden * HW4), jnp.float32),              # fbuf
        ],
    )


def vestibular_forward(params, video_frames, labels, batch_size=1):
    """Fused Pallas forward of VestibularNetwork (batch_size fixed to 1)."""
    assert batch_size == 1, "classifier flatten in the reference ties batch_size to 1"
    H, W, cin = video_frames.shape
    assert H % 4 == 0 and W % 4 == 0, "two MaxPool(2) layers require H, W % 4 == 0"
    hidden = params["b1"].shape[0]
    out_dim = params["cls_b"].shape[-1]

    # Input layout prep (mirrors `.float().permute(2, 0, 1)` in the reference):
    # one tiny relayout of the 6 KB input frame into the lane-dense (C, H*W)
    # slab the kernel uses.  All activation-sized tensors stay inside the kernel.
    x_cf = jnp.transpose(video_frames.astype(jnp.float32), (2, 0, 1)).reshape(cin, H * W)

    fused = _build_fused_forward(H, W, cin, hidden, out_dim)
    return fused(
        labels.astype(jnp.float32).reshape(1),
        params["l_w"].reshape(1),
        params["l_b"].reshape(1),
        x_cf,
        params["w1"], params["b1"], params["w2"], params["b2"],
        params["w3"], params["b3"], params["w4"], params["b4"],
        params["cls_w"], params["cls_b"],
        _pool_select_matrix(H, W), _pool_select_matrix(H // 2, W // 2),
        _col_index(H, W), _col_index(H // 2, W // 2),
    )


# ---------------------------------------------------------------------------
# Synthetic parameters (mirror the nn.Module shapes; packed for the kernel).
# ---------------------------------------------------------------------------
def init_params(key, input_shape, hidden_units, output_shape, H, W):
    """Correspondence with the PyTorch module:
       conv weight (Cout, Cin, 3, 3)  -> transpose(0, 2, 3, 1).reshape(Cout, 9*Cin)
       conv bias   (Cout,)            -> reshape(Cout, 1)
       classifier weight (out, flat)  -> transpose()   (flat order = C, H/4, W/4)
    """
    ks = jax.random.split(key, 12)

    def w(k, shape, scale=0.05):
        return scale * jax.random.normal(k, shape, jnp.float32)

    def pack_conv(k, cin_l, cout):
        wt = w(k, (cout, cin_l, 3, 3))                       # torch OIHW layout
        return jnp.transpose(wt, (0, 2, 3, 1)).reshape(cout, 9 * cin_l)

    flat_features = hidden_units * (H // 4) * (W // 4)
    return dict(
        w1=pack_conv(ks[0], input_shape, hidden_units),
        b1=w(ks[1], (hidden_units, 1)),
        w2=pack_conv(ks[2], hidden_units, hidden_units),
        b2=w(ks[3], (hidden_units, 1)),
        l_w=w(ks[4], (1,)),
        l_b=w(ks[5], (1,)),
        w3=pack_conv(ks[6], hidden_units + 1, hidden_units),
        b3=w(ks[7], (hidden_units, 1)),
        w4=pack_conv(ks[8], hidden_units, hidden_units),
        b4=w(ks[9], (hidden_units, 1)),
        cls_w=w(ks[10], (flat_features, output_shape)),
        cls_b=w(ks[11], (1, output_shape)),
    )


# ---------------------------------------------------------------------------
# Pure-JAX reference (same packed params) for a sanity check of the fused kernel.
# ---------------------------------------------------------------------------
def _reference_forward(params, video_frames, labels, cin, hidden):
    x = jnp.transpose(video_frames.astype(jnp.float32), (2, 0, 1))[None]  # (1,C,H,W)

    def conv(x, w2d, b, cin_l):
        cout = w2d.shape[0]
        wt = w2d.reshape(cout, 3, 3, cin_l).transpose(0, 3, 1, 2)         # OIHW
        y = jax.lax.conv_general_dilated(
            x, wt, window_strides=(1, 1), padding=((1, 1), (1, 1)),
            dimension_numbers=("NCHW", "OIHW", "NCHW"))
        return jnp.maximum(y + b.reshape(1, cout, 1, 1), 0.0)

    def pool(x):
        return jax.lax.reduce_window(x, -jnp.inf, jax.lax.max,
                                     (1, 1, 2, 2), (1, 1, 2, 2), "VALID")

    y = conv(x, params["w1"], params["b1"], cin)
    y = conv(y, params["w2"], params["b2"], hidden)
    y = pool(y)
    lv = jnp.maximum(labels.astype(jnp.float32).reshape(())[()] * params["l_w"][0]
                     + params["l_b"][0], 0.0)
    lab = jnp.full((1, 1, y.shape[2], y.shape[3]), lv, jnp.float32)
    y = jnp.concatenate([y, lab], axis=1)
    y = conv(y, params["w3"], params["b3"], hidden + 1)
    y = conv(y, params["w4"], params["b4"], hidden)
    y = pool(y)
    flat = y.reshape(1, -1)                                 # (1, C * H/4 * W/4)
    return flat @ params["cls_w"] + params["cls_b"]


if __name__ == "__main__":
    # Small shapes consistent with the module.  hidden_units must be 10 so that
    # the hard-coded 11-channel common_block matches (10 video + 1 label).
    H, W = 16, 32
    input_shape = 3
    hidden_units = 10
    output_shape = 5
    batch_size = 1

    key = jax.random.PRNGKey(0)
    k_vid, k_lab, k_par = jax.random.split(key, 3)
    video_frames = jax.random.uniform(k_vid, (H, W, input_shape), jnp.float32)
    labels = jax.random.uniform(k_lab, (1,), jnp.float32)
    params = init_params(k_par, input_shape, hidden_units, output_shape, H, W)

    fwd = jax.jit(vestibular_forward)
    out = jax.block_until_ready(fwd(params, video_frames, labels))

    assert out.shape == (batch_size, output_shape), out.shape
    assert bool(jnp.all(jnp.isfinite(out)))

    ref = _reference_forward(params, video_frames, labels, input_shape, hidden_units)
    max_err = float(jnp.max(jnp.abs(out - ref)))
    assert max_err < 2e-2 * (1.0 + float(jnp.max(jnp.abs(ref)))), max_err

    print("KERNEL_OK")
</pallas_src>

<mosaic_0001>
module attributes {stable_mosaic.version = 11 : i64} {
  func.func @kernel(%arg0: memref<1xf32, #tpu.memory_space<smem>>, %arg1: memref<1xf32, #tpu.memory_space<smem>>, %arg2: memref<1xf32, #tpu.memory_space<smem>>, %arg3: memref<3x512xf32, #tpu.memory_space<vmem>>, %arg4: memref<10x27xf32, #tpu.memory_space<vmem>>, %arg5: memref<10x1xf32, #tpu.memory_space<vmem>>, %arg6: memref<10x90xf32, #tpu.memory_space<vmem>>, %arg7: memref<10x1xf32, #tpu.memory_space<vmem>>, %arg8: memref<10x99xf32, #tpu.memory_space<vmem>>, %arg9: memref<10x1xf32, #tpu.memory_space<vmem>>, %arg10: memref<10x90xf32, #tpu.memory_space<vmem>>, %arg11: memref<10x1xf32, #tpu.memory_space<vmem>>, %arg12: memref<320x5xf32, #tpu.memory_space<vmem>>, %arg13: memref<1x5xf32, #tpu.memory_space<vmem>>, %arg14: memref<512x128xf32, #tpu.memory_space<vmem>>, %arg15: memref<128x32xf32, #tpu.memory_space<vmem>>, %arg16: memref<1x512xf32, #tpu.memory_space<vmem>>, %arg17: memref<1x128xf32, #tpu.memory_space<vmem>>, %arg18: memref<1x5xf32, #tpu.memory_space<vmem>>, %arg19: memref<3x578xf32, #tpu.memory_space<vmem>>, %arg20: memref<10x578xf32, #tpu.memory_space<vmem>>, %arg21: memref<10x578xf32, #tpu.memory_space<vmem>>, %arg22: memref<11x162xf32, #tpu.memory_space<vmem>>, %arg23: memref<10x162xf32, #tpu.memory_space<vmem>>, %arg24: memref<10x162xf32, #tpu.memory_space<vmem>>, %arg25: memref<90x512xf32, #tpu.memory_space<vmem>>, %arg26: memref<99x128xf32, #tpu.memory_space<vmem>>, %arg27: memref<1x320xf32, #tpu.memory_space<vmem>>) attributes {dimension_semantics = [], scalar_prefetch = 0 : i64, scratch_operands = 9 : i64, tpu.core_type = #tpu.core_type<tc>} {
    %cst = arith.constant 0.000000e+00 : f32
    %0 = vector.broadcast %cst : f32 to vector<3x578xf32>
    %c0 = arith.constant 0 : index
    %c0_0 = arith.constant 0 : index
    %1 = vector.load %arg19[%c0, %c0_0] : memref<3x578xf32, #tpu.memory_space<vmem>>, vector<3x578xf32>
    tpu.vector_store %arg19[%c0, %c0_0], %0 {strides = array<i32>} : memref<3x578xf32, #tpu.memory_space<vmem>>, vector<3x578xf32>,
    %cst_1 = arith.constant 0.000000e+00 : f32
    %2 = vector.broadcast %cst_1 : f32 to vector<10x578xf32>
    %c0_2 = arith.constant 0 : index
    %c0_3 = arith.constant 0 : index
    %3 = vector.load %arg20[%c0_2, %c0_3] : memref<10x578xf32, #tpu.memory_space<vmem>>, vector<10x578xf32>
    tpu.vector_store %arg20[%c0_2, %c0_3], %2 {strides = array<i32>} : memref<10x578xf32, #tpu.memory_space<vmem>>, vector<10x578xf32>,
    %cst_4 = arith.constant 0.000000e+00 : f32
    %4 = vector.broadcast %cst_4 : f32 to vector<10x578xf32>
    %c0_5 = arith.constant 0 : index
    %c0_6 = arith.constant 0 : index
    %5 = vector.load %arg21[%c0_5, %c0_6] : memref<10x578xf32, #tpu.memory_space<vmem>>, vector<10x578xf32>
    tpu.vector_store %arg21[%c0_5, %c0_6], %4 {strides = array<i32>} : memref<10x578xf32, #tpu.memory_space<vmem>>, vector<10x578xf32>,
    %cst_7 = arith.constant 0.000000e+00 : f32
    %6 = vector.broadcast %cst_7 : f32 to vector<11x162xf32>
    %c0_8 = arith.constant 0 : index
    %c0_9 = arith.constant 0 : index
    %7 = vector.load %arg22[%c0_8, %c0_9] : memref<11x162xf32, #tpu.memory_space<vmem>>, vector<11x162xf32>
    tpu.vector_store %arg22[%c0_8, %c0_9], %6 {strides = array<i32>} : memref<11x162xf32, #tpu.memory_space<vmem>>, vector<11x162xf32>,
    %cst_10 = arith.constant 0.000000e+00 : f32
    %8 = vector.broadcast %cst_10 : f32 to vector<10x162xf32>
    %c0_11 = arith.constant 0 : index
    %c0_12 = arith.constant 0 : index
    %9 = vector.load %arg23[%c0_11, %c0_12] : memref<10x162xf32, #tpu.memory_space<vmem>>, vector<10x162xf32>
    tpu.vector_store %arg23[%c0_11, %c0_12], %8 {strides = array<i32>} : memref<10x162xf32, #tpu.memory_space<vmem>>, vector<10x162xf32>,
    %cst_13 = arith.constant 0.000000e+00 : f32
    %10 = vector.broadcast %cst_13 : f32 to vector<10x162xf32>
    %c0_14 = arith.constant 0 : index
    %c0_15 = arith.constant 0 : index
    %11 = vector.load %arg24[%c0_14, %c0_15] : memref<10x162xf32, #tpu.memory_space<vmem>>, vector<10x162xf32>
    tpu.vector_store %arg24[%c0_14, %c0_15], %10 {strides = array<i32>} : memref<10x162xf32, #tpu.memory_space<vmem>>, vector<10x162xf32>,
    %c0_16 = arith.constant 0 : index
    %c0_17 = arith.constant 0 : index
    %12 = vector.load %arg16[%c0_16, %c0_17] : memref<1x512xf32, #tpu.memory_space<vmem>>, vector<1x512xf32>
    %c0_18 = arith.constant 0 : index
    %c0_19 = arith.constant 0 : index
    %13 = vector.load %arg17[%c0_18, %c0_19] : memref<1x128xf32, #tpu.memory_space<vmem>>, vector<1x128xf32>
    %c0_20 = arith.constant 0 : index
    %c0_21 = arith.constant 0 : index
    %14 = vector.load %arg3[%c0_20, %c0_21] : memref<3x512xf32, #tpu.memory_space<vmem>>, vector<3x512xf32>
    %c0_22 = arith.constant 0 : index
    %c33 = arith.constant 33 : index
    %15 = vector.load %arg19[%c0_22, %c33] : memref<3x578xf32, #tpu.memory_space<vmem>>, vector<3x512xf32>
    tpu.vector_store %arg19[%c0_22, %c33], %14 {strides = array<i32>} : memref<3x578xf32, #tpu.memory_space<vmem>>, vector<3x512xf32>,
    %c0_23 = arith.constant 0 : index
    %c0_24 = arith.constant 0 : index
    %16 = vector.load %arg19[%c0_23, %c0_24] : memref<3x578xf32, #tpu.memory_space<vmem>>, vector<3x512xf32>
    %cst_25 = arith.constant 1.000000e+00 : f32
    %17 = vector.broadcast %cst_25 : f32 to vector<1x512xf32>
    %18 = arith.cmpf oge, %12, %17 : vector<1x512xf32>
    %cst_26 = arith.constant 0.000000e+00 : f32
    %19 = vector.shape_cast %18 : vector<1x512xi1> to vector<1x512xi1>
    %20 = vector.broadcast %19 : vector<1x512xi1> to vector<3x512xi1>
    %21 = vector.broadcast %cst_26 : f32 to vector<3x512xf32>
    %22 = arith.select %20, %16, %21 : vector<3x512xi1>, vector<3x512xf32>
    %c0_27 = arith.constant 0 : index
    %c0_28 = arith.constant 0 : index
    %23 = vector.load %arg25[%c0_27, %c0_28] : memref<90x512xf32, #tpu.memory_space<vmem>>, vector<3x512xf32>
    tpu.vector_store %arg25[%c0_27, %c0_28], %22 {strides = array<i32>} : memref<90x512xf32, #tpu.memory_space<vmem>>, vector<3x512xf32>,
    %c0_29 = arith.constant 0 : index
    %c1 = arith.constant 1 : index
    %24 = vector.load %arg19[%c0_29, %c1] : memref<3x578xf32, #tpu.memory_space<vmem>>, vector<3x512xf32>
    %c3 = arith.constant 3 : index
    %c0_30 = arith.constant 0 : index
    %25 = vector.load %arg25[%c3, %c0_30] : memref<90x512xf32, #tpu.memory_space<vmem>>, vector<3x512xf32>
    tpu.vector_store %arg25[%c3, %c0_30], %24 {strides = array<i32>} : memref<90x512xf32, #tpu.memory_space<vmem>>, vector<3x512xf32>,
    %c0_31 = arith.constant 0 : index
    %c2 = arith.constant 2 : index
    %26 = vector.load %arg19[%c0_31, %c2] : memref<3x578xf32, #tpu.memory_space<vmem>>, vector<3x512xf32>
    %cst_32 = arith.constant 3.000000e+01 : f32
    %27 = vector.broadcast %cst_32 : f32 to vector<1x512xf32>
    %28 = arith.cmpf ole, %12, %27 : vector<1x512xf32>
    %cst_33 = arith.constant 0.000000e+00 : f32
    %29 = vector.shape_cast %28 : vector<1x512xi1> to vector<1x512xi1>
    %30 = vector.broadcast %29 : vector<1x512xi1> to vector<3x512xi1>
    %31 = vector.broadcast %cst_33 : f32 to vector<3x512xf32>
    %32 = arith.select %30, %26, %31 : vector<3x512xi1>, vector<3x512xf32>
    %c6 = arith.constant 6 : index
    %c0_34 = arith.constant 0 : index
    %33 = vector.load %arg25[%c6, %c0_34] : memref<90x512xf32, #tpu.memory_space<vmem>>, vector<3x512xf32>
    tpu.vector_store %arg25[%c6, %c0_34], %32 {strides = array<i32>} : memref<90x512xf32, #tpu.memory_space<vmem>>, vector<3x512xf32>,
    %c0_35 = arith.constant 0 : index
    %c32 = arith.constant 32 : index
    %34 = vector.load %arg19[%c0_35, %c32] : memref<3x578xf32, #tpu.memory_space<vmem>>, vector<3x512xf32>
    %cst_36 = arith.constant 1.000000e+00 : f32
    %35 = vector.broadcast %cst_36 : f32 to vector<1x512xf32>
    %36 = arith.cmpf oge, %12, %35 : vector<1x512xf32>
    %cst_37 = arith.constant 0.000000e+00 : f32
    %37 = vector.shape_cast %36 : vector<1x512xi1> to vector<1x512xi1>
    %38 = vector.broadcast %37 : vector<1x512xi1> to vector<3x512xi1>
    %39 = vector.broadcast %cst_37 : f32 to vector<3x512xf32>
    %40 = arith.select %38, %34, %39 : vector<3x512xi1>, vector<3x512xf32>
    %c9 = arith.constant 9 : index
    %c0_38 = arith.constant 0 : index
    %41 = vector.load %arg25[%c9, %c0_38] : memref<90x512xf32, #tpu.memory_space<vmem>>, vector<3x512xf32>
    tpu.vector_store %arg25[%c9, %c0_38], %40 {strides = array<i32>} : memref<90x512xf32, #tpu.memory_space<vmem>>, vector<3x512xf32>,
    %c0_39 = arith.constant 0 : index
    %c33_40 = arith.constant 33 : index
    %42 = vector.load %arg19[%c0_39, %c33_40] : memref<3x578xf32, #tpu.memory_space<vmem>>, vector<3x512xf32>
    %c12 = arith.constant 12 : index
    %c0_41 = arith.constant 0 : index
    %43 = vector.load %arg25[%c12, %c0_41] : memref<90x512xf32, #tpu.memory_space<vmem>>, vector<3x512xf32>
    tpu.vector_store %arg25[%c12, %c0_41], %42 {strides = array<i32>} : memref<90x512xf32, #tpu.memory_space<vmem>>, vector<3x512xf32>,
    %c0_42 = arith.constant 0 : index
    %c34 = arith.constant 34 : index
    %44 = vector.load %arg19[%c0_42, %c34] : memref<3x578xf32, #tpu.memory_space<vmem>>, vector<3x512xf32>
    %cst_43 = arith.constant 3.000000e+01 : f32
    %45 = vector.broadcast %cst_43 : f32 to vector<1x512xf32>
    %46 = arith.cmpf ole, %12, %45 : vector<1x512xf32>
    %cst_44 = arith.constant 0.000000e+00 : f32
    %47 = vector.shape_cast %46 : vector<1x512xi1> to vector<1x512xi1>
    %48 = vector.broadcast %47 : vector<1x512xi1> to vector<3x512xi1>
    %49 = vector.broadcast %cst_44 : f32 to vector<3x512xf32>
    %50 = arith.select %48, %44, %49 : vector<3x512xi1>, vector<3x512xf32>
    %c15 = arith.constant 15 : index
    %c0_45 = arith.constant 0 : index
    %51 = vector.load %arg25[%c15, %c0_45] : memref<90x512xf32, #tpu.memory_space<vmem>>, vector<3x512xf32>
    tpu.vector_store %arg25[%c15, %c0_45], %50 {strides = array<i32>} : memref<90x512xf32, #tpu.memory_space<vmem>>, vector<3x512xf32>,
    %c0_46 = arith.constant 0 : index
    %c64 = arith.constant 64 : index
    %52 = vector.load %arg19[%c0_46, %c64] : memref<3x578xf32, #tpu.memory_space<vmem>>, vector<3x512xf32>
    %cst_47 = arith.constant 1.000000e+00 : f32
    %53 = vector.broadcast %cst_47 : f32 to vector<1x512xf32>
    %54 = arith.cmpf oge, %12, %53 : vector<1x512xf32>
    %cst_48 = arith.constant 0.000000e+00 : f32
    %55 = vector.shape_cast %54 : vector<1x512xi1> to vector<1x512xi1>
    %56 = vector.broadcast %55 : vector<1x512xi1> to vector<3x512xi1>
    %57 = vector.broadcast %cst_48 : f32 to vector<3x512xf32>
    %58 = arith.select %56, %52, %57 : vector<3x512xi1>, vector<3x512xf32>
    %c18 = arith.constant 18 : index
    %c0_49 = arith.constant 0 : index
    %59 = vector.load %arg25[%c18, %c0_49] : memref<90x512xf32, #tpu.memory_space<vmem>>, vector<3x512xf32>
    tpu.vector_store %arg25[%c18, %c0_49], %58 {strides = array<i32>} : memref<90x512xf32, #tpu.memory_space<vmem>>, vector<3x512xf32>,
    %c0_50 = arith.constant 0 : index
    %c65 = arith.constant 65 : index
    %60 = vector.load %arg19[%c0_50, %c65] : memref<3x578xf32, #tpu.memory_space<vmem>>, vector<3x512xf32>
    %c21 = arith.constant 21 : index
    %c0_51 = arith.constant 0 : index
    %61 = vector.load %arg25[%c21, %c0_51] : memref<90x512xf32, #tpu.memory_space<vmem>>, vector<3x512xf32>
    tpu.vector_store %arg25[%c21, %c0_51], %60 {strides = array<i32>} : memref<90x512xf32, #tpu.memory_space<vmem>>, vector<3x512xf32>,
    %c0_52 = arith.constant 0 : index
    %c66 = arith.constant 66 : index
    %62 = vector.load %arg19[%c0_52, %c66] : memref<3x578xf32, #tpu.memory_space<vmem>>, vector<3x512xf32>
    %cst_53 = arith.constant 3.000000e+01 : f32
    %63 = vector.broadcast %cst_53 : f32 to vector<1x512xf32>
    %64 = arith.cmpf ole, %12, %63 : vector<1x512xf32>
    %cst_54 = arith.constant 0.000000e+00 : f32
    %65 = vector.shape_cast %64 : vector<1x512xi1> to vector<1x512xi1>
    %66 = vector.broadcast %65 : vector<1x512xi1> to vector<3x512xi1>
    %67 = vector.broadcast %cst_54 : f32 to vector<3x512xf32>
    %68 = arith.select %66, %62, %67 : vector<3x512xi1>, vector<3x512xf32>
    %c24 = arith.constant 24 : index
    %c0_55 = arith.constant 0 : index
    %69 = vector.load %arg25[%c24, %c0_55] : memref<90x512xf32, #tpu.memory_space<vmem>>, vector<3x512xf32>
    tpu.vector_store %arg25[%c24, %c0_55], %68 {strides = array<i32>} : memref<90x512xf32, #tpu.memory_space<vmem>>, vector<3x512xf32>,
    %c0_56 = arith.constant 0 : index
    %c0_57 = arith.constant 0 : index
    %70 = vector.load %arg25[%c0_56, %c0_57] : memref<90x512xf32, #tpu.memory_space<vmem>>, vector<27x512xf32>
    %c0_58 = arith.constant 0 : index
    %c0_59 = arith.constant 0 : index
    %71 = vector.load %arg4[%c0_58, %c0_59] : memref<10x27xf32, #tpu.memory_space<vmem>>, vector<10x27xf32>
    %cst_60 = arith.constant dense<0.000000e+00> : vector<10x512xf32>
    %72 = tpu.matmul %71, %70, %cst_60 {dimension_numbers = #tpu.dot_dimension_numbers<[1], [0], [0], [1], [0, 0, 1, 1], [], []>} : vector<10x27xf32>, vector<27x512xf32>, vector<10x512xf32> -> vector<10x512xf32>
    %c0_61 = arith.constant 0 : index
    %c0_62 = arith.constant 0 : index
    %73 = vector.load %arg5[%c0_61, %c0_62] : memref<10x1xf32, #tpu.memory_space<vmem>>, vector<10x1xf32>
    %74 = vector.broadcast %73 : vector<10x1xf32> to vector<10x512xf32>
    %75 = arith.addf %72, %74 : vector<10x512xf32>
    %cst_63 = arith.constant 0.000000e+00 : f32
    %76 = vector.broadcast %cst_63 : f32 to vector<10x512xf32>
    %77 = arith.maximumf %75, %76 : vector<10x512xf32>
    %c0_64 = arith.constant 0 : index
    %c33_65 = arith.constant 33 : index
    %78 = vector.load %arg20[%c0_64, %c33_65] : memref<10x578xf32, #tpu.memory_space<vmem>>, vector<10x512xf32>
    tpu.vector_store %arg20[%c0_64, %c33_65], %77 {strides = array<i32>} : memref<10x578xf32, #tpu.memory_space<vmem>>, vector<10x512xf32>,
    %c0_66 = arith.constant 0 : index
    %c0_67 = arith.constant 0 : index
    %79 = vector.load %arg20[%c0_66, %c0_67] : memref<10x578xf32, #tpu.memory_space<vmem>>, vector<10x512xf32>
    %cst_68 = arith.constant 1.000000e+00 : f32
    %80 = vector.broadcast %cst_68 : f32 to vector<1x512xf32>
    %81 = arith.cmpf oge, %12, %80 : vector<1x512xf32>
    %cst_69 = arith.constant 0.000000e+00 : f32
    %82 = vector.shape_cast %81 : vector<1x512xi1> to vector<1x512xi1>
    %83 = vector.broadcast %82 : vector<1x512xi1> to vector<10x512xi1>
    %84 = vector.broadcast %cst_69 : f32 to vector<10x512xf32>
    %85 = arith.select %83, %79, %84 : vector<10x512xi1>, vector<10x512xf32>
    %c0_70 = arith.constant 0 : index
    %c0_71 = arith.constant 0 : index
    %86 = vector.load %arg25[%c0_70, %c0_71] : memref<90x512xf32, #tpu.memory_space<vmem>>, vector<10x512xf32>
    tpu.vector_store %arg25[%c0_70, %c0_71], %85 {strides = array<i32>} : memref<90x512xf32, #tpu.memory_space<vmem>>, vector<10x512xf32>,
    %c0_72 = arith.constant 0 : index
    %c1_73 = arith.constant 1 : index
    %87 = vector.load %arg20[%c0_72, %c1_73] : memref<10x578xf32, #tpu.memory_space<vmem>>, vector<10x512xf32>
    %c10 = arith.constant 10 : index
    %c0_74 = arith.constant 0 : index
    %88 = vector.load %arg25[%c10, %c0_74] : memref<90x512xf32, #tpu.memory_space<vmem>>, vector<10x512xf32>
    tpu.vector_store %arg25[%c10, %c0_74], %87 {strides = array<i32>} : memref<90x512xf32, #tpu.memory_space<vmem>>, vector<10x512xf32>,
    %c0_75 = arith.constant 0 : index
    %c2_76 = arith.constant 2 : index
    %89 = vector.load %arg20[%c0_75, %c2_76] : memref<10x578xf32, #tpu.memory_space<vmem>>, vector<10x512xf32>
    %cst_77 = arith.constant 3.000000e+01 : f32
    %90 = vector.broadcast %cst_77 : f32 to vector<1x512xf32>
    %91 = arith.cmpf ole, %12, %90 : vector<1x512xf32>
    %cst_78 = arith.constant 0.000000e+00 : f32
    %92 = vector.shape_cast %91 : vector<1x512xi1> to vector<1x512xi1>
    %93 = vector.broadcast %92 : vector<1x512xi1> to vector<10x512xi1>
    %94 = vector.broadcast %cst_78 : f32 to vector<10x512xf32>
    %95 = arith.select %93, %89, %94 : vector<10x512xi1>, vector<10x512xf32>
    %c20 = arith.constant 20 : index
    %c0_79 = arith.constant 0 : index
    %96 = vector.load %arg25[%c20, %c0_79] : memref<90x512xf32, #tpu.memory_space<vmem>>, vector<10x512xf32>
    tpu.vector_store %arg25[%c20, %c0_79], %95 {strides = array<i32>} : memref<90x512xf32, #tpu.memory_space<vmem>>, vector<10x512xf32>,
    %c0_80 = arith.constant 0 : index
    %c32_81 = arith.constant 32 : index
    %97 = vector.load %arg20[%c0_80, %c32_81] : memref<10x578xf32, #tpu.memory_space<vmem>>, vector<10x512xf32>
    %cst_82 = arith.constant 1.000000e+00 : f32
    %98 = vector.broadcast %cst_82 : f32 to vector<1x512xf32>
    %99 = arith.cmpf oge, %12, %98 : vector<1x512xf32>
    %cst_83 = arith.constant 0.000000e+00 : f32
    %100 = vector.shape_cast %99 : vector<1x512xi1> to vector<1x512xi1>
    %101 = vector.broadcast %100 : vector<1x512xi1> to vector<10x512xi1>
    %102 = vector.broadcast %cst_83 : f32 to vector<10x512xf32>
    %103 = arith.select %101, %97, %102 : vector<10x512xi1>, vector<10x512xf32>
    %c30 = arith.constant 30 : index
    %c0_84 = arith.constant 0 : index
    %104 = vector.load %arg25[%c30, %c0_84] : memref<90x512xf32, #tpu.memory_space<vmem>>, vector<10x512xf32>
    tpu.vector_store %arg25[%c30, %c0_84], %103 {strides = array<i32>} : memref<90x512xf32, #tpu.memory_space<vmem>>, vector<10x512xf32>,
    %c0_85 = arith.constant 0 : index
    %c33_86 = arith.constant 33 : index
    %105 = vector.load %arg20[%c0_85, %c33_86] : memref<10x578xf32, #tpu.memory_space<vmem>>, vector<10x512xf32>
    %c40 = arith.constant 40 : index
    %c0_87 = arith.constant 0 : index
    %106 = vector.load %arg25[%c40, %c0_87] : memref<90x512xf32, #tpu.memory_space<vmem>>, vector<10x512xf32>
    tpu.vector_store %arg25[%c40, %c0_87], %105 {strides = array<i32>} : memref<90x512xf32, #tpu.memory_space<vmem>>, vector<10x512xf32>,
    %c0_88 = arith.constant 0 : index
    %c34_89 = arith.constant 34 : index
    %107 = vector.load %arg20[%c0_88, %c34_89] : memref<10x578xf32, #tpu.memory_space<vmem>>, vector<10x512xf32>
    %cst_90 = arith.constant 3.000000e+01 : f32
    %108 = vector.broadcast %cst_90 : f32 to vector<1x512xf32>
    %109 = arith.cmpf ole, %12, %108 : vector<1x512xf32>
    %cst_91 = arith.constant 0.000000e+00 : f32
    %110 = vector.shape_cast %109 : vector<1x512xi1> to vector<1x512xi1>
    %111 = vector.broadcast %110 : vector<1x512xi1> to vector<10x512xi1>
    %112 = vector.broadcast %cst_91 : f32 to vector<10x512xf32>
    %113 = arith.select %111, %107, %112 : vector<10x512xi1>, vector<10x512xf32>
    %c50 = arith.constant 50 : index
    %c0_92 = arith.constant 0 : index
    %114 = vector.load %arg25[%c50, %c0_92] : memref<90x512xf32, #tpu.memory_space<vmem>>, vector<10x512xf32>
    tpu.vector_store %arg25[%c50, %c0_92], %113 {strides = array<i32>} : memref<90x512xf32, #tpu.memory_space<vmem>>, vector<10x512xf32>,
    %c0_93 = arith.constant 0 : index
    %c64_94 = arith.constant 64 : index
    %115 = vector.load %arg20[%c0_93, %c64_94] : memref<10x578xf32, #tpu.memory_space<vmem>>, vector<10x512xf32>
    %cst_95 = arith.constant 1.000000e+00 : f32
    %116 = vector.broadcast %cst_95 : f32 to vector<1x512xf32>
    %117 = arith.cmpf oge, %12, %116 : vector<1x512xf32>
    %cst_96 = arith.constant 0.000000e+00 : f32
    %118 = vector.shape_cast %117 : vector<1x512xi1> to vector<1x512xi1>
    %119 = vector.broadcast %118 : vector<1x512xi1> to vector<10x512xi1>
    %120 = vector.broadcast %cst_96 : f32 to vector<10x512xf32>
    %121 = arith.select %119, %115, %120 : vector<10x512xi1>, vector<10x512xf32>
    %c60 = arith.constant 60 : index
    %c0_97 = arith.constant 0 : index
    %122 = vector.load %arg25[%c60, %c0_97] : memref<90x512xf32, #tpu.memory_space<vmem>>, vector<10x512xf32>
    tpu.vector_store %arg25[%c60, %c0_97], %121 {strides = array<i32>} : memref<90x512xf32, #tpu.memory_space<vmem>>, vector<10x512xf32>,
    %c0_98 = arith.constant 0 : index
    %c65_99 = arith.constant 65 : index
    %123 = vector.load %arg20[%c0_98, %c65_99] : memref<10x578xf32, #tpu.memory_space<vmem>>, vector<10x512xf32>
    %c70 = arith.constant 70 : index
    %c0_100 = arith.constant 0 : index
    %124 = vector.load %arg25[%c70, %c0_100] : memref<90x512xf32, #tpu.memory_space<vmem>>, vector<10x512xf32>
    tpu.vector_store %arg25[%c70, %c0_100], %123 {strides = array<i32>} : memref<90x512xf32, #tpu.memory_space<vmem>>, vector<10x512xf32>,
    %c0_101 = arith.constant 0 : index
    %c66_102 = arith.constant 66 : index
    %125 = vector.load %arg20[%c0_101, %c66_102] : memref<10x578xf32, #tpu.memory_space<vmem>>, vector<10x512xf32>
    %cst_103 = arith.constant 3.000000e+01 : f32
    %126 = vector.broadcast %cst_103 : f32 to vector<1x512xf32>
    %127 = arith.cmpf ole, %12, %126 : vector<1x512xf32>
    %cst_104 = arith.constant 0.000000e+00 : f32
    %128 = vector.shape_cast %127 : vector<1x512xi1> to vector<1x512xi1>
    %129 = vector.broadcast %128 : vector<1x512xi1> to vector<10x512xi1>
    %130 = vector.broadcast %cst_104 : f32 to vector<10x512xf32>
    %131 = arith.select %129, %125, %130 : vector<10x512xi1>, vector<10x512xf32>
    %c80 = arith.constant 80 : index
    %c0_105 = arith.constant 0 : index
    %132 = vector.load %arg25[%c80, %c0_105] : memref<90x512xf32, #tpu.memory_space<vmem>>, vector<10x512xf32>
    tpu.vector_store %arg25[%c80, %c0_105], %131 {strides = array<i32>} : memref<90x512xf32, #tpu.memory_space<vmem>>, vector<10x512xf32>,
    %c0_106 = arith.constant 0 : index
    %c0_107 = arith.constant 0 : index
    %133 = vector.load %arg25[%c0_106, %c0_107] : memref<90x512xf32, #tpu.memory_space<vmem>>, vector<90x512xf32>
    %c0_108 = arith.constant 0 : index
    %c0_109 = arith.constant 0 : index
    %134 = vector.load %arg6[%c0_108, %c0_109] : memref<10x90xf32, #tpu.memory_space<vmem>>, vector<10x90xf32>
    %cst_110 = arith.constant dense<0.000000e+00> : vector<10x512xf32>
    %135 = tpu.matmul %134, %133, %cst_110 {dimension_numbers = #tpu.dot_dimension_numbers<[1], [0], [0], [1], [0, 0, 1, 1], [], []>} : vector<10x90xf32>, vector<90x512xf32>, vector<10x512xf32> -> vector<10x512xf32>
    %c0_111 = arith.constant 0 : index
    %c0_112 = arith.constant 0 : index
    %136 = vector.load %arg7[%c0_111, %c0_112] : memref<10x1xf32, #tpu.memory_space<vmem>>, vector<10x1xf32>
    %137 = vector.broadcast %136 : vector<10x1xf32> to vector<10x512xf32>
    %138 = arith.addf %135, %137 : vector<10x512xf32>
    %cst_113 = arith.constant 0.000000e+00 : f32
    %139 = vector.broadcast %cst_113 : f32 to vector<10x512xf32>
    %140 = arith.maximumf %138, %139 : vector<10x512xf32>
    %c0_114 = arith.constant 0 : index
    %c33_115 = arith.constant 33 : index
    %141 = vector.load %arg21[%c0_114, %c33_115] : memref<10x578xf32, #tpu.memory_space<vmem>>, vector<10x512xf32>
    tpu.vector_store %arg21[%c0_114, %c33_115], %140 {strides = array<i32>} : memref<10x578xf32, #tpu.memory_space<vmem>>, vector<10x512xf32>,
    %c0_116 = arith.constant 0 : index
    %c33_117 = arith.constant 33 : index
    %142 = vector.load %arg21[%c0_116, %c33_117] : memref<10x578xf32, #tpu.memory_space<vmem>>, vector<10x512xf32>
    %c0_118 = arith.constant 0 : index
    %c34_119 = arith.constant 34 : index
    %143 = vector.load %arg21[%c0_118, %c34_119] : memref<10x578xf32, #tpu.memory_space<vmem>>, vector<10x512xf32>
    %c0_120 = arith.constant 0 : index
    %c65_121 = arith.constant 65 : index
    %144 = vector.load %arg21[%c0_120, %c65_121] : memref<10x578xf32, #tpu.memory_space<vmem>>, vector<10x512xf32>
    %c0_122 = arith.constant 0 : index
    %c66_123 = arith.constant 66 : index
    %145 = vector.load %arg21[%c0_122, %c66_123] : memref<10x578xf32, #tpu.memory_space<vmem>>, vector<10x512xf32>
    %146 = arith.maximumf %142, %143 : vector<10x512xf32>
    %147 = arith.maximumf %144, %145 : vector<10x512xf32>
    %148 = arith.maximumf %146, %147 : vector<10x512xf32>
    %c0_124 = arith.constant 0 : index
    %c0_125 = arith.constant 0 : index
    %149 = vector.load %arg14[%c0_124, %c0_125] : memref<512x128xf32, #tpu.memory_space<vmem>>, vector<512x128xf32>
    %cst_126 = arith.constant dense<0.000000e+00> : vector<10x128xf32>
    %150 = tpu.matmul %148, %149, %cst_126 {dimension_numbers = #tpu.dot_dimension_numbers<[1], [0], [0], [1], [0, 0, 1, 1], [], []>} : vector<10x512xf32>, vector<512x128xf32>, vector<10x128xf32> -> vector<10x128xf32>
    %cst_127 = arith.constant 0.000000e+00 : f32
    %151 = vector.broadcast %cst_127 : f32 to vector<1x128xf32>
    %c0_128 = arith.constant 0 : index
    %152 = memref.load %arg0[%c0_128] : memref<1xf32, #tpu.memory_space<smem>>
    %153 = vector.broadcast %152 : f32 to vector<1x128xf32>
    %154 = arith.addf %151, %153 : vector<1x128xf32>
    %c0_129 = arith.constant 0 : index
    %155 = memref.load %arg1[%c0_129] : memref<1xf32, #tpu.memory_space<smem>>
    %156 = vector.broadcast %155 : f32 to vector<1x128xf32>
    %157 = arith.mulf %154, %156 : vector<1x128xf32>
    %c0_130 = arith.constant 0 : index
    %158 = memref.load %arg2[%c0_130] : memref<1xf32, #tpu.memory_space<smem>>
    %159 = vector.broadcast %158 : f32 to vector<1x128xf32>
    %160 = arith.addf %157, %159 : vector<1x128xf32>
    %cst_131 = arith.constant 0.000000e+00 : f32
    %161 = vector.broadcast %cst_131 : f32 to vector<1x128xf32>
    %162 = arith.maximumf %160, %161 : vector<1x128xf32>
    %c0_132 = arith.constant 0 : index
    %c17 = arith.constant 17 : index
    %163 = vector.load %arg22[%c0_132, %c17] : memref<11x162xf32, #tpu.memory_space<vmem>>, vector<10x128xf32>
    tpu.vector_store %arg22[%c0_132, %c17], %150 {strides = array<i32>} : memref<11x162xf32, #tpu.memory_space<vmem>>, vector<10x128xf32>,
    %c10_133 = arith.constant 10 : index
    %c17_134 = arith.constant 17 : index
    %164 = vector.load %arg22[%c10_133, %c17_134] : memref<11x162xf32, #tpu.memory_space<vmem>>, vector<1x128xf32>
    tpu.vector_store %arg22[%c10_133, %c17_134], %162 {strides = array<i32>} : memref<11x162xf32, #tpu.memory_space<vmem>>, vector<1x128xf32>,
    %c0_135 = arith.constant 0 : index
    %c0_136 = arith.constant 0 : index
    %165 = vector.load %arg22[%c0_135, %c0_136] : memref<11x162xf32, #tpu.memory_space<vmem>>, vector<11x128xf32>
    %cst_137 = arith.constant 1.000000e+00 : f32
    %166 = vector.broadcast %cst_137 : f32 to vector<1x128xf32>
    %167 = arith.cmpf oge, %13, %166 : vector<1x128xf32>
    %cst_138 = arith.constant 0.000000e+00 : f32
    %168 = vector.shape_cast %167 : vector<1x128xi1> to vector<1x128xi1>
    %169 = vector.broadcast %168 : vector<1x128xi1> to vector<11x128xi1>
    %170 = vector.broadcast %cst_138 : f32 to vector<11x128xf32>
    %171 = arith.select %169, %165, %170 : vector<11x128xi1>, vector<11x128xf32>
    %c0_139 = arith.constant 0 : index
    %c0_140 = arith.constant 0 : index
    %172 = vector.load %arg26[%c0_139, %c0_140] : memref<99x128xf32, #tpu.memory_space<vmem>>, vector<11x128xf32>
    tpu.vector_store %arg26[%c0_139, %c0_140], %171 {strides = array<i32>} : memref<99x128xf32, #tpu.memory_space<vmem>>, vector<11x128xf32>,
    %c0_141 = arith.constant 0 : index
    %c1_142 = arith.constant 1 : index
    %173 = vector.load %arg22[%c0_141, %c1_142] : memref<11x162xf32, #tpu.memory_space<vmem>>, vector<11x128xf32>
    %c11 = arith.constant 11 : index
    %c0_143 = arith.constant 0 : index
    %174 = vector.load %arg26[%c11, %c0_143] : memref<99x128xf32, #tpu.memory_space<vmem>>, vector<11x128xf32>
    tpu.vector_store %arg26[%c11, %c0_143], %173 {strides = array<i32>} : memref<99x128xf32, #tpu.memory_space<vmem>>, vector<11x128xf32>,
    %c0_144 = arith.constant 0 : index
    %c2_145 = arith.constant 2 : index
    %175 = vector.load %arg22[%c0_144, %c2_145] : memref<11x162xf32, #tpu.memory_space<vmem>>, vector<11x128xf32>
    %cst_146 = arith.constant 1.400000e+01 : f32
    %176 = vector.broadcast %cst_146 : f32 to vector<1x128xf32>
    %177 = arith.cmpf ole, %13, %176 : vector<1x128xf32>
    %cst_147 = arith.constant 0.000000e+00 : f32
    %178 = vector.shape_cast %177 : vector<1x128xi1> to vector<1x128xi1>
    %179 = vector.broadcast %178 : vector<1x128xi1> to vector<11x128xi1>
    %180 = vector.broadcast %cst_147 : f32 to vector<11x128xf32>
    %181 = arith.select %179, %175, %180 : vector<11x128xi1>, vector<11x128xf32>
    %c22 = arith.constant 22 : index
    %c0_148 = arith.constant 0 : index
    %182 = vector.load %arg26[%c22, %c0_148] : memref<99x128xf32, #tpu.memory_space<vmem>>, vector<11x128xf32>
    tpu.vector_store %arg26[%c22, %c0_148], %181 {strides = array<i32>} : memref<99x128xf32, #tpu.memory_space<vmem>>, vector<11x128xf32>,
    %c0_149 = arith.constant 0 : index
    %c16 = arith.constant 16 : index
    %183 = vector.load %arg22[%c0_149, %c16] : memref<11x162xf32, #tpu.memory_space<vmem>>, vector<11x128xf32>
    %cst_150 = arith.constant 1.000000e+00 : f32
    %184 = vector.broadcast %cst_150 : f32 to vector<1x128xf32>
    %185 = arith.cmpf oge, %13, %184 : vector<1x128xf32>
    %cst_151 = arith.constant 0.000000e+00 : f32
    %186 = vector.shape_cast %185 : vector<1x128xi1> to vector<1x128xi1>
    %187 = vector.broadcast %186 : vector<1x128xi1> to vector<11x128xi1>
    %188 = vector.broadcast %cst_151 : f32 to vector<11x128xf32>
    %189 = arith.select %187, %183, %188 : vector<11x128xi1>, vector<11x128xf32>
    %c33_152 = arith.constant 33 : index
    %c0_153 = arith.constant 0 : index
    %190 = vector.load %arg26[%c33_152, %c0_153] : memref<99x128xf32, #tpu.memory_space<vmem>>, vector<11x128xf32>
    tpu.vector_store %arg26[%c33_152, %c0_153], %189 {strides = array<i32>} : memref<99x128xf32, #tpu.memory_space<vmem>>, vector<11x128xf32>,
    %c0_154 = arith.constant 0 : index
    %c17_155 = arith.constant 17 : index
    %191 = vector.load %arg22[%c0_154, %c17_155] : memref<11x162xf32, #tpu.memory_space<vmem>>, vector<11x128xf32>
    %c44 = arith.constant 44 : index
    %c0_156 = arith.constant 0 : index
    %192 = vector.load %arg26[%c44, %c0_156] : memref<99x128xf32, #tpu.memory_space<vmem>>, vector<11x128xf32>
    tpu.vector_store %arg26[%c44, %c0_156], %191 {strides = array<i32>} : memref<99x128xf32, #tpu.memory_space<vmem>>, vector<11x128xf32>,
    %c0_157 = arith.constant 0 : index
    %c18_158 = arith.constant 18 : index
    %193 = vector.load %arg22[%c0_157, %c18_158] : memref<11x162xf32, #tpu.memory_space<vmem>>, vector<11x128xf32>
    %cst_159 = arith.constant 1.400000e+01 : f32
    %194 = vector.broadcast %cst_159 : f32 to vector<1x128xf32>
    %195 = arith.cmpf ole, %13, %194 : vector<1x128xf32>
    %cst_160 = arith.constant 0.000000e+00 : f32
    %196 = vector.shape_cast %195 : vector<1x128xi1> to vector<1x128xi1>
    %197 = vector.broadcast %196 : vector<1x128xi1> to vector<11x128xi1>
    %198 = vector.broadcast %cst_160 : f32 to vector<11x128xf32>
    %199 = arith.select %197, %193, %198 : vector<11x128xi1>, vector<11x128xf32>
    %c55 = arith.constant 55 : index
    %c0_161 = arith.constant 0 : index
    %200 = vector.load %arg26[%c55, %c0_161] : memref<99x128xf32, #tpu.memory_space<vmem>>, vector<11x128xf32>
    tpu.vector_store %arg26[%c55, %c0_161], %199 {strides = array<i32>} : memref<99x128xf32, #tpu.memory_space<vmem>>, vector<11x128xf32>,
    %c0_162 = arith.constant 0 : index
    %c32_163 = arith.constant 32 : index
    %201 = vector.load %arg22[%c0_162, %c32_163] : memref<11x162xf32, #tpu.memory_space<vmem>>, vector<11x128xf32>
    %cst_164 = arith.constant 1.000000e+00 : f32
    %202 = vector.broadcast %cst_164 : f32 to vector<1x128xf32>
    %203 = arith.cmpf oge, %13, %202 : vector<1x128xf32>
    %cst_165 = arith.constant 0.000000e+00 : f32
    %204 = vector.shape_cast %203 : vector<1x128xi1> to vector<1x128xi1>
    %205 = vector.broadcast %204 : vector<1x128xi1> to vector<11x128xi1>
    %206 = vector.broadcast %cst_165 : f32 to vector<11x128xf32>
    %207 = arith.select %205, %201, %206 : vector<11x128xi1>, vector<11x128xf32>
    %c66_166 = arith.constant 66 : index
    %c0_167 = arith.constant 0 : index
    %208 = vector.load %arg26[%c66_166, %c0_167] : memref<99x128xf32, #tpu.memory_space<vmem>>, vector<11x128xf32>
    tpu.vector_store %arg26[%c66_166, %c0_167], %207 {strides = array<i32>} : memref<99x128xf32, #tpu.memory_space<vmem>>, vector<11x128xf32>,
    %c0_168 = arith.constant 0 : index
    %c33_169 = arith.constant 33 : index
    %209 = vector.load %arg22[%c0_168, %c33_169] : memref<11x162xf32, #tpu.memory_space<vmem>>, vector<11x128xf32>
    %c77 = arith.constant 77 : index
    %c0_170 = arith.constant 0 : index
    %210 = vector.load %arg26[%c77, %c0_170] : memref<99x128xf32, #tpu.memory_space<vmem>>, vector<11x128xf32>
    tpu.vector_store %arg26[%c77, %c0_170], %209 {strides = array<i32>} : memref<99x128xf32, #tpu.memory_space<vmem>>, vector<11x128xf32>,
    %c0_171 = arith.constant 0 : index
    %c34_172 = arith.constant 34 : index
    %211 = vector.load %arg22[%c0_171, %c34_172] : memref<11x162xf32, #tpu.memory_space<vmem>>, vector<11x128xf32>
    %cst_173 = arith.constant 1.400000e+01 : f32
    %212 = vector.broadcast %cst_173 : f32 to vector<1x128xf32>
    %213 = arith.cmpf ole, %13, %212 : vector<1x128xf32>
    %cst_174 = arith.constant 0.000000e+00 : f32
    %214 = vector.shape_cast %213 : vector<1x128xi1> to vector<1x128xi1>
    %215 = vector.broadcast %214 : vector<1x128xi1> to vector<11x128xi1>
    %216 = vector.broadcast %cst_174 : f32 to vector<11x128xf32>
    %217 = arith.select %215, %211, %216 : vector<11x128xi1>, vector<11x128xf32>
    %c88 = arith.constant 88 : index
    %c0_175 = arith.constant 0 : index
    %218 = vector.load %arg26[%c88, %c0_175] : memref<99x128xf32, #tpu.memory_space<vmem>>, vector<11x128xf32>
    tpu.vector_store %arg26[%c88, %c0_175], %217 {strides = array<i32>} : memref<99x128xf32, #tpu.memory_space<vmem>>, vector<11x128xf32>,
    %c0_176 = arith.constant 0 : index
    %c0_177 = arith.constant 0 : index
    %219 = vector.load %arg26[%c0_176, %c0_177] : memref<99x128xf32, #tpu.memory_space<vmem>>, vector<99x128xf32>
    %c0_178 = arith.constant 0 : index
    %c0_179 = arith.constant 0 : index
    %220 = vector.load %arg8[%c0_178, %c0_179] : memref<10x99xf32, #tpu.memory_space<vmem>>, vector<10x99xf32>
    %cst_180 = arith.constant dense<0.000000e+00> : vector<10x128xf32>
    %221 = tpu.matmul %220, %219, %cst_180 {dimension_numbers = #tpu.dot_dimension_numbers<[1], [0], [0], [1], [0, 0, 1, 1], [], []>} : vector<10x99xf32>, vector<99x128xf32>, vector<10x128xf32> -> vector<10x128xf32>
    %c0_181 = arith.constant 0 : index
    %c0_182 = arith.constant 0 : index
    %222 = vector.load %arg9[%c0_181, %c0_182] : memref<10x1xf32, #tpu.memory_space<vmem>>, vector<10x1xf32>
    %223 = vector.broadcast %222 : vector<10x1xf32> to vector<10x128xf32>
    %224 = arith.addf %221, %223 : vector<10x128xf32>
    %cst_183 = arith.constant 0.000000e+00 : f32
    %225 = vector.broadcast %cst_183 : f32 to vector<10x128xf32>
    %226 = arith.maximumf %224, %225 : vector<10x128xf32>
    %c0_184 = arith.constant 0 : index
    %c17_185 = arith.constant 17 : index
    %227 = vector.load %arg23[%c0_184, %c17_185] : memref<10x162xf32, #tpu.memory_space<vmem>>, vector<10x128xf32>
    tpu.vector_store %arg23[%c0_184, %c17_185], %226 {strides = array<i32>} : memref<10x162xf32, #tpu.memory_space<vmem>>, vector<10x128xf32>,
    %c0_186 = arith.constant 0 : index
    %c0_187 = arith.constant 0 : index
    %228 = vector.load %arg23[%c0_186, %c0_187] : memref<10x162xf32, #tpu.memory_space<vmem>>, vector<10x128xf32>
    %cst_188 = arith.constant 1.000000e+00 : f32
    %229 = vector.broadcast %cst_188 : f32 to vector<1x128xf32>
    %230 = arith.cmpf oge, %13, %229 : vector<1x128xf32>
    %cst_189 = arith.constant 0.000000e+00 : f32
    %231 = vector.shape_cast %230 : vector<1x128xi1> to vector<1x128xi1>
    %232 = vector.broadcast %231 : vector<1x128xi1> to vector<10x128xi1>
    %233 = vector.broadcast %cst_189 : f32 to vector<10x128xf32>
    %234 = arith.select %232, %228, %233 : vector<10x128xi1>, vector<10x128xf32>
    %c0_190 = arith.constant 0 : index
    %c0_191 = arith.constant 0 : index
    %235 = vector.load %arg26[%c0_190, %c0_191] : memref<99x128xf32, #tpu.memory_space<vmem>>, vector<10x128xf32>
    tpu.vector_store %arg26[%c0_190, %c0_191], %234 {strides = array<i32>} : memref<99x128xf32, #tpu.memory_space<vmem>>, vector<10x128xf32>,
    %c0_192 = arith.constant 0 : index
    %c1_193 = arith.constant 1 : index
    %236 = vector.load %arg23[%c0_192, %c1_193] : memref<10x162xf32, #tpu.memory_space<vmem>>, vector<10x128xf32>
    %c10_194 = arith.constant 10 : index
    %c0_195 = arith.constant 0 : index
    %237 = vector.load %arg26[%c10_194, %c0_195] : memref<99x128xf32, #tpu.memory_space<vmem>>, vector<10x128xf32>
    tpu.vector_store %arg26[%c10_194, %c0_195], %236 {strides = array<i32>} : memref<99x128xf32, #tpu.memory_space<vmem>>, vector<10x128xf32>,
    %c0_196 = arith.constant 0 : index
    %c2_197 = arith.constant 2 : index
    %238 = vector.load %arg23[%c0_196, %c2_197] : memref<10x162xf32, #tpu.memory_space<vmem>>, vector<10x128xf32>
    %cst_198 = arith.constant 1.400000e+01 : f32
    %239 = vector.broadcast %cst_198 : f32 to vector<1x128xf32>
    %240 = arith.cmpf ole, %13, %239 : vector<1x128xf32>
    %cst_199 = arith.constant 0.000000e+00 : f32
    %241 = vector.shape_cast %240 : vector<1x128xi1> to vector<1x128xi1>
    %242 = vector.broadcast %241 : vector<1x128xi1> to vector<10x128xi1>
    %243 = vector.broadcast %cst_199 : f32 to vector<10x128xf32>
    %244 = arith.select %242, %238, %243 : vector<10x128xi1>, vector<10x128xf32>
    %c20_200 = arith.constant 20 : index
    %c0_201 = arith.constant 0 : index
    %245 = vector.load %arg26[%c20_200, %c0_201] : memref<99x128xf32, #tpu.memory_space<vmem>>, vector<10x128xf32>
    tpu.vector_store %arg26[%c20_200, %c0_201], %244 {strides = array<i32>} : memref<99x128xf32, #tpu.memory_space<vmem>>, vector<10x128xf32>,
    %c0_202 = arith.constant 0 : index
    %c16_203 = arith.constant 16 : index
    %246 = vector.load %arg23[%c0_202, %c16_203] : memref<10x162xf32, #tpu.memory_space<vmem>>, vector<10x128xf32>
    %cst_204 = arith.constant 1.000000e+00 : f32
    %247 = vector.broadcast %cst_204 : f32 to vector<1x128xf32>
    %248 = arith.cmpf oge, %13, %247 : vector<1x128xf32>
    %cst_205 = arith.constant 0.000000e+00 : f32
    %249 = vector.shape_cast %248 : vector<1x128xi1> to vector<1x128xi1>
    %250 = vector.broadcast %249 : vector<1x128xi1> to vector<10x128xi1>
    %251 = vector.broadcast %cst_205 : f32 to vector<10x128xf32>
    %252 = arith.select %250, %246, %251 : vector<10x128xi1>, vector<10x128xf32>
    %c30_206 = arith.constant 30 : index
    %c0_207 = arith.constant 0 : index
    %253 = vector.load %arg26[%c30_206, %c0_207] : memref<99x128xf32, #tpu.memory_space<vmem>>, vector<10x128xf32>
    tpu.vector_store %arg26[%c30_206, %c0_207], %252 {strides = array<i32>} : memref<99x128xf32, #tpu.memory_space<vmem>>, vector<10x128xf32>,
    %c0_208 = arith.constant 0 : index
    %c17_209 = arith.constant 17 : index
    %254 = vector.load %arg23[%c0_208, %c17_209] : memref<10x162xf32, #tpu.memory_space<vmem>>, vector<10x128xf32>
    %c40_210 = arith.constant 40 : index
    %c0_211 = arith.constant 0 : index
    %255 = vector.load %arg26[%c40_210, %c0_211] : memref<99x128xf32, #tpu.memory_space<vmem>>, vector<10x128xf32>
    tpu.vector_store %arg26[%c40_210, %c0_211], %254 {strides = array<i32>} : memref<99x128xf32, #tpu.memory_space<vmem>>, vector<10x128xf32>,
    %c0_212 = arith.constant 0 : index
    %c18_213 = arith.constant 18 : index
    %256 = vector.load %arg23[%c0_212, %c18_213] : memref<10x162xf32, #tpu.memory_space<vmem>>, vector<10x128xf32>
    %cst_214 = arith.constant 1.400000e+01 : f32
    %257 = vector.broadcast %cst_214 : f32 to vector<1x128xf32>
    %258 = arith.cmpf ole, %13, %257 : vector<1x128xf32>
    %cst_215 = arith.constant 0.000000e+00 : f32
    %259 = vector.shape_cast %258 : vector<1x128xi1> to vector<1x128xi1>
    %260 = vector.broadcast %259 : vector<1x128xi1> to vector<10x128xi1>
    %261 = vector.broadcast %cst_215 : f32 to vector<10x128xf32>
    %262 = arith.select %260, %256, %261 : vector<10x128xi1>, vector<10x128xf32>
    %c50_216 = arith.constant 50 : index
    %c0_217 = arith.constant 0 : index
    %263 = vector.load %arg26[%c50_216, %c0_217] : memref<99x128xf32, #tpu.memory_space<vmem>>, vector<10x128xf32>
    tpu.vector_store %arg26[%c50_216, %c0_217], %262 {strides = array<i32>} : memref<99x128xf32, #tpu.memory_space<vmem>>, vector<10x128xf32>,
    %c0_218 = arith.constant 0 : index
    %c32_219 = arith.constant 32 : index
    %264 = vector.load %arg23[%c0_218, %c32_219] : memref<10x162xf32, #tpu.memory_space<vmem>>, vector<10x128xf32>
    %cst_220 = arith.constant 1.000000e+00 : f32
    %265 = vector.broadcast %cst_220 : f32 to vector<1x128xf32>
    %266 = arith.cmpf oge, %13, %265 : vector<1x128xf32>
    %cst_221 = arith.constant 0.000000e+00 : f32
    %267 = vector.shape_cast %266 : vector<1x128xi1> to vector<1x128xi1>
    %268 = vector.broadcast %267 : vector<1x128xi1> to vector<10x128xi1>
    %269 = vector.broadcast %cst_221 : f32 to vector<10x128xf32>
    %270 = arith.select %268, %264, %269 : vector<10x128xi1>, vector<10x128xf32>
    %c60_222 = arith.constant 60 : index
    %c0_223 = arith.constant 0 : index
    %271 = vector.load %arg26[%c60_222, %c0_223] : memref<99x128xf32, #tpu.memory_space<vmem>>, vector<10x128xf32>
    tpu.vector_store %arg26[%c60_222, %c0_223], %270 {strides = array<i32>} : memref<99x128xf32, #tpu.memory_space<vmem>>, vector<10x128xf32>,
    %c0_224 = arith.constant 0 : index
    %c33_225 = arith.constant 33 : index
    %272 = vector.load %arg23[%c0_224, %c33_225] : memref<10x162xf32, #tpu.memory_space<vmem>>, vector<10x128xf32>
    %c70_226 = arith.constant 70 : index
    %c0_227 = arith.constant 0 : index
    %273 = vector.load %arg26[%c70_226, %c0_227] : memref<99x128xf32, #tpu.memory_space<vmem>>, vector<10x128xf32>
    tpu.vector_store %arg26[%c70_226, %c0_227], %272 {strides = array<i32>} : memref<99x128xf32, #tpu.memory_space<vmem>>, vector<10x128xf32>,
    %c0_228 = arith.constant 0 : index
    %c34_229 = arith.constant 34 : index
    %274 = vector.load %arg23[%c0_228, %c34_229] : memref<10x162xf32, #tpu.memory_space<vmem>>, vector<10x128xf32>
    %cst_230 = arith.constant 1.400000e+01 : f32
    %275 = vector.broadcast %cst_230 : f32 to vector<1x128xf32>
    %276 = arith.cmpf ole, %13, %275 : vector<1x128xf32>
    %cst_231 = arith.constant 0.000000e+00 : f32
    %277 = vector.shape_cast %276 : vector<1x128xi1> to vector<1x128xi1>
    %278 = vector.broadcast %277 : vector<1x128xi1> to vector<10x128xi1>
    %279 = vector.broadcast %cst_231 : f32 to vector<10x128xf32>
    %280 = arith.select %278, %274, %279 : vector<10x128xi1>, vector<10x128xf32>
    %c80_232 = arith.constant 80 : index
    %c0_233 = arith.constant 0 : index
    %281 = vector.load %arg26[%c80_232, %c0_233] : memref<99x128xf32, #tpu.memory_space<vmem>>, vector<10x128xf32>
    tpu.vector_store %arg26[%c80_232, %c0_233], %280 {strides = array<i32>} : memref<99x128xf32, #tpu.memory_space<vmem>>, vector<10x128xf32>,
    %c0_234 = arith.constant 0 : index
    %c0_235 = arith.constant 0 : index
    %282 = vector.load %arg26[%c0_234, %c0_235] : memref<99x128xf32, #tpu.memory_space<vmem>>, vector<90x128xf32>
    %c0_236 = arith.constant 0 : index
    %c0_237 = arith.constant 0 : index
    %283 = vector.load %arg10[%c0_236, %c0_237] : memref<10x90xf32, #tpu.memory_space<vmem>>, vector<10x90xf32>
    %cst_238 = arith.constant dense<0.000000e+00> : vector<10x128xf32>
    %284 = tpu.matmul %283, %282, %cst_238 {dimension_numbers = #tpu.dot_dimension_numbers<[1], [0], [0], [1], [0, 0, 1, 1], [], []>} : vector<10x90xf32>, vector<90x128xf32>, vector<10x128xf32> -> vector<10x128xf32>
    %c0_239 = arith.constant 0 : index
    %c0_240 = arith.constant 0 : index
    %285 = vector.load %arg11[%c0_239, %c0_240] : memref<10x1xf32, #tpu.memory_space<vmem>>, vector<10x1xf32>
    %286 = vector.broadcast %285 : vector<10x1xf32> to vector<10x128xf32>
    %287 = arith.addf %284, %286 : vector<10x128xf32>
    %cst_241 = arith.constant 0.000000e+00 : f32
    %288 = vector.broadcast %cst_241 : f32 to vector<10x128xf32>
    %289 = arith.maximumf %287, %288 : vector<10x128xf32>
    %c0_242 = arith.constant 0 : index
    %c17_243 = arith.constant 17 : index
    %290 = vector.load %arg24[%c0_242, %c17_243] : memref<10x162xf32, #tpu.memory_space<vmem>>, vector<10x128xf32>
    tpu.vector_store %arg24[%c0_242, %c17_243], %289 {strides = array<i32>} : memref<10x162xf32, #tpu.memory_space<vmem>>, vector<10x128xf32>,
    %c0_244 = arith.constant 0 : index
    %c17_245 = arith.constant 17 : index
    %291 = vector.load %arg24[%c0_244, %c17_245] : memref<10x162xf32, #tpu.memory_space<vmem>>, vector<10x128xf32>
    %c0_246 = arith.constant 0 : index
    %c18_247 = arith.constant 18 : index
    %292 = vector.load %arg24[%c0_246, %c18_247] : memref<10x162xf32, #tpu.memory_space<vmem>>, vector<10x128xf32>
    %c0_248 = arith.constant 0 : index
    %c33_249 = arith.constant 33 : index
    %293 = vector.load %arg24[%c0_248, %c33_249] : memref<10x162xf32, #tpu.memory_space<vmem>>, vector<10x128xf32>
    %c0_250 = arith.constant 0 : index
    %c34_251 = arith.constant 34 : index
    %294 = vector.load %arg24[%c0_250, %c34_251] : memref<10x162xf32, #tpu.memory_space<vmem>>, vector<10x128xf32>
    %295 = arith.maximumf %291, %292 : vector<10x128xf32>
    %296 = arith.maximumf %293, %294 : vector<10x128xf32>
    %297 = arith.maximumf %295, %296 : vector<10x128xf32>
    %c0_252 = arith.constant 0 : index
    %c0_253 = arith.constant 0 : index
    %298 = vector.load %arg15[%c0_252, %c0_253] : memref<128x32xf32, #tpu.memory_space<vmem>>, vector<128x32xf32>
    %cst_254 = arith.constant dense<0.000000e+00> : vector<10x32xf32>
    %299 = tpu.matmul %297, %298, %cst_254 {dimension_numbers = #tpu.dot_dimension_numbers<[1], [0], [0], [1], [0, 0, 1, 1], [], []>} : vector<10x128xf32>, vector<128x32xf32>, vector<10x32xf32> -> vector<10x32xf32>
    %300 = vector.extract_strided_slice %299 {offsets = [0, 0], sizes = [1, 32], strides = [1, 1]} : vector<10x32xf32> to vector<1x32xf32>
    %c0_255 = arith.constant 0 : index
    %c0_256 = arith.constant 0 : index
    %301 = vector.load %arg27[%c0_255, %c0_256] : memref<1x320xf32, #tpu.memory_space<vmem>>, vector<1x32xf32>
    tpu.vector_store %arg27[%c0_255, %c0_256], %300 {strides = array<i32>} : memref<1x320xf32, #tpu.memory_space<vmem>>, vector<1x32xf32>,
    %302 = vector.extract_strided_slice %299 {offsets = [1, 0], sizes = [1, 32], strides = [1, 1]} : vector<10x32xf32> to vector<1x32xf32>
    %c0_257 = arith.constant 0 : index
    %c32_258 = arith.constant 32 : index
    %303 = vector.load %arg27[%c0_257, %c32_258] : memref<1x320xf32, #tpu.memory_space<vmem>>, vector<1x32xf32>
    tpu.vector_store %arg27[%c0_257, %c32_258], %302 {strides = array<i32>} : memref<1x320xf32, #tpu.memory_space<vmem>>, vector<1x32xf32>,
    %304 = vector.extract_strided_slice %299 {offsets = [2, 0], sizes = [1, 32], strides = [1, 1]} : vector<10x32xf32> to vector<1x32xf32>
    %c0_259 = arith.constant 0 : index
    %c64_260 = arith.constant 64 : index
    %305 = vector.load %arg27[%c0_259, %c64_260] : memref<1x320xf32, #tpu.memory_space<vmem>>, vector<1x32xf32>
    tpu.vector_store %arg27[%c0_259, %c64_260], %304 {strides = array<i32>} : memref<1x320xf32, #tpu.memory_space<vmem>>, vector<1x32xf32>,
    %306 = vector.extract_strided_slice %299 {offsets = [3, 0], sizes = [1, 32], strides = [1, 1]} : vector<10x32xf32> to vector<1x32xf32>
    %c0_261 = arith.constant 0 : index
    %c96 = arith.constant 96 : index
    %307 = vector.load %arg27[%c0_261, %c96] : memref<1x320xf32, #tpu.memory_space<vmem>>, vector<1x32xf32>
    tpu.vector_store %arg27[%c0_261, %c96], %306 {strides = array<i32>} : memref<1x320xf32, #tpu.memory_space<vmem>>, vector<1x32xf32>,
    %308 = vector.extract_strided_slice %299 {offsets = [4, 0], sizes = [1, 32], strides = [1, 1]} : vector<10x32xf32> to vector<1x32xf32>
    %c0_262 = arith.constant 0 : index
    %c128 = arith.constant 128 : index
    %309 = vector.load %arg27[%c0_262, %c128] : memref<1x320xf32, #tpu.memory_space<vmem>>, vector<1x32xf32>
    tpu.vector_store %arg27[%c0_262, %c128], %308 {strides = array<i32>} : memref<1x320xf32, #tpu.memory_space<vmem>>, vector<1x32xf32>,
    %310 = vector.extract_strided_slice %299 {offsets = [5, 0], sizes = [1, 32], strides = [1, 1]} : vector<10x32xf32> to vector<1x32xf32>
    %c0_263 = arith.constant 0 : index
    %c160 = arith.constant 160 : index
    %311 = vector.load %arg27[%c0_263, %c160] : memref<1x320xf32, #tpu.memory_space<vmem>>, vector<1x32xf32>
    tpu.vector_store %arg27[%c0_263, %c160], %310 {strides = array<i32>} : memref<1x320xf32, #tpu.memory_space<vmem>>, vector<1x32xf32>,
    %312 = vector.extract_strided_slice %299 {offsets = [6, 0], sizes = [1, 32], strides = [1, 1]} : vector<10x32xf32> to vector<1x32xf32>
    %c0_264 = arith.constant 0 : index
    %c192 = arith.constant 192 : index
    %313 = vector.load %arg27[%c0_264, %c192] : memref<1x320xf32, #tpu.memory_space<vmem>>, vector<1x32xf32>
    tpu.vector_store %arg27[%c0_264, %c192], %312 {strides = array<i32>} : memref<1x320xf32, #tpu.memory_space<vmem>>, vector<1x32xf32>,
    %314 = vector.extract_strided_slice %299 {offsets = [7, 0], sizes = [1, 32], strides = [1, 1]} : vector<10x32xf32> to vector<1x32xf32>
    %c0_265 = arith.constant 0 : index
    %c224 = arith.constant 224 : index
    %315 = vector.load %arg27[%c0_265, %c224] : memref<1x320xf32, #tpu.memory_space<vmem>>, vector<1x32xf32>
    tpu.vector_store %arg27[%c0_265, %c224], %314 {strides = array<i32>} : memref<1x320xf32, #tpu.memory_space<vmem>>, vector<1x32xf32>,
    %316 = vector.extract_strided_slice %299 {offsets = [8, 0], sizes = [1, 32], strides = [1, 1]} : vector<10x32xf32> to vector<1x32xf32>
    %c0_266 = arith.constant 0 : index
    %c256 = arith.constant 256 : index
    %317 = vector.load %arg27[%c0_266, %c256] : memref<1x320xf32, #tpu.memory_space<vmem>>, vector<1x32xf32>
    tpu.vector_store %arg27[%c0_266, %c256], %316 {strides = array<i32>} : memref<1x320xf32, #tpu.memory_space<vmem>>, vector<1x32xf32>,
    %318 = vector.extract_strided_slice %299 {offsets = [9, 0], sizes = [1, 32], strides = [1, 1]} : vector<10x32xf32> to vector<1x32xf32>
    %c0_267 = arith.constant 0 : index
    %c288 = arith.constant 288 : index
    %319 = vector.load %arg27[%c0_267, %c288] : memref<1x320xf32, #tpu.memory_space<vmem>>, vector<1x32xf32>
    tpu.vector_store %arg27[%c0_267, %c288], %318 {strides = array<i32>} : memref<1x320xf32, #tpu.memory_space<vmem>>, vector<1x32xf32>,
    %c0_268 = arith.constant 0 : index
    %c0_269 = arith.constant 0 : index
    %320 = vector.load %arg27[%c0_268, %c0_269] : memref<1x320xf32, #tpu.memory_space<vmem>>, vector<1x320xf32>
    %c0_270 = arith.constant 0 : index
    %c0_271 = arith.constant 0 : index
    %321 = vector.load %arg12[%c0_270, %c0_271] : memref<320x5xf32, #tpu.memory_space<vmem>>, vector<320x5xf32>
    %cst_272 = arith.constant dense<0.000000e+00> : vector<1x5xf32>
    %322 = tpu.matmul %320, %321, %cst_272 {dimension_numbers = #tpu.dot_dimension_numbers<[1], [0], [0], [1], [0, 0, 1, 1], [], []>} : vector<1x320xf32>, vector<320x5xf32>, vector<1x5xf32> -> vector<1x5xf32>
    %c0_273 = arith.constant 0 : index
    %c0_274 = arith.constant 0 : index
    %323 = vector.load %arg13[%c0_273, %c0_274] : memref<1x5xf32, #tpu.memory_space<vmem>>, vector<1x5xf32>
    %324 = arith.addf %322, %323 : vector<1x5xf32>
    %c0_275 = arith.constant 0 : index
    %c0_276 = arith.constant 0 : index
    %325 = vector.load %arg18[%c0_275, %c0_276] : memref<1x5xf32, #tpu.memory_space<vmem>>, vector<1x5xf32>
    tpu.vector_store %arg18[%c0_275, %c0_276], %324 {strides = array<i32>} : memref<1x5xf32, #tpu.memory_space<vmem>>, vector<1x5xf32>,
    return
  }
}

</mosaic_0001>

<bundles_post_ra>
// kernel: tile.19
= control target key start
LH: loop header
LB: loop body
LE: loop exit
PB: predicated region body
PF: predicated region fallthrough
CT: control target
= control target key end

     0   :  { %s67_s10 = smov 112   ;;  %s68_s11 = smov 80   ;;  %vm3_vm0 = vcmask 130048   ;;  %vm9_vm1 = vcmask 1048448   ;;  %vm15_vm2 = vcmask 917248   ;;  %vm21_vm3 = vcmask 786048   ;;  %s111_s0 = inlined_call_operand.vmem [shape: f32[8,16], index: 0, kind: input, shape index: {}]   ;;  %s112_s1 = inlined_call_operand.vmem [shape: f32[1,128], index: 1, kind: output, shape index: {}]  }
   0x1   :  { %v53_v0 = vld [vmem:[%s111_s0 + $0x7] sm:$0x1]   ;;  %v55_v1 = vld [vmem:[%s111_s0 + $0x5] sm:$0x1]   ;;  %v57_v2 = vld [vmem:[%s111_s0 + $0x3] sm:$0x1]  }
   0x2   :  { %7 = vrot.lane.b32.xlu0 %v53_v0, %s67_s10  ;;  %19 = vrot.lane.b32.xlu1 %v55_v1, %s68_s11  ;;  %s69_s14 = smov 48   ;;  %v54_v3 = vld [vmem:[%s111_s0 + $0x6] sm:$0x1]   ;;  %v56_v4 = vld [vmem:[%s111_s0 + $0x4] sm:$0x1]   ;;  %s70_s21 = smov 96  }
   0x3   :  { %31 = vrot.lane.b32.xlu2 %v57_v2, %s69_s14  ;;  %v58_v5 = vld [vmem:[%s111_s0 + $0x2] sm:$0x1]   ;;  %s71_s22 = smov 64   ;;  %s72_s23 = smov 32   ;;  %v59_v6 = vld [vmem:[%s111_s0 + $0x1] sm:$0x1]  }
   0x4   :  { %s73_s26 = smov 16   ;;  %v2_v7 = vld [vmem:[%s111_s0] sm:$0x1]   ;;  %vm27_vm4 = vcmask 654848   ;;  %vm33_vm5 = vcmask 523648   ;;  %vm39_vm6 = vcmask 392448  }
   0x5   :  { %4 = vst.msk [vmem:[#allocation0] sm:$0x1] %vm3_vm0, %v2_v7   ;;  %vm45_vm7 = vcmask 261248  }
   0xa   :  { %13 = vrot.lane.b32.xlu0 %v54_v3, %s70_s21  ;;  %25 = vrot.lane.b32.xlu1 %v56_v4, %s71_s22 }
   0xb   :  { %37 = vrot.lane.b32.xlu2 %v58_v5, %s72_s23 }
  0x12   :  { %43 = vrot.lane.b32.xlu0 %v59_v6, %s73_s26 }
  0x5d   :  { %v32_v8 = vpop.permute.xlu2 %31  }
  0x65   :  { %v38_v9 = vpop.permute.xlu2 %37  }
  0x74   :  { %v8_v10 = vpop.permute.xlu0 %7   ;;  %v20_v11 = vpop.permute.xlu1 %19  }
  0x75   :  { %10 = vst.msk [vmem:[#allocation0] sm:$0x1] %vm9_vm1, %v8_v10  }
  0x7c   :  { %v14_v12 = vpop.permute.xlu0 %13   ;;  %v26_v13 = vpop.permute.xlu1 %25  }
  0x7d   :  { %16 = vst.msk [vmem:[#allocation0] sm:$0x1] %vm15_vm2, %v14_v12  }
  0x7e   :  { %22 = vst.msk [vmem:[#allocation0] sm:$0x1] %vm21_vm3, %v20_v11  }
  0x7f   :  { %28 = vst.msk [vmem:[#allocation0] sm:$0x1] %vm27_vm4, %v26_v13  }
  0x80   :  { %34 = vst.msk [vmem:[#allocation0] sm:$0x1] %vm33_vm5, %v32_v8  }
  0x81   :  { %40 = vst.msk [vmem:[#allocation0] sm:$0x1] %vm39_vm6, %v38_v9  }
  0x84   :  { %v44_v14 = vpop.permute.xlu0 %43  }
  0x85   :  { %46 = vst.msk [vmem:[#allocation0] sm:$0x1] %vm45_vm7, %v44_v14  }
  0x8c   :  { %v49_v15 = vld [vmem:[#allocation0] sm:$0x1] }
  0x8d   :  { %52 = vst [vmem:[%s112_s1] sm:$0x1] %v49_v15 }

// kernel: tile.14
= control target key start
LH: loop header
LB: loop body
LE: loop exit
PB: predicated region body
PF: predicated region fallthrough
CT: control target
= control target key end

     0   :  { %s56_s8 = smov 96   ;;  %s57_s11 = smov 32   ;;  %vm3_vm0 = vcmask 261120   ;;  %vm9_vm1 = vcmask 1048320   ;;  %vm15_vm2 = vcmask 785920   ;;  %vm21_vm3 = vcmask 523520   ;;  %s93_s0 = inlined_call_operand.vmem [shape: f32[16,32], index: 0, kind: input, shape index: {}]   ;;  %s94_s1 = inlined_call_operand.vmem [shape: f32[1,512], index: 1, kind: output, shape index: {}]  }
   0x1   :  { %v47_v0 = vld [vmem:[%s93_s0 + $0x3] ss:$4 sm:$0xf]   ;;  %v49_v1 = vld [vmem:[%s93_s0 + $0x1] ss:$4 sm:$0xf]  }
   0x2   :  { %7 = vrot.lane.b32.xlu0 %v47_v0, %s56_s8  ;;  %19 = vrot.lane.b32.xlu1 %v49_v1, %s57_s11  ;;  %v48_v2 = vld [vmem:[%s93_s0 + $0x2] ss:$4 sm:$0xf]   ;;  %s58_s14 = smov 64  }
   0x3   :  { %v2_v3 = vld [vmem:[%s93_s0] ss:$4 sm:$0xf]  }
   0x4   :  { %4 = vst.msk [vmem:[#allocation0] ss:$8 sm:$0xf] %vm3_vm0, %v2_v3  }
   0xa   :  { %13 = vrot.lane.b32.xlu0 %v48_v2, %s58_s14 }
  0x74   :  { %v8_v4 = vpop.permute.xlu0 %7   ;;  %v20_v5 = vpop.permute.xlu1 %19  }
  0x75   :  { %10 = vst.msk [vmem:[#allocation0] ss:$8 sm:$0xf] %vm9_vm1, %v8_v4  }
  0x7c   :  { %v14_v6 = vpop.permute.xlu0 %13  }
  0x7d   :  { %16 = vst.msk [vmem:[#allocation0] ss:$8 sm:$0xf] %vm15_vm2, %v14_v6  }
  0x7e   :  { %22 = vst.msk [vmem:[#allocation0] ss:$8 sm:$0xf] %vm21_vm3, %v20_v5  }
  0x85   :  { %v25_v7 = vld [vmem:[#allocation0] sm:$0x1]  ;;  %v30_v8 = vld [vmem:[#allocation0 + $0x8] sm:$0x1]  ;;  %v36_v9 = vld [vmem:[#allocation0 + $0x10] sm:$0x1] }
  0x86   :  { %28 = vst [vmem:[%s94_s1] sm:$0x1] %v25_v7  ;;  %v42_v10 = vld [vmem:[#allocation0 + $0x18] sm:$0x1] }
  0x87   :  { %50 = vst [vmem:[%s94_s1 + $0x1] sm:$0x1] %v30_v8 }
  0x88   :  { %51 = vst [vmem:[%s94_s1 + $0x2] sm:$0x1] %v36_v9 }
  0x89   :  { %52 = vst [vmem:[%s94_s1 + $0x3] sm:$0x1] %v42_v10 }

// kernel: vestibular_forward.1
= control target key start
LH: loop header
LB: loop body
LE: loop exit
PB: predicated region body
PF: predicated region fallthrough
CT: control target
= control target key end

     0   :  { %s4883_s0 = inlined_call_operand.<no memory space> [shape: f32[1], index: 0, kind: input, shape index: {}]   ;;  %s4884_s1 = inlined_call_operand.<no memory space> [shape: f32[1], index: 1, kind: input, shape index: {}]   ;;  %s4885_s2 = inlined_call_operand.<no memory space> [shape: f32[1], index: 2, kind: input, shape index: {}]   ;;  %s4886_s3 = inlined_call_operand.vmem [shape: f32[3,512], index: 3, kind: input, shape index: {}]   ;;  %s4887_s4 = inlined_call_operand.vmem [shape: f32[10,27], index: 4, kind: input, shape index: {}]   ;;  %s4888_s5 = inlined_call_operand.vmem [shape: f32[10,1], index: 5, kind: input, shape index: {}]   ;;  %s4889_s6 = inlined_call_operand.vmem [shape: f32[10,90], index: 6, kind: input, shape index: {}]   ;;  %s4890_s7 = inlined_call_operand.vmem [shape: f32[10,1], index: 7, kind: input, shape index: {}]   ;;  %s4891_s8 = inlined_call_operand.vmem [shape: f32[10,99], index: 8, kind: input, shape index: {}]   ;;  %s4892_s9 = inlined_call_operand.vmem [shape: f32[10,1], index: 9, kind: input, shape index: {}]   ;;  %s4893_s10 = inlined_call_operand.vmem [shape: f32[10,90], index: 10, kind: input, shape index: {}]   ;;  %s4894_s11 = inlined_call_operand.vmem [shape: f32[10,1], index: 11, kind: input, shape index: {}]   ;;  %s4895_s12 = inlined_call_operand.vmem [shape: f32[320,5], index: 12, kind: input, shape index: {}]   ;;  %s4896_s13 = inlined_call_operand.vmem [shape: f32[1,5], index: 13, kind: input, shape index: {}]   ;;  %s4897_s14 = inlined_call_operand.vmem [shape: f32[512,128], index: 14, kind: input, shape index: {}]   ;;  %s4898_s15 = inlined_call_operand.vmem [shape: f32[128,32], index: 15, kind: input, shape index: {}]   ;;  %s4899_s16 = inlined_call_operand.vmem [shape: f32[1,512], index: 16, kind: input, shape index: {}]   ;;  %s4900_s17 = inlined_call_operand.vmem [shape: f32[1,128], index: 17, kind: input, shape index: {}]   ;;  %s4901_s18 = inlined_call_operand.hbm [shape: f32[1,5], index: 18, kind: output, shape index: {}]  }
   0x1   :  { %4913 = sst [smem:[#allocation17_spill]] %s4883_s0 }
   0x2   :  { %4914 = sst [smem:[#allocation18_spill]] %s4884_s1 }
   0x3   :  { %4915 = sst [smem:[#allocation19_spill]] %s4885_s2 }
   0x4   :  { %v106_v0 = vld [vmem:[%s4886_s3] sm:$0x77]  ;;  %s3119_s29 = smov 33  }
   0x5   :  { %110 = vrot.lane.b32.xlu0 %v106_v0, %s3119_s29 }
   0x6   :  { %26 = vsyncpa [#allocation15], 0  ;;  %v107_v1 = vld [vmem:[%s4886_s3 + $0x8] sm:$0x77]  ;;  %v3120_v2 = vmov 0.0   ;;  %vm65_vm0 = vcmask 534528  }
   0x7   :  { %63 = vst [vmem:[#allocation2] sm:$0x77] %v3120_v2  ;;  %v3121_v3 = vmov 0   ;;  %vm124_vm1 = vcmask 1042696   ;;  %vm125_vm2 = vcmask 1046532   ;;  %vm4903_vm3 = vcmask 269312  }
   0x8   :  { %64 = vst [vmem:[#allocation2 + $0x8] sm:$0x77] %v3120_v2  ;;  %2976 = vset.pattern.permute.xlu0 %v3121_v3  ;;  %2977 = vset.pattern.permute.xlu1 %v3121_v3  ;;  %vm126_vm4 = vmor %vm125_vm2, %vm124_vm1  ;;  %vm4902_vm5 = vcmask 1043456   ;;  %vm129_vm6 = vcmask 264192   ;;  %v3267_v12 = vld [vmem:[%s4899_s16] sm:$0xf] }
   0x9   :  { %67 = vst [vmem:[#allocation3] sm:$0xff] %v3120_v2  ;;  %2978 = vset.pattern.permute.xlu2 %v3121_v3  ;;  %vm133_vm7 = vcmp.ge.f32.partialorder %v3267_v12, 1.0  ;;  %s3122_s16 = smov 127   ;;  %s3123_s1 = smov 126   ;;  %vm4904_vm12 = vcmask 785408   ;;  %vm211_vm13 = vcmp.le.f32.partialorder %v3267_v12, 30.0 }
   0xa   :  { %73 = vst [vmem:[#allocation3 + $0x28] sm:$0x3] %v3120_v2  ;;  %v134_v14 = vsel %vm133_vm7, 1, %v3121_v3  ;;  %s3124_s20 = smov 96   ;;  %s3125_s21 = smov 94   ;;  %vm4905_vm14 = vcmask 1039360  }
   0xb   :  { %74 = vst [vmem:[#allocation3 + $0x30] sm:$0x3] %v3120_v2  ;;  %v136_v18 = vperm.slane %v134_v14, 1  ;;  %v137_v19 = vperm.slane %v134_v14, 2  ;;  %v138_v21 = vperm.slane %v134_v14, 3  ;;  %v135_v25 = vperm.slane %v134_v14, 0 }
   0xc   :  { %75 = vst [vmem:[#allocation3 + $0x38] sm:$0x3] %v3120_v2  ;;  %s3126_s22 = smov 95   ;;  %s3127_s2 = smov 64   ;;  %vm4908_vm15 = vcmask 1031168   ;;  %vm457_vm1 = vcmask 523264  }
   0xd   :  { %112 = vrot.lane.b32.xlu0 %v107_v1, %s3119_s29  ;;  %76 = vst [vmem:[#allocation3 + $0x40] sm:$0x3] %v3120_v2  ;;  %vm3271_vm8 = vcmp.eq.s32.totalorder %v136_v18, 1  ;;  %vm3275_vm9 = vcmp.eq.s32.totalorder %v137_v19, 1  ;;  %vm3281_vm10 = vcmp.eq.s32.totalorder %v138_v21, 1  ;;  %vm3293_vm11 = vcmp.eq.s32.totalorder %v135_v25, 1 }
   0xe   :  { %79 = vst [vmem:[#allocation4] sm:$0xff] %v3120_v2  ;;  %s3128_s23 = smov 63   ;;  %s3129_s24 = smov 62   ;;  %vm4910_vm7 = vcmask 769024  }
   0xf   :  { %84 = vst [vmem:[#allocation4 + $0x28] sm:$0x3] %v3120_v2  ;;  %s5021_s25 = sld [smem:[#allocation18_spill]]  ;;  %s3132_s0 = smov 110  }
  0x10   :  { %85 = vst [vmem:[#allocation4 + $0x30] sm:$0x3] %v3120_v2  ;;  %s3133_s3 = smov 112  }
  0x11   :  { %86 = vst [vmem:[#allocation4 + $0x38] sm:$0x3] %v3120_v2 }
  0x12   :  { %87 = vst [vmem:[#allocation4 + $0x40] sm:$0x3] %v3120_v2 }
  0x13   :  { %89 = vst [vmem:[#allocation5] sm:$0xff] %v3120_v2 }
  0x14   :  { %92 = vst [vmem:[#allocation5 + $0x10] sm:$0x7] %v3120_v2 }
  0x15   :  { %95 = vst [vmem:[#allocation6] sm:$0xff] %v3120_v2 }
  0x16   :  { %97 = vst [vmem:[#allocation6 + $0x10] sm:$0x3] %v3120_v2 }
  0x17   :  { %100 = vst [vmem:[#allocation7] sm:$0xff] %v3120_v2 }
  0x18   :  { %102 = vst [vmem:[#allocation7 + $0x10] sm:$0x3] %v3120_v2 }
  0x19   :  { %66 = vst.msk [vmem:[#allocation2 + $0x10] sm:$0x7] %vm65_vm0, %v3120_v2 }
  0x77   :  { %v111_v4 = vpop.permute.xlu0 %110 }
  0x78   :  { %v114_v5 = vrot.slane %v111_v4, 4 }
  0x7a   :  { %v117_v6 = vsel %vm4903_vm3, %v114_v5, %v111_v4 }
  0x7b   :  { %127 = vst.msk [vmem:[#allocation2] sm:$0x77] %vm126_vm4, %v117_v6 }
  0x7f   :  { %v113_v7 = vpop.permute.xlu0 %112 }
  0x80   :  { %v115_v8 = vrot.slane %v113_v7, 4 }
  0x82   :  { %v131_v9 = vld [vmem:[#allocation2] sm:$0x77]  ;;  %v119_v10 = vsel %vm4902_vm5, %v114_v5, %v115_v8  ;;  %130 = vst.msk [vmem:[#allocation2 + $0x10] sm:$0x7] %vm129_vm6, %v115_v8  ;;  %vm4907_vm6 = vcmask 777216   ;;  %vm556_vm5 = vcmask 506880  }
  0x83   :  { %145 = vst [vmem:[#allocation1] ss:$2 sm:$0xff] %v131_v9  ;;  %v120_v11 = vsel %vm4903_vm3, %v119_v10, %v113_v7  ;;  %v164_v13 = vld [vmem:[#allocation2] sm:$0x77]  ;;  %vm4906_vm3 = vcmask 1042432  }
  0x84   :  { %128 = vst [vmem:[#allocation2 + $0x8] sm:$0x77] %v120_v11  ;;  %v208_v23 = vld [vmem:[#allocation2] sm:$0x77] }
  0x85   :  { %v277_v38 = vld [vmem:[#allocation2] sm:$0x77] }
  0x86   :  { %v332_v48 = vld [vmem:[#allocation2] sm:$0x77] }
  0x87   :  { %v372_v57 = vld [vmem:[#allocation2] sm:$0x77] }
  0x88   :  { %v431_v1 = vld [vmem:[#allocation2] sm:$0x77] }
  0x89   :  { %v166_v20 = vld [vmem:[#allocation2 + $0x10] sm:$0x7]  ;;  %v486_v11 = vld [vmem:[#allocation2] sm:$0x77] }
  0x8a   :  { %v148_v15 = vld.sshfl [vmem:[#allocation1] sm:$0xff pattern:$0x75316420]  ;;  %v149_v16 = vld.sshfl [vmem:[#allocation1 + $0x8] sm:$0xff pattern:$0x75316420] }
  0x8b   :  { %170 = vst [vmem:[#allocation1] ss:$2 sm:$0xff] %v164_v13  ;;  %v132_v17 = vld [vmem:[#allocation2 + $0x8] sm:$0x77]  ;;  %v157_v30 = vsel %vm3271_vm8, %v149_v16, 0.0  ;;  %v156_v42 = vsel %vm3293_vm11, %v148_v15, 0.0 }
  0x8c   :  { %147 = vst [vmem:[#allocation1 + $0x10] ss:$2 sm:$0xff] %v132_v17  ;;  %v165_v28 = vld [vmem:[#allocation2 + $0x8] sm:$0x77]  ;;  %v210_v34 = vld [vmem:[#allocation2 + $0x10] sm:$0x7] }
  0x8d   :  { %174 = vst [vmem:[#allocation1 + $0x20] ss:$2 sm:$0xff] %v166_v20  ;;  %v209_v41 = vld [vmem:[#allocation2 + $0x8] sm:$0x77]  ;;  %v279_v47 = vld [vmem:[#allocation2 + $0x10] sm:$0x7] }
  0x8e   :  { %161 = vst [vmem:[#allocation8 + $0xd0] sm:$0x7] %v157_v30  ;;  %v278_v51 = vld [vmem:[#allocation2 + $0x8] sm:$0x77]  ;;  %v334_v56 = vld [vmem:[#allocation2 + $0x10] sm:$0x7] }
  0x8f   :  { %160 = vst [vmem:[#allocation8 + $0xb0] sm:$0x7] %v156_v42  ;;  %v333_v60 = vld [vmem:[#allocation2 + $0x8] sm:$0x77]  ;;  %v374_v63 = vld [vmem:[#allocation2 + $0x10] sm:$0x7] }
  0x90   :  { %v373_v6 = vld [vmem:[#allocation2 + $0x8] sm:$0x77]  ;;  %v433_v10 = vld [vmem:[#allocation2 + $0x10] sm:$0x7]  ;;  %v530_v20 = vld [vmem:[#allocation2] sm:$0x77] }
  0x91   :  { %v432_v15 = vld [vmem:[#allocation2 + $0x8] sm:$0x77]  ;;  %v488_v19 = vld [vmem:[#allocation2 + $0x10] sm:$0x7] }
  0x92   :  { %v176_v26 = vld.sshfl [vmem:[#allocation1 + $0x8] sm:$0xff pattern:$0x75316420]  ;;  %v3279_v27 = vld.sshfl [vmem:[#allocation1] sm:$0xff pattern:$0x75316420] }
  0x93   :  { %224 = vst [vmem:[#allocation1] ss:$2 sm:$0xff] %v208_v23  ;;  %v150_v31 = vld.sshfl [vmem:[#allocation1 + $0x10] sm:$0xff pattern:$0x75316420]  ;;  %v181_v54 = vrot.slane %v176_v26, 5 }
  0x94   :  { %v151_v32 = vld.sshfl [vmem:[#allocation1 + $0x18] sm:$0xff pattern:$0x75316420]  ;;  %v158_v33 = vsel %vm3275_vm9, %v150_v31, 0.0  ;;  %v487_v25 = vld [vmem:[#allocation2 + $0x8] sm:$0x77] }
  0x95   :  { %172 = vst [vmem:[#allocation1 + $0x10] ss:$2 sm:$0xff] %v165_v28  ;;  %v159_v35 = vsel %vm3281_vm10, %v151_v32, 0.0  ;;  %v3291_v36 = vld.sshfl [vmem:[#allocation1 + $0x20] sm:$0xff pattern:$0x75316420] }
  0x96   :  { %162 = vst [vmem:[#allocation8 + $0x10] sm:$0x7] %v158_v33  ;;  %v532_v30 = vld [vmem:[#allocation2 + $0x10] sm:$0x7]  ;;  %v531_v32 = vld [vmem:[#allocation2 + $0x8] sm:$0x77] }
  0x97   :  { %228 = vst [vmem:[#allocation1 + $0x20] ss:$2 sm:$0xff] %v210_v34 }
  0x98   :  { %163 = vst [vmem:[#allocation8 + $0x48] sm:$0x7] %v159_v35 }
  0x9a   :  { %v230_v39 = vld.sshfl [vmem:[#allocation1 + $0x8] sm:$0xff pattern:$0x75316420]  ;;  %v3297_v40 = vld.sshfl [vmem:[#allocation1] sm:$0xff pattern:$0x75316420] }
  0x9b   :  { %283 = vst [vmem:[#allocation1] ss:$2 sm:$0xff] %v277_v38 }
  0x9c   :  { %v177_v43 = vld.sshfl [vmem:[#allocation1 + $0x10] sm:$0xff pattern:$0x75316420]  ;;  %v3301_v44 = vld.sshfl [vmem:[#allocation1 + $0x18] sm:$0xff pattern:$0x75316420] }
  0x9d   :  { %v182_v45 = vrot.slane %v177_v43, 5  ;;  %226 = vst [vmem:[#allocation1 + $0x10] ss:$2 sm:$0xff] %v209_v41 }
  0x9e   :  { %v233_v46 = vld.sshfl [vmem:[#allocation1 + $0x20] sm:$0xff pattern:$0x75316420] }
  0x9f   :  { %189 = vrot.lane.b32.xlu2 %v182_v45, %s3122_s16  ;;  %242 = vrot.lane.b32.xlu1 %v233_v46, %s3123_s1  ;;  %287 = vst [vmem:[#allocation1 + $0x20] ss:$2 sm:$0xff] %v279_v47  ;;  %v183_v46 = vrot.slane %v3301_v44, 5  ;;  %v184_v47 = vrot.slane %v3291_v36, 5 }
  0xa2   :  { %v289_v49 = vld.sshfl [vmem:[#allocation1 + $0x8] sm:$0xff pattern:$0x75316420]  ;;  %v3305_v50 = vld.sshfl [vmem:[#allocation1] sm:$0xff pattern:$0x75316420] }
  0xa3   :  { %339 = vst [vmem:[#allocation1 + $0x1] ss:$2 sm:$0xff] %v332_v48 }
  0xa4   :  { %v231_v52 = vld.sshfl [vmem:[#allocation1 + $0x10] sm:$0xff pattern:$0x75316420]  ;;  %v232_v53 = vld.sshfl [vmem:[#allocation1 + $0x18] sm:$0xff pattern:$0x75316420] }
  0xa5   :  { %285 = vst [vmem:[#allocation1 + $0x10] ss:$2 sm:$0xff] %v278_v51 }
  0xa6   :  { %v292_v55 = vld.sshfl [vmem:[#allocation1 + $0x20] sm:$0xff pattern:$0x75316420] }
  0xa7   :  { %236 = vrot.lane.b32.xlu2 %v230_v39, %s3123_s1  ;;  %301 = vrot.lane.b32.xlu0 %v292_v55, %s3124_s20  ;;  %343 = vst [vmem:[#allocation1 + $0x21] ss:$2 sm:$0xff] %v334_v56 }
  0xa8   :  { %187 = vrot.lane.b32.xlu1 %v181_v54, %s3122_s16 }
  0xaa   :  { %v3310_v58 = vld.sshfl [vmem:[#allocation1] sm:$0xff pattern:$0x75316420]  ;;  %v345_v59 = vld.sshfl [vmem:[#allocation1 + $0x8] sm:$0xff pattern:$0x75316420] }
  0xab   :  { %378 = vst [vmem:[#allocation1] ss:$2 sm:$0xff] %v372_v57 }
  0xac   :  { %v290_v61 = vld.sshfl [vmem:[#allocation1 + $0x10] sm:$0xff pattern:$0x75316420]  ;;  %v291_v62 = vld.sshfl [vmem:[#allocation1 + $0x18] sm:$0xff pattern:$0x75316420] }
  0xad   :  { %341 = vst [vmem:[#allocation1 + $0x11] ss:$2 sm:$0xff] %v333_v60 }
  0xae   :  { %v3312_v0 = vld.sshfl [vmem:[#allocation1 + $0x20] sm:$0xff pattern:$0x75316420] }
  0xaf   :  { %297 = vrot.lane.b32.xlu2 %v290_v61, %s3124_s20  ;;  %382 = vst [vmem:[#allocation1 + $0x20] ss:$2 sm:$0xff] %v374_v63  ;;  %238 = vrot.lane.b32.xlu0 %v231_v52, %s3123_s1  ;;  %v180_v52 = vrot.slane %v3279_v27, 5 }
  0xb0   :  { %295 = vrot.lane.b32.xlu1 %v289_v49, %s3124_s20 }
  0xb2   :  { %v384_v4 = vld.sshfl [vmem:[#allocation1 + $0x8] sm:$0xff pattern:$0x75316420]  ;;  %v3317_v5 = vld.sshfl [vmem:[#allocation1] sm:$0xff pattern:$0x75316420] }
  0xb3   :  { %437 = vst [vmem:[#allocation1] ss:$2 sm:$0xff] %v431_v1 }
  0xb4   :  { %v347_v7 = vld.sshfl [vmem:[#allocation1 + $0x18] sm:$0xff pattern:$0x75316420]  ;;  %v346_v8 = vld.sshfl [vmem:[#allocation1 + $0x10] sm:$0xff pattern:$0x75316420] }
  0xb5   :  { %380 = vst [vmem:[#allocation1 + $0x10] ss:$2 sm:$0xff] %v373_v6 }
  0xb6   :  { %v387_v9 = vld.sshfl [vmem:[#allocation1 + $0x20] sm:$0xff pattern:$0x75316420] }
  0xb7   :  { %299 = vrot.lane.b32.xlu2 %v291_v62, %s3124_s20  ;;  %240 = vrot.lane.b32.xlu0 %v232_v53, %s3123_s1  ;;  %441 = vst [vmem:[#allocation1 + $0x20] ss:$2 sm:$0xff] %v433_v10 }
  0xb8   :  { %396 = vrot.lane.b32.xlu1 %v387_v9, %s3125_s21 }
  0xba   :  { %v443_v13 = vld.sshfl [vmem:[#allocation1 + $0x8] sm:$0xff pattern:$0x75316420]  ;;  %v442_v14 = vld.sshfl [vmem:[#allocation1] sm:$0xff pattern:$0x75316420] }
  0xbb   :  { %492 = vst [vmem:[#allocation1] ss:$2 sm:$0xff] %v486_v11 }
  0xbc   :  { %v385_v16 = vld.sshfl [vmem:[#allocation1 + $0x10] sm:$0xff pattern:$0x75316420]  ;;  %v386_v17 = vld.sshfl [vmem:[#allocation1 + $0x18] sm:$0xff pattern:$0x75316420] }
  0xbd   :  { %439 = vst [vmem:[#allocation1 + $0x10] ss:$2 sm:$0xff] %v432_v15 }
  0xbe   :  { %v446_v18 = vld.sshfl [vmem:[#allocation1 + $0x20] sm:$0xff pattern:$0x75316420] }
  0xbf   :  { %351 = vrot.lane.b32.xlu2 %v345_v59, %s3126_s22  ;;  %353 = vrot.lane.b32.xlu0 %v346_v8, %s3126_s22  ;;  %496 = vst [vmem:[#allocation1 + $0x20] ss:$2 sm:$0xff] %v488_v19 }
  0xc0   :  { %390 = vrot.lane.b32.xlu1 %v384_v4, %s3125_s21 }
  0xc2   :  { %v497_v21 = vld.sshfl [vmem:[#allocation1] sm:$0xff pattern:$0x75316420]  ;;  %v498_v23 = vld.sshfl [vmem:[#allocation1 + $0x8] sm:$0xff pattern:$0x75316420] }
  0xc3   :  { %536 = vst [vmem:[#allocation1] ss:$2 sm:$0xff] %v530_v20  ;;  %v503_v38 = vrot.slane %v498_v23, 3  ;;  %v502_v44 = vrot.slane %v497_v21, 3 }
  0xc4   :  { %v444_v26 = vld.sshfl [vmem:[#allocation1 + $0x10] sm:$0xff pattern:$0x75316420]  ;;  %v445_v28 = vld.sshfl [vmem:[#allocation1 + $0x18] sm:$0xff pattern:$0x75316420] }
  0xc5   :  { %494 = vst [vmem:[#allocation1 + $0x10] ss:$2 sm:$0xff] %v487_v25 }
  0xc6   :  { %v501_v31 = vld.sshfl [vmem:[#allocation1 + $0x20] sm:$0xff pattern:$0x75316420] }
  0xc7   :  { %449 = vrot.lane.b32.xlu2 %v443_v13, %s3127_s2  ;;  %455 = vrot.lane.b32.xlu0 %v446_v18, %s3127_s2  ;;  %540 = vst [vmem:[#allocation1 + $0x20] ss:$2 sm:$0xff] %v532_v30  ;;  %v506_v41 = vrot.slane %v501_v31, 3 }
  0xc8   :  { %392 = vrot.lane.b32.xlu1 %v385_v16, %s3125_s21 }
  0xca   :  { %v542_v42 = vld.sshfl [vmem:[#allocation1 + $0x8] sm:$0xff pattern:$0x75316420]  ;;  %v541_v49 = vld.sshfl [vmem:[#allocation1] sm:$0xff pattern:$0x75316420] }
  0xcc   :  { %v499_v33 = vld.sshfl [vmem:[#allocation1 + $0x10] sm:$0xff pattern:$0x75316420]  ;;  %v500_v34 = vld.sshfl [vmem:[#allocation1 + $0x18] sm:$0xff pattern:$0x75316420] }
  0xcd   :  { %v504_v35 = vrot.slane %v499_v33, 3  ;;  %538 = vst [vmem:[#allocation1 + $0x10] ss:$2 sm:$0xff] %v531_v32  ;;  %v505_v39 = vrot.slane %v500_v34, 3 }
  0xce   :  { %v545_v45 = vld.sshfl [vmem:[#allocation1 + $0x20] sm:$0xff pattern:$0x75316420] }
  0xcf   :  { %451 = vrot.lane.b32.xlu2 %v444_v26, %s3127_s2  ;;  %394 = vrot.lane.b32.xlu0 %v386_v17, %s3125_s21 }
  0xd0   :  { %511 = vrot.lane.b32.xlu1 %v504_v35, %s3128_s23 }
  0xd4   :  { %v543_v43 = vld.sshfl [vmem:[#allocation1 + $0x10] sm:$0xff pattern:$0x75316420]  ;;  %v544_v48 = vld.sshfl [vmem:[#allocation1 + $0x18] sm:$0xff pattern:$0x75316420] }
  0xd7   :  { %453 = vrot.lane.b32.xlu2 %v445_v28, %s3127_s2  ;;  %509 = vrot.lane.b32.xlu0 %v503_v38, %s3128_s23 }
  0xd8   :  { %513 = vrot.lane.b32.xlu1 %v505_v39, %s3128_s23 }
  0xdf   :  { %515 = vrot.lane.b32.xlu2 %v506_v41, %s3128_s23  ;;  %548 = vrot.lane.b32.xlu0 %v542_v42, %s3129_s24 }
  0xe0   :  { %550 = vrot.lane.b32.xlu1 %v543_v43, %s3129_s24 }
  0xe7   :  { %554 = vrot.lane.b32.xlu2 %v545_v45, %s3129_s24  ;;  %355 = vrot.lane.b32.xlu0 %v347_v7, %s3126_s22 }
  0xe8   :  { %357 = vrot.lane.b32.xlu1 %v3312_v0, %s3126_s22 }
  0xef   :  { %191 = vrot.lane.b32.xlu2 %v183_v46, %s3122_s16  ;;  %193 = vrot.lane.b32.xlu0 %v184_v47, %s3122_s16 }
  0xf0   :  { %552 = vrot.lane.b32.xlu1 %v544_v48, %s3129_s24 }
  0xf7   :  { %447 = vrot.lane.b32.xlu2 %v442_v14, %s3127_s2  ;;  %546 = vrot.lane.b32.xlu0 %v541_v49, %s3129_s24 }
  0xf8   :  { %388 = vrot.lane.b32.xlu1 %v3317_v5, %s3125_s21 }
  0xf9   :  { %v3350_v51 = vpop.permute.xlu2 %189 }
  0xff   :  { %293 = vrot.lane.b32.xlu2 %v3305_v50, %s3124_s20  ;;  %507 = vrot.lane.b32.xlu0 %v502_v44, %s3128_s23 }
 0x100   :  { %234 = vrot.lane.b32.xlu1 %v3297_v40, %s3123_s1 }
 0x101   :  { %v3357_v36 = vpop.permute.xlu2 %236 }
 0x107   :  { %185 = vrot.lane.b32.xlu2 %v180_v52, %s3122_s16 }
 0x108   :  { %349 = vrot.lane.b32.xlu1 %v3310_v58, %s3126_s22  ;;  %v3372_v58 = vsel %vm211_vm13, 1, %v3121_v3  ;;  %vm4909_vm13 = vcmask 515072  }
 0x109   :  { %v298_v53 = vpop.permute.xlu2 %297  ;;  %v214_v63 = vperm.slane %v3372_v58, 1  ;;  %v215_v13 = vperm.slane %v3372_v58, 2  ;;  %v216_v14 = vperm.slane %v3372_v58, 3 }
 0x10b   :  { %vm3381_vm0 = vcmp.eq.s32.totalorder %v214_v63, 1  ;;  %vm3399_vm2 = vcmp.eq.s32.totalorder %v215_v13, 1  ;;  %vm3403_vm4 = vcmp.eq.s32.totalorder %v216_v14, 1 }
 0x111   :  { %v300_v54 = vpop.permute.xlu2 %299  ;;  %v243_v55 = vpop.permute.xlu1 %242 }
 0x112   :  { %v306_v50 = vsel %vm4904_vm12, %v298_v53, %v300_v54 }
 0x113   :  { %v314_v56 = vsel %vm3275_vm9, %v306_v50, 0.0 }
 0x114   :  { %v322_v57 = vrot.slane %v314_v56, 7 }
 0x116   :  { %330 = vst [vmem:[#allocation8 + $0x40] sm:$0xe] %v322_v57 }
 0x119   :  { %v3367_v27 = vpop.permute.xlu2 %351  ;;  %v302_v40 = vpop.permute.xlu0 %301 }
 0x11a   :  { %v3369_v59 = vpop.permute.xlu1 %187  ;;  %v307_v60 = vsel %vm4904_vm12, %v300_v54, %v302_v40 }
 0x11b   :  { %v197_v61 = vsel %vm4905_vm14, %v3369_v59, %v3350_v51  ;;  %v315_v62 = vsel %vm3281_vm10, %v307_v60, 0.0 }
 0x11c   :  { %205 = vst [vmem:[#allocation8 + $0xd0] sm:$0x38] %v197_v61  ;;  %v323_v12 = vrot.slane %v315_v62, 7 }
 0x11e   :  { %331 = vst [vmem:[#allocation8 + $0x178] sm:$0xe] %v323_v12 }
 0x121   :  { %v3385_v1 = vpop.permute.xlu2 %449  ;;  %v239_v4 = vpop.permute.xlu0 %238 }
 0x122   :  { %v3387_v5 = vpop.permute.xlu1 %295  ;;  %v246_v6 = vsel %vm4908_vm15, %v3357_v36, %v239_v4 }
 0x123   :  { %v305_v7 = vsel %vm4904_vm12, %v3387_v5, %v298_v53  ;;  %v254_v8 = vsel %vm3381_vm0, %v246_v6, 0.0 }
 0x124   :  { %v313_v9 = vsel %vm3271_vm8, %v305_v7, 0.0  ;;  %v262_v10 = vrot.slane %v254_v8, 2 }
 0x125   :  { %v321_v11 = vrot.slane %v313_v9, 7 }
 0x126   :  { %270 = vst [vmem:[#allocation8 + $0xd0] sm:$0xc0] %v262_v10 }
 0x127   :  { %274 = vst [vmem:[#allocation8 + $0x128] sm:$0x1] %v262_v10 }
 0x128   :  { %329 = vst [vmem:[#allocation8 + $0x128] sm:$0xe] %v321_v11 }
 0x129   :  { %v452_v17 = vpop.permute.xlu2 %451  ;;  %v241_v18 = vpop.permute.xlu0 %240 }
 0x12a   :  { %v397_v19 = vpop.permute.xlu1 %396  ;;  %v459_v20 = vsel %vm457_vm1, %v3385_v1, %v452_v17  ;;  %v247_v21 = vsel %vm4908_vm15, %v239_v4, %v241_v18  ;;  %v248_v23 = vsel %vm4908_vm15, %v241_v18, %v243_v55 }
 0x12b   :  { %v467_v25 = vsel %vm3271_vm8, %v459_v20, 0.0  ;;  %v255_v26 = vsel %vm3399_vm2, %v247_v21, 0.0  ;;  %v256_v28 = vsel %vm3403_vm4, %v248_v23, 0.0 }
 0x12c   :  { %v475_v30 = vrot.slane %v467_v25, 6  ;;  %v263_v31 = vrot.slane %v255_v26, 2  ;;  %v264_v32 = vrot.slane %v256_v28, 2 }
 0x12e   :  { %483 = vst [vmem:[#allocation8 + $0x110] sm:$0x1c] %v475_v30 }
 0x12f   :  { %271 = vst [vmem:[#allocation8 + $0x10] sm:$0xc0] %v263_v31 }
 0x130   :  { %272 = vst [vmem:[#allocation8 + $0x48] sm:$0xc0] %v264_v32 }
 0x131   :  { %275 = vst [vmem:[#allocation8 + $0x40] sm:$0x1] %v263_v31  ;;  %v454_v33 = vpop.permute.xlu2 %453  ;;  %v3417_v34 = vpop.permute.xlu0 %353 }
 0x132   :  { %276 = vst [vmem:[#allocation8 + $0x178] sm:$0x1] %v264_v32  ;;  %v3419_v35 = vpop.permute.xlu1 %390  ;;  %v460_v38 = vsel %vm457_vm1, %v452_v17, %v454_v33  ;;  %v361_v39 = vsel %vm4907_vm6, %v3367_v27, %v3417_v34  ;;  %v592_v32 = vld [vmem:[%s4888_s5 + $0x8] sm:$0x3] }
 0x133   :  { %v468_v41 = vsel %vm3275_vm9, %v460_v38, 0.0  ;;  %369 = vst [vmem:[#allocation8 + $0x128] sm:$0x70] %v361_v39  ;;  %600 = vperm.xlu0 %2976, %v592_v32   ;;  %v3471_v38 = vld [vmem:[%s4887_s4] sm:$0xff] }
 0x134   :  { %v476_v42 = vrot.slane %v468_v41, 6 }
 0x136   :  { %484 = vst [vmem:[#allocation8 + $0x90] sm:$0x1c] %v476_v42 }
 0x139   :  { %v516_v43 = vpop.permute.xlu2 %515  ;;  %v456_v45 = vpop.permute.xlu0 %455 }
 0x13a   :  { %v393_v46 = vpop.permute.xlu1 %392  ;;  %v461_v47 = vsel %vm457_vm1, %v454_v33, %v456_v45 }
 0x13b   :  { %v400_v48 = vsel %vm4910_vm7, %v3419_v35, %v393_v46  ;;  %v469_v49 = vsel %vm3281_vm10, %v461_v47, 0.0 }
 0x13c   :  { %v408_v44 = vsel %vm3381_vm0, %v400_v48, 0.0  ;;  %v477_v52 = vrot.slane %v469_v49, 6 }
 0x13d   :  { %v416_v53 = vrot.slane %v408_v44, 1  ;;  %v591_v44 = vld [vmem:[%s4888_s5] sm:$0xff] }
 0x13e   :  { %485 = vst [vmem:[#allocation8 + $0x118] sm:$0x1c] %v477_v52  ;;  %595 = vperm.xlu1 %2977, %v591_v44  }
 0x13f   :  { %424 = vst [vmem:[#allocation8 + $0x128] sm:$0x80] %v416_v53 }
 0x140   :  { %428 = vst [vmem:[#allocation8 + $0x110] sm:$0x3] %v416_v53  ;;  %v590_v53 = vld [vmem:[%s4887_s4 + $0x8] sm:$0x3] }
 0x141   :  { %v3434_v54 = vpop.permute.xlu2 %554  ;;  %v395_v55 = vpop.permute.xlu0 %394 }
 0x142   :  { %v512_v50 = vpop.permute.xlu1 %511  ;;  %v401_v56 = vsel %vm4910_vm7, %v393_v46, %v395_v55  ;;  %v402_v57 = vsel %vm4910_vm7, %v395_v55, %v397_v19 }
 0x143   :  { %v409_v40 = vsel %vm3399_vm2, %v401_v56, 0.0  ;;  %v410_v60 = vsel %vm3403_vm4, %v402_v57, 0.0 }
 0x144   :  { %v417_v61 = vrot.slane %v409_v40, 1  ;;  %v418_v62 = vrot.slane %v410_v60, 1 }
 0x146   :  { %425 = vst [vmem:[#allocation8 + $0x40] sm:$0x80] %v417_v61  ;;  %v578_v33 = vld [vmem:[#allocation8 + $0x128] sm:$0xff] }
 0x147   :  { %426 = vst [vmem:[#allocation8 + $0x178] sm:$0x80] %v418_v62 }
 0x148   :  { %429 = vst [vmem:[#allocation8 + $0x90] sm:$0x3] %v417_v61 }
 0x149   :  { %v192_v12 = vpop.permute.xlu2 %191  ;;  %430 = vst [vmem:[#allocation8 + $0x118] sm:$0x3] %v418_v62  ;;  %v3442_v63 = vpop.permute.xlu0 %509 }
 0x14a   :  { %v514_v4 = vpop.permute.xlu1 %513  ;;  %v198_v6 = vsel %vm4905_vm14, %v3350_v51, %v192_v12  ;;  %v519_v7 = vsel %vm4909_vm13, %v3442_v63, %v512_v50 }
 0x14b   :  { %v520_v8 = vsel %vm4909_vm13, %v512_v50, %v514_v4  ;;  %v521_v9 = vsel %vm4909_vm13, %v514_v4, %v516_v43  ;;  %206 = vst [vmem:[#allocation8 + $0x10] sm:$0x38] %v198_v6  ;;  %v574_v43 = vld [vmem:[#allocation8 + $0xd0] sm:$0xff] }
 0x14c   :  { %527 = vst [vmem:[#allocation8 + $0x110] sm:$0xe0] %v519_v7 }
 0x14d   :  { %528 = vst [vmem:[#allocation8 + $0x90] sm:$0xe0] %v520_v8 }
 0x14e   :  { %529 = vst [vmem:[#allocation8 + $0x118] sm:$0xe0] %v521_v9 }
 0x151   :  { %v448_v10 = vpop.permute.xlu2 %447  ;;  %v549_v11 = vpop.permute.xlu0 %548 }
 0x152   :  { %v551_v13 = vpop.permute.xlu1 %550  ;;  %v458_v14 = vsel %vm457_vm1, %v448_v10, %v3385_v1  ;;  %v575_v8 = vld [vmem:[#allocation8 + $0x10] sm:$0xff] }
 0x153   :  { %v558_v51 = vsel %vm556_vm5, %v549_v11, %v551_v13  ;;  %v466_v17 = vsel %vm3293_vm11, %v458_v14, 0.0 }
 0x154   :  { %v566_v18 = vsel %vm3381_vm0, %v558_v51, 0.0  ;;  %v474_v19 = vrot.slane %v466_v17, 6  ;;  %v583_v62 = vld [vmem:[#allocation8 + $0x90] sm:$0xff] }
 0x155   :  { %570 = vst [vmem:[#allocation8 + $0x100] sm:$0x7] %v566_v18 }
 0x156   :  { %482 = vst [vmem:[#allocation8 + $0x108] sm:$0x1c] %v474_v19 }
 0x159   :  { %v294_v20 = vpop.permute.xlu2 %293  ;;  %v356_v21 = vpop.permute.xlu0 %355 }
 0x15a   :  { %v358_v23 = vpop.permute.xlu1 %357  ;;  %v304_v25 = vsel %vm4904_vm12, %v294_v20, %v3387_v5  ;;  %v362_v1 = vsel %vm4907_vm6, %v3417_v34, %v356_v21  ;;  %v582_v5 = vld [vmem:[#allocation8 + $0x110] sm:$0xff]  ;;  %vm603_vm12 = vcmask 220160  }
 0x15b   :  { %v363_v26 = vsel %vm4907_vm6, %v356_v21, %v358_v23  ;;  %v312_v28 = vsel %vm3293_vm11, %v304_v25, 0.0  ;;  %370 = vst [vmem:[#allocation8 + $0x40] sm:$0x70] %v362_v1 }
 0x15c   :  { %v320_v30 = vrot.slane %v312_v28, 7  ;;  %v586_v31 = vld [vmem:[#allocation8 + $0x100] sm:$0x7]  ;;  %371 = vst [vmem:[#allocation8 + $0x178] sm:$0x70] %v363_v26 }
 0x15d   :  { %2931 = vmatpush.msk.msra.mxu3 %vm4906_vm3, %v586_v31 }
 0x15e   :  { %328 = vst [vmem:[#allocation8 + $0x160] sm:$0xe] %v320_v30 }
 0x15f   :  { %659 = vmatpush.msra.mxu3 %v582_v5 }
 0x161   :  { %660 = vmatpush.msra.mxu3 %v578_v33  ;;  %v186_v34 = vpop.permute.xlu2 %185  ;;  %v194_v39 = vpop.permute.xlu0 %193 }
 0x162   :  { %v553_v41 = vpop.permute.xlu1 %552  ;;  %v196_v42 = vsel %vm4905_vm14, %v186_v34, %v3369_v59  ;;  %v199_v45 = vsel %vm4905_vm14, %v192_v12, %v194_v39  ;;  %v213_v59 = vperm.slane %v3372_v58, 0  ;;  %v579_v12 = vld [vmem:[#allocation8 + $0x40] sm:$0xff] }
 0x163   :  { %v559_v46 = vsel %vm556_vm5, %v551_v13, %v553_v41  ;;  %v560_v47 = vsel %vm556_vm5, %v553_v41, %v3434_v54  ;;  %204 = vst [vmem:[#allocation8 + $0xb0] sm:$0x38] %v196_v42  ;;  %661 = vmatpush.msra.mxu3 %v574_v43  ;;  %v580_v4 = vld [vmem:[#allocation8 + $0x178] sm:$0xff] }
 0x164   :  { %207 = vst [vmem:[#allocation8 + $0x48] sm:$0x38] %v199_v45  ;;  %v567_v48 = vsel %vm3399_vm2, %v559_v46, 0.0  ;;  %v568_v49 = vsel %vm3403_vm4, %v560_v47, 0.0  ;;  %2932 = vmatmul.msk.f32.vlgmr.msra.gmra.mxu3 %vm603_vm12, %v3471_v38  ;;  %vm3489_vm14 = vcmp.eq.s32.totalorder %v213_v59, 1 }
 0x165   :  { %571 = vst [vmem:[#allocation8 + $0x58] sm:$0x7] %v567_v48 }
 0x166   :  { %572 = vst [vmem:[#allocation8 + $0xd8] sm:$0x7] %v568_v49 }
 0x169   :  { %v547_v54 = vpop.permute.xlu0 %546 }
 0x16a   :  { %v389_v55 = vpop.permute.xlu1 %388  ;;  %v557_v50 = vsel %vm556_vm5, %v547_v54, %v549_v11 }
 0x16b   :  { %v399_v58 = vsel %vm4910_vm7, %v389_v55, %v3419_v35  ;;  %v565_v56 = vsel %vm3489_vm14, %v557_v50, 0.0  ;;  %v584_v35 = vld [vmem:[#allocation8 + $0x118] sm:$0xff]  ;;  %v576_v11 = vld [vmem:[#allocation8 + $0x48] sm:$0xff] }
 0x16c   :  { %v407_v57 = vsel %vm3489_vm14, %v399_v58, 0.0  ;;  %v587_v40 = vld [vmem:[#allocation8 + $0x58] sm:$0x7]  ;;  %2933 = vmatmul.msk.f32.gmra.mxu3 %vm603_vm12, %v590_v53  ;;  %569 = vst [vmem:[#allocation8 + $0x148] sm:$0x7] %v565_v56 }
 0x16d   :  { %v415_v60 = vrot.slane %v407_v57, 1  ;;  %2934 = vmatpush.msk.msra.mxu2 %vm4906_vm3, %v587_v40  ;;  %v588_v61 = vld [vmem:[#allocation8 + $0xd8] sm:$0x7] }
 0x16e   :  { %2937 = vmatpush.msk.msrb.mxu3 %vm4906_vm3, %v588_v61 }
 0x16f   :  { %423 = vst [vmem:[#allocation8 + $0x160] sm:$0x80] %v415_v60  ;;  %682 = vmatpush.msra.mxu2 %v583_v62 }
 0x170   :  { %427 = vst [vmem:[#allocation8 + $0x108] sm:$0x3] %v415_v60  ;;  %705 = vmatpush.msrb.mxu3 %v584_v35 }
 0x171   :  { %683 = vmatpush.msra.mxu2 %v579_v12  ;;  %v508_v6 = vpop.permute.xlu0 %507 }
 0x172   :  { %706 = vmatpush.msrb.mxu3 %v580_v4  ;;  %v235_v7 = vpop.permute.xlu1 %234  ;;  %v518_v9 = vsel %vm4909_vm13, %v508_v6, %v3442_v63  ;;  %vm763_vm13 = vcmask 1047816  }
 0x173   :  { %v245_v10 = vsel %vm4908_vm15, %v235_v7, %v3357_v36  ;;  %684 = vmatpush.msra.mxu2 %v575_v8  ;;  %526 = vst [vmem:[#allocation8 + $0x108] sm:$0xe0] %v518_v9  ;;  %v585_v13 = vld [vmem:[#allocation8 + $0x148] sm:$0x7]  ;;  %vm4911_vm15 = vcmask 263168  }
 0x174   :  { %v253_v14 = vsel %vm3489_vm14, %v245_v10, 0.0  ;;  %707 = vmatpush.msrb.mxu3 %v576_v11  ;;  %2935 = vmatmul.msk.f32.vlgmr.msra.gmra.mxu2 %vm603_vm12, %v3471_v38 }
 0x175   :  { %2928 = vmatpush.msk.msra.mxu0 %vm4906_vm3, %v585_v13  ;;  %v261_v51 = vrot.slane %v253_v14, 2  ;;  %2938 = vmatmul.msk.f32.vlgmr.msrb.gmra.mxu3 %vm603_vm12, %v3471_v38  ;;  %vm77_vm3 = vcmask 533504  }
 0x176   :  { %78 = vst.msk [vmem:[#allocation3 + $0x48] sm:$0x3] %vm77_vm3, %v3120_v2 }
 0x177   :  { %269 = vst [vmem:[#allocation8 + $0xb0] sm:$0xc0] %v261_v51 }
 0x178   :  { %273 = vst [vmem:[#allocation8 + $0x160] sm:$0x1] %v261_v51 }
 0x179   :  { %88 = vst.msk [vmem:[#allocation4 + $0x48] sm:$0x3] %vm77_vm3, %v3120_v2  ;;  %vm4912_vm3 = vcmask 1041672  }
 0x17a   :  { %v350_v36 = vpop.permute.xlu1 %349  ;;  %v581_v63 = vld [vmem:[#allocation8 + $0x108] sm:$0xff] }
 0x17b   :  { %v360_v17 = vsel %vm4907_vm6, %v350_v36, %v3367_v27  ;;  %636 = vmatpush.msra.mxu0 %v581_v63  ;;  %vm4932_vm6 = vcmask 269312  }
 0x17c   :  { %368 = vst [vmem:[#allocation8 + $0x160] sm:$0x70] %v360_v17  ;;  %2936 = vmatmul.msk.f32.gmra.mxu2 %vm603_vm12, %v590_v53  ;;  %vm4933_vm7 = vmmov %vm4932_vm6 }
 0x17d   :  { %2939 = vmatmul.msk.f32.gmra.mxu3 %vm603_vm12, %v590_v53 }
 0x17e   :  { %v573_v19 = vld [vmem:[#allocation8 + $0xb0] sm:$0xff] }
 0x183   :  { %v577_v18 = vld [vmem:[#allocation8 + $0x160] sm:$0xff] }
 0x184   :  { %637 = vmatpush.msra.mxu0 %v577_v18 }
 0x186   :  { %638 = vmatpush.msra.mxu0 %v573_v19 }
 0x187   :  { %2929 = vmatmul.msk.f32.vlgmr.msra.gmra.mxu0 %vm603_vm12, %v3471_v38 }
 0x18f   :  { %2930 = vmatmul.msk.f32.gmra.mxu0 %vm603_vm12, %v590_v53  ;;  %vm71_vm12 = vcmask 539648  }
 0x190   :  { %72 = vst.msk [vmem:[#allocation3 + $0x20] sm:$0xff] %vm71_vm12, %v3120_v2 }
 0x191   :  { %83 = vst.msk [vmem:[#allocation4 + $0x20] sm:$0xff] %vm71_vm12, %v3120_v2  ;;  %vm4935_vm12 = vmmov %vm4932_vm6 }
 0x1a5   :  { %v601_v27 = vpop.permute.xlu0 %600 }
 0x1b0   :  { %v596_v21 = vpop.permute.xlu1 %595 }
 0x1e7   :  { %v663_v20 = vpop.f32.mrf.mxu3 }
 0x1e8   :  { %v664_v23 = vadd.f32 %v663_v20, %v596_v21 }
 0x1ea   :  { %v716_v25 = vmax.f32 %v664_v23, 0.0 }
 0x1ec   :  { %733 = vrot.lane.b32.xlu0 %v716_v25, %s3119_s29 }
 0x1ef   :  { %v666_v1 = vpop.f32.mrf.mxu3 }
 0x1f0   :  { %v667_v26 = vadd.f32 %v666_v1, %v601_v27 }
 0x1f2   :  { %v720_v28 = vmax.f32 %v667_v26, 0.0 }
 0x1f4   :  { %741 = vrot.lane.b32.xlu2 %v720_v28, %s3119_s29 }
 0x1f7   :  { %v686_v41 = vpop.f32.mrf.mxu2 }
 0x1f8   :  { %v709_v30 = vpop.f32.mrf.mxu3  ;;  %v687_v43 = vadd.f32 %v686_v41, %v596_v21 }
 0x1f9   :  { %v710_v31 = vadd.f32 %v709_v30, %v596_v21 }
 0x1fa   :  { %v717_v47 = vmax.f32 %v687_v43, 0.0 }
 0x1fb   :  { %v718_v32 = vmax.f32 %v710_v31, 0.0 }
 0x1fd   :  { %737 = vrot.lane.b32.xlu2 %v718_v32, %s3119_s29 }
 0x1ff   :  { %v689_v49 = vpop.f32.mrf.mxu2 }
 0x200   :  { %v712_v5 = vpop.f32.mrf.mxu3  ;;  %v690_v59 = vadd.f32 %v689_v49, %v601_v27 }
 0x201   :  { %v713_v33 = vadd.f32 %v712_v5, %v601_v27 }
 0x202   :  { %v721_v44 = vmax.f32 %v690_v59, 0.0 }
 0x203   :  { %v722_v34 = vmax.f32 %v713_v33, 0.0 }
 0x204   :  { %v640_v38 = vpop.f32.mrf.mxu0 }
 0x205   :  { %v641_v39 = vadd.f32 %v640_v38, %v596_v21  ;;  %745 = vrot.lane.b32.xlu2 %v722_v34, %s3119_s29 }
 0x207   :  { %v715_v42 = vmax.f32 %v641_v39, 0.0 }
 0x209   :  { %731 = vrot.lane.b32.xlu1 %v715_v42, %s3119_s29 }
 0x20c   :  { %v643_v45 = vpop.f32.mrf.mxu0 }
 0x20d   :  { %v644_v46 = vadd.f32 %v643_v45, %v601_v27 }
 0x20f   :  { %v719_v48 = vmax.f32 %v644_v46, 0.0 }
 0x211   :  { %739 = vrot.lane.b32.xlu0 %v719_v48, %s3119_s29  ;;  %735 = vrot.lane.b32.xlu1 %v717_v47, %s3119_s29 }
 0x219   :  { %743 = vrot.lane.b32.xlu1 %v721_v44, %s3119_s29 }
 0x24e   :  { %v742_v53 = vpop.permute.xlu2 %741 }
 0x257   :  { %v738_v54 = vpop.permute.xlu2 %737 }
 0x258   :  { %768 = vst.msk [vmem:[#allocation3 + $0x20] sm:$0xff] %vm4932_vm6, %v738_v54 }
 0x25e   :  { %v734_v50 = vpop.permute.xlu0 %733 }
 0x25f   :  { %v746_v55 = vpop.permute.xlu2 %745  ;;  %v3628_v45 = vld [vmem:[#allocation3 + $0x20] sm:$0xff] }
 0x260   :  { %775 = vst.msk [vmem:[#allocation3 + $0x48] sm:$0x3] %vm4911_vm15, %v746_v55 }
 0x27b   :  { %v732_v58 = vpop.permute.xlu1 %731 }
 0x27c   :  { %v3539_v56 = vsel %vm4933_vm7, %v732_v58, %v734_v50  ;;  %764 = vst.msk [vmem:[#allocation3] sm:$0xff] %vm763_vm13, %v732_v58  ;;  %vm4934_vm7 = vmmov %vm4932_vm6 }
 0x27d   :  { %v785_v2 = vsel %vm3271_vm8, %v3539_v56, 0.0  ;;  %1446 = vrot.lane.b32.xlu0 %v3539_v56, %s3129_s24  ;;  %v1366_v23 = vrot.slane %v3539_v56, 2 }
 0x27e   :  { %793 = vst [vmem:[#allocation8 + $0xd0] sm:$0xff] %v785_v2 }
 0x283   :  { %v3547_v57 = vld [vmem:[#allocation3] sm:$0xff]  ;;  %v740_v40 = vpop.permute.xlu0 %739  ;;  %v736_v60 = vpop.permute.xlu1 %735 }
 0x284   :  { %v784_v61 = vsel %vm3293_vm11, %v3547_v57, 0.0  ;;  %v750_v62 = vsel %vm4932_vm6, %v740_v40, %v742_v53  ;;  %770 = vst.msk [vmem:[#allocation3 + $0x28] sm:$0x3] %vm4912_vm3, %v740_v40  ;;  %v3555_v35 = vsel %vm4934_vm7, %v734_v50, %v736_v60  ;;  %v3558_v12 = vsel %vm4935_vm12, %v736_v60, %v738_v54  ;;  %1444 = vrot.lane.b32.xlu1 %v3547_v57, %s3129_s24  ;;  %vm4936_vm7 = vmmov %vm4932_vm6 }
 0x285   :  { %792 = vst [vmem:[#allocation8 + $0xb0] sm:$0xff] %v784_v61  ;;  %1265 = vrot.lane.b32.xlu2 %v3547_v57, %s3127_s2  ;;  %v786_v4 = vsel %vm3275_vm9, %v3555_v35, 0.0  ;;  %v787_v6 = vsel %vm3281_vm10, %v3558_v12, 0.0  ;;  %v1365_v14 = vrot.slane %v3547_v57, 2  ;;  %vm1052_vm12 = vcmask 1045504  }
 0x286   :  { %771 = vst [vmem:[#allocation3 + $0x30] sm:$0x3] %v750_v62  ;;  %v1367_v1 = vrot.slane %v3555_v35, 2  ;;  %v823_v28 = vrot.slane %v3555_v35, 6  ;;  %v1368_v60 = vrot.slane %v3558_v12, 2 }
 0x287   :  { %794 = vst [vmem:[#allocation8 + $0x10] sm:$0xff] %v786_v4 }
 0x288   :  { %795 = vst [vmem:[#allocation8 + $0x48] sm:$0xff] %v787_v6 }
 0x28b   :  { %v744_v7 = vpop.permute.xlu1 %743  ;;  %v1429_v8 = vld [vmem:[#allocation3 + $0x28] sm:$0x3] }
 0x28c   :  { %v751_v9 = vsel %vm4932_vm6, %v742_v53, %v744_v7  ;;  %v752_v10 = vsel %vm4936_vm7, %v744_v7, %v746_v55  ;;  %1267 = vrot.lane.b32.xlu1 %v3539_v56, %s3127_s2  ;;  %1454 = vrot.lane.b32.xlu0 %v1429_v8, %s3129_s24  ;;  %v1250_v51 = vld [vmem:[#allocation3 + $0x28] sm:$0x3]  ;;  %vm820_vm6 = vcmask 1041408   ;;  %vm4937_vm7 = vcmask 769024  }
 0x28d   :  { %772 = vst [vmem:[#allocation3 + $0x38] sm:$0x3] %v751_v9  ;;  %1165 = vrot.lane.b32.xlu2 %v3547_v57, %s3125_s21  ;;  %v781_v11 = vld [vmem:[#allocation3 + $0x30] sm:$0x3]  ;;  %v780_v17 = vld [vmem:[#allocation3 + $0x28] sm:$0x3]  ;;  %vm4938_vm15 = vmmov %vm4937_vm7 }
 0x28e   :  { %773 = vst [vmem:[#allocation3 + $0x40] sm:$0x3] %v752_v10  ;;  %v789_v13 = vsel %vm3271_vm8, %v781_v11, 0.0  ;;  %v788_v20 = vsel %vm3293_vm11, %v780_v17, 0.0  ;;  %v1150_v21 = vld [vmem:[#allocation3 + $0x28] sm:$0x3] }
 0x28f   :  { %797 = vst [vmem:[#allocation8 + $0x128] sm:$0x3] %v789_v13  ;;  %v1350_v25 = vld [vmem:[#allocation3 + $0x28] sm:$0x3]  ;;  %v986_v32 = vld [vmem:[#allocation3 + $0x30] sm:$0x3] }
 0x290   :  { %796 = vst [vmem:[#allocation8 + $0x160] sm:$0x3] %v788_v20  ;;  %v1370_v27 = vrot.slane %v1350_v25, 2  ;;  %v1351_v5 = vld [vmem:[#allocation3 + $0x30] sm:$0x3] }
 0x291   :  { %v1372_v33 = vrot.slane %v1351_v5, 2  ;;  %v1087_v34 = vld [vmem:[#allocation3 + $0x30] sm:$0x3] }
 0x292   :  { %v1371_v26 = vsel %vm1052_vm12, %v1365_v14, %v1370_v27  ;;  %v886_v42 = vld [vmem:[#allocation3 + $0x30] sm:$0x3] }
 0x293   :  { %v1373_v38 = vsel %vm1052_vm12, %v1366_v23, %v1372_v33  ;;  %v1430_v44 = vld [vmem:[#allocation3 + $0x30] sm:$0x3]  ;;  %v1254_v33 = vld [vmem:[#allocation3 + $0x48] sm:$0x3] }
 0x294   :  { %1004 = vrot.lane.b32.xlu1 %v3555_v35, %s3124_s20  ;;  %1275 = vrot.lane.b32.xlu0 %v1250_v51, %s3127_s2  ;;  %v782_v36 = vld [vmem:[#allocation3 + $0x38] sm:$0x3]  ;;  %v1251_v54 = vld [vmem:[#allocation3 + $0x30] sm:$0x3]  ;;  %v989_v51 = vld [vmem:[#allocation3 + $0x48] sm:$0x3] }
 0x295   :  { %v783_v63 = vld [vmem:[#allocation3 + $0x40] sm:$0x3]  ;;  %1380 = vrot.lane.b32.xlu2 %v1365_v14, %s3128_s23  ;;  %v790_v19 = vsel %vm3275_vm9, %v782_v36, 0.0  ;;  %v987_v30 = vld [vmem:[#allocation3 + $0x38] sm:$0x3]  ;;  %v824_v14 = vrot.slane %v3558_v12, 6 }
 0x296   :  { %v791_v18 = vsel %vm3281_vm10, %v783_v63, 0.0  ;;  %798 = vst [vmem:[#allocation8 + $0x40] sm:$0x3] %v790_v19  ;;  %v1088_v31 = vld [vmem:[#allocation3 + $0x38] sm:$0x3] }
 0x297   :  { %799 = vst [vmem:[#allocation8 + $0x178] sm:$0x3] %v791_v18  ;;  %v807_v39 = vld [vmem:[#allocation3 + $0x38] sm:$0x3]  ;;  %v1151_v61 = vld [vmem:[#allocation3 + $0x30] sm:$0x3] }
 0x298   :  { %v830_v41 = vrot.slane %v807_v39, 6  ;;  %v1431_v46 = vld [vmem:[#allocation3 + $0x38] sm:$0x3] }
 0x299   :  { %v1252_v47 = vld [vmem:[#allocation3 + $0x38] sm:$0x3] }
 0x29a   :  { %v831_v43 = vsel %vm820_vm6, %v823_v28, %v830_v41  ;;  %v1152_v49 = vld [vmem:[#allocation3 + $0x38] sm:$0x3] }
 0x29b   :  { %v887_v36 = vld [vmem:[#allocation3 + $0x38] sm:$0x3] }
 0x29c   :  { %1167 = vrot.lane.b32.xlu1 %v3539_v56, %s3125_s21  ;;  %1175 = vrot.lane.b32.xlu0 %v1150_v21, %s3125_s21  ;;  %v1352_v63 = vld [vmem:[#allocation3 + $0x38] sm:$0x3]  ;;  %v1433_v21 = vld [vmem:[#allocation3 + $0x48] sm:$0x3] }
 0x29d   :  { %1448 = vrot.lane.b32.xlu2 %v3555_v35, %s3129_s24  ;;  %v1374_v20 = vrot.slane %v1352_v63, 2 }
 0x29f   :  { %v1375_v25 = vsel %vm1052_vm12, %v1367_v1, %v1374_v20 }
 0x2a4   :  { %1382 = vrot.lane.b32.xlu1 %v1366_v23, %s3128_s23  ;;  %902 = vrot.lane.b32.xlu0 %v3539_v56, %s3123_s1  ;;  %v1090_v23 = vld [vmem:[#allocation3 + $0x48] sm:$0x3] }
 0x2a5   :  { %1269 = vrot.lane.b32.xlu2 %v3555_v35, %s3127_s2 }
 0x2ac   :  { %1390 = vrot.lane.b32.xlu1 %v1371_v26, %s3128_s23  ;;  %1384 = vrot.lane.b32.xlu0 %v1367_v1, %s3128_s23 }
 0x2ad   :  { %1169 = vrot.lane.b32.xlu2 %v3555_v35, %s3125_s21 }
 0x2b4   :  { %1014 = vrot.lane.b32.xlu1 %v987_v30, %s3124_s20  ;;  %840 = vrot.lane.b32.xlu0 %v823_v28, %s3122_s16 }
 0x2b5   :  { %904 = vrot.lane.b32.xlu2 %v3555_v35, %s3123_s1 }
 0x2bc   :  { %1115 = vrot.lane.b32.xlu1 %v1088_v31, %s3126_s22  ;;  %1012 = vrot.lane.b32.xlu0 %v986_v32, %s3124_s20 }
 0x2bd   :  { %1105 = vrot.lane.b32.xlu2 %v3555_v35, %s3126_s22 }
 0x2c4   :  { %1113 = vrot.lane.b32.xlu1 %v1087_v34, %s3126_s22  ;;  %1392 = vrot.lane.b32.xlu0 %v1373_v38, %s3128_s23  ;;  %v1432_v34 = vld [vmem:[#allocation3 + $0x40] sm:$0x3] }
 0x2c5   :  { %1002 = vrot.lane.b32.xlu2 %v3539_v56, %s3124_s20 }
 0x2cc   :  { %912 = vrot.lane.b32.xlu1 %v886_v42, %s3123_s1  ;;  %850 = vrot.lane.b32.xlu0 %v831_v43, %s3122_s16 }
 0x2cd   :  { %1103 = vrot.lane.b32.xlu2 %v3539_v56, %s3126_s22 }
 0x2d4   :  { %1452 = vrot.lane.b32.xlu1 %v3628_v45, %s3129_s24  ;;  %1008 = vrot.lane.b32.xlu0 %v3628_v45, %s3124_s20 }
 0x2d5   :  { %1458 = vrot.lane.b32.xlu2 %v1431_v46, %s3129_s24 }
 0x2dc   :  { %1273 = vrot.lane.b32.xlu1 %v3628_v45, %s3127_s2  ;;  %1450 = vrot.lane.b32.xlu0 %v3558_v12, %s3129_s24 }
 0x2dd   :  { %1279 = vrot.lane.b32.xlu2 %v1252_v47, %s3127_s2 }
 0x2df   :  { %v1266_v48 = vpop.permute.xlu2 %1265 }
 0x2e4   :  { %1173 = vrot.lane.b32.xlu1 %v3628_v45, %s3125_s21  ;;  %1271 = vrot.lane.b32.xlu0 %v3558_v12, %s3127_s2 }
 0x2e5   :  { %1179 = vrot.lane.b32.xlu2 %v1152_v49, %s3125_s21  ;;  %v1154_v49 = vld [vmem:[#allocation3 + $0x48] sm:$0x3] }
 0x2e7   :  { %v1166_v59 = vpop.permute.xlu2 %1165 }
 0x2ec   :  { %908 = vrot.lane.b32.xlu1 %v3628_v45, %s3123_s1  ;;  %1171 = vrot.lane.b32.xlu0 %v3558_v12, %s3125_s21 }
 0x2ed   :  { %1456 = vrot.lane.b32.xlu2 %v1430_v44, %s3129_s24 }
 0x2ef   :  { %v3650_v53 = vpop.permute.xlu2 %1380  ;;  %v1447_v50 = vpop.permute.xlu0 %1446 }
 0x2f4   :  { %1109 = vrot.lane.b32.xlu1 %v3628_v45, %s3126_s22  ;;  %906 = vrot.lane.b32.xlu0 %v3558_v12, %s3123_s1 }
 0x2f5   :  { %1277 = vrot.lane.b32.xlu2 %v1251_v54, %s3127_s2 }
 0x2f6   :  { %v1445_v55 = vpop.permute.xlu1 %1444 }
 0x2f7   :  { %v3657_v58 = vpop.permute.xlu2 %1448  ;;  %v3660_v2 = vsel %vm556_vm5, %v1445_v55, %v1447_v50 }
 0x2f8   :  { %v3664_v40 = vsel %vm556_vm5, %v1447_v50, %v3657_v58 }
 0x2fc   :  { %1386 = vrot.lane.b32.xlu1 %v1368_v60, %s3128_s23  ;;  %1107 = vrot.lane.b32.xlu0 %v3558_v12, %s3126_s22 }
 0x2fd   :  { %1177 = vrot.lane.b32.xlu2 %v1151_v61, %s3125_s21 }
 0x2fe   :  { %v1268_v62 = vpop.permute.xlu1 %1267  ;;  %v3673_v4 = vpop.permute.xlu0 %1454 }
 0x2ff   :  { %v3675_v6 = vpop.permute.xlu2 %1269  ;;  %v1285_v7 = vsel %vm457_vm1, %v1266_v48, %v1268_v62  ;;  %v1369_v48 = vrot.slane %v3628_v45, 2 }
 0x300   :  { %v1286_v8 = vsel %vm457_vm1, %v1268_v62, %v3675_v6  ;;  %v1301_v9 = vsel %vm3293_vm11, %v1285_v7, 0.0  ;;  %v889_v7 = vld [vmem:[#allocation3 + $0x48] sm:$0x3] }
 0x301   :  { %v1302_v10 = vsel %vm3271_vm8, %v1286_v8, 0.0  ;;  %v3684_v11 = vrot.slane %v1301_v9, 4  ;;  %v825_v8 = vrot.slane %v3628_v45, 6  ;;  %v1153_v9 = vld [vmem:[#allocation3 + $0x40] sm:$0x3] }
 0x302   :  { %v3686_v13 = vrot.slane %v1302_v10, 4  ;;  %v1354_v10 = vld [vmem:[#allocation3 + $0x48] sm:$0x3] }
 0x303   :  { %1337 = vst [vmem:[#allocation8 + $0xa0] sm:$0xf0] %v3684_v11  ;;  %v1378_v20 = vrot.slane %v1354_v10, 2  ;;  %v808_v10 = vld [vmem:[#allocation3 + $0x40] sm:$0x3] }
 0x304   :  { %1338 = vst [vmem:[#allocation8 + $0x170] sm:$0xf0] %v3686_v13  ;;  %842 = vrot.lane.b32.xlu1 %v824_v14, %s3122_s16  ;;  %1018 = vrot.lane.b32.xlu0 %v989_v51, %s3124_s20 }
 0x305   :  { %914 = vrot.lane.b32.xlu2 %v887_v36, %s3123_s1 }
 0x306   :  { %v3696_v17 = vpop.permute.xlu1 %1004  ;;  %v3698_v18 = vpop.permute.xlu0 %1275 }
 0x307   :  { %v3700_v19 = vpop.permute.xlu2 %1169 }
 0x30c   :  { %1462 = vrot.lane.b32.xlu1 %v1433_v21, %s3129_s24  ;;  %1119 = vrot.lane.b32.xlu0 %v1090_v23, %s3126_s22  ;;  %v1379_v21 = vsel %vm1052_vm12, %v1369_v48, %v1378_v20  ;;  %v888_v23 = vld [vmem:[#allocation3 + $0x40] sm:$0x3] }
 0x30d   :  { %1394 = vrot.lane.b32.xlu2 %v1375_v25, %s3128_s23  ;;  %v988_v25 = vld [vmem:[#allocation3 + $0x40] sm:$0x3] }
 0x30e   :  { %v1168_v27 = vpop.permute.xlu1 %1167  ;;  %v3708_v26 = vpop.permute.xlu0 %1175 }
 0x30f   :  { %v3710_v28 = vpop.permute.xlu2 %904  ;;  %v1185_v30 = vsel %vm4937_vm7, %v1166_v59, %v1168_v27  ;;  %v1186_v31 = vsel %vm4938_vm15, %v1168_v27, %v3700_v19  ;;  %vm4939_vm15 = vcmask 515072   ;;  %vm4940_vm7 = vcmask 1031168   ;;  %v1253_v59 = vld [vmem:[#allocation3 + $0x40] sm:$0x3] }
 0x310   :  { %v1201_v32 = vsel %vm3489_vm14, %v1185_v30, 0.0  ;;  %v1202_v35 = vsel %vm3381_vm0, %v1186_v31, 0.0  ;;  %v1353_v27 = vld [vmem:[#allocation3 + $0x40] sm:$0x3] }
 0x311   :  { %v3719_v1 = vrot.slane %v1201_v32, 6  ;;  %v3721_v5 = vrot.slane %v1202_v35, 6 }
 0x313   :  { %1237 = vst [vmem:[#allocation8 + $0xe8] sm:$0xfc] %v3719_v1 }
 0x314   :  { %1238 = vst [vmem:[#allocation8 + $0xf8] sm:$0xfc] %v3721_v5  ;;  %1283 = vrot.lane.b32.xlu1 %v1254_v33, %s3127_s2  ;;  %1460 = vrot.lane.b32.xlu0 %v1432_v34, %s3129_s24  ;;  %v1376_v33 = vrot.slane %v1353_v27, 2  ;;  %v806_v27 = vld [vmem:[#allocation3 + $0x30] sm:$0x3] }
 0x315   :  { %1006 = vrot.lane.b32.xlu2 %v3558_v12, %s3124_s20 }
 0x316   :  { %v1383_v38 = vpop.permute.xlu1 %1382  ;;  %v3729_v39 = vpop.permute.xlu0 %902 }
 0x317   :  { %v3731_v41 = vpop.permute.xlu2 %1105  ;;  %v1400_v42 = vsel %vm4939_vm15, %v3650_v53, %v1383_v38  ;;  %v921_v43 = vsel %vm4940_vm7, %v3729_v39, %v3710_v28  ;;  %vm4941_vm7 = vcmask 785408  }
 0x318   :  { %1416 = vst [vmem:[#allocation8 + $0x60] sm:$0xc0] %v1400_v42  ;;  %v937_v46 = vsel %vm3381_vm0, %v921_v43, 0.0  ;;  %v985_v43 = vld [vmem:[#allocation3 + $0x28] sm:$0x3] }
 0x319   :  { %v3740_v47 = vrot.slane %v937_v46, 4  ;;  %v1377_v46 = vsel %vm1052_vm12, %v1368_v60, %v1376_v33 }
 0x31b   :  { %973 = vst [vmem:[#allocation8 + $0x110] sm:$0xf0] %v3740_v47 }
 0x31c   :  { %1183 = vrot.lane.b32.xlu1 %v1154_v49, %s3125_s21  ;;  %1281 = vrot.lane.b32.xlu0 %v1253_v59, %s3127_s2  ;;  %v809_v49 = vld [vmem:[#allocation3 + $0x48] sm:$0x3] }
 0x31d   :  { %1388 = vrot.lane.b32.xlu2 %v1369_v48, %s3128_s23  ;;  %v1089_v48 = vld [vmem:[#allocation3 + $0x40] sm:$0x3] }
 0x31e   :  { %v1391_v44 = vpop.permute.xlu1 %1390  ;;  %v3747_v53 = vpop.permute.xlu0 %1384 }
 0x31f   :  { %v3749_v54 = vpop.permute.xlu2 %1002  ;;  %v1401_v55 = vsel %vm4939_vm15, %v1383_v38, %v3747_v53  ;;  %vm4942_vm15 = vcmask 777216  }
 0x320   :  { %v1021_v50 = vsel %vm4941_vm7, %v3749_v54, %v3696_v17  ;;  %1417 = vst [vmem:[#allocation8 + $0xc8] sm:$0xc0] %v1401_v55 }
 0x321   :  { %v1037_v61 = vsel %vm3271_vm8, %v1021_v50, 0.0 }
 0x322   :  { %v1054_v62 = vrot.slane %v1037_v61, 2 }
 0x324   :  { %1074 = vst [vmem:[#allocation8 + $0x100] sm:$0xc0] %v1054_v62  ;;  %918 = vrot.lane.b32.xlu1 %v889_v7, %s3123_s1  ;;  %1181 = vrot.lane.b32.xlu0 %v1153_v9, %s3125_s21  ;;  %v885_v7 = vld [vmem:[#allocation3 + $0x28] sm:$0x3] }
 0x325   :  { %844 = vrot.lane.b32.xlu2 %v825_v8, %s3122_s16 }
 0x326   :  { %v3762_v51 = vpop.permute.xlu1 %1014  ;;  %v3764_v36 = vpop.permute.xlu0 %840 }
 0x327   :  { %v3766_v63 = vpop.permute.xlu2 %1103 }
 0x328   :  { %v3771_v45 = vsel %vm4942_vm15, %v3766_v63, %v3731_v41 }
 0x32c   :  { %1398 = vrot.lane.b32.xlu1 %v1379_v21, %s3128_s23  ;;  %916 = vrot.lane.b32.xlu0 %v888_v23, %s3123_s1 }
 0x32d   :  { %1016 = vrot.lane.b32.xlu2 %v988_v25, %s3124_s20 }
 0x32e   :  { %v3777_v30 = vpop.permute.xlu1 %1115  ;;  %v3779_v31 = vpop.permute.xlu0 %1012 }
 0x32f   :  { %v3781_v32 = vpop.permute.xlu2 %1458  ;;  %v1025_v35 = vsel %vm4941_vm7, %v3779_v31, %v3762_v51  ;;  %vm4943_vm7 = vcmask 515072  }
 0x330   :  { %v1041_v34 = vsel %vm3271_vm8, %v1025_v35, 0.0 }
 0x331   :  { %v1059_v38 = vrot.slane %v1041_v34, 2 }
 0x333   :  { %v3789_v42 = vsel %vm1052_vm12, %v1054_v62, %v1059_v38  ;;  %v834_v62 = vrot.slane %v809_v49, 6  ;;  %v828_v38 = vrot.slane %v806_v27, 6 }
 0x334   :  { %1010 = vrot.lane.b32.xlu1 %v985_v43, %s3124_s20  ;;  %1396 = vrot.lane.b32.xlu0 %v1377_v46, %s3128_s23  ;;  %s5020_s23 = sld [smem:[#allocation17_spill]] }
 0x335   :  { %1117 = vrot.lane.b32.xlu2 %v1089_v48, %s3126_s22  ;;  %v835_v9 = vsel %vm820_vm6, %v825_v8, %v834_v62  ;;  %v1086_v8 = vld [vmem:[#allocation3 + $0x28] sm:$0x3]  ;;  %v822_v48 = vrot.slane %v3539_v56, 6 }
 0x336   :  { %v3797_v59 = vpop.permute.xlu1 %1113  ;;  %v3799_v55 = vpop.permute.xlu0 %1392 }
 0x337   :  { %v3801_v50 = vpop.permute.xlu2 %1279  ;;  %v1126_v61 = vsel %vm4942_vm15, %v3797_v59, %v3777_v30  ;;  %v1404_v60 = vsel %vm4943_vm7, %v1391_v44, %v3799_v55  ;;  %v832_v44 = vrot.slane %v808_v10, 6  ;;  %v829_v49 = vsel %vm820_vm6, %v822_v48, %v828_v38 }
 0x338   :  { %1142 = vst [vmem:[#allocation8 + $0xf8] sm:$0x3] %v1126_v61  ;;  %vm4944_vm15 = vcmask 1043456  }
 0x339   :  { %v833_v25 = vsel %vm820_vm6, %v824_v14, %v832_v44  ;;  %vm4945_vm7 = vmmov %vm4944_vm15 }
 0x33c   :  { %910 = vrot.lane.b32.xlu1 %v885_v7, %s3123_s1  ;;  %1000 = vrot.lane.b32.xlu0 %v3547_v57, %s3124_s20 }
 0x33d   :  { %854 = vrot.lane.b32.xlu2 %v835_v9, %s3122_s16 }
 0x33e   :  { %v3813_v20 = vpop.permute.xlu1 %912  ;;  %v3815_v21 = vpop.permute.xlu0 %850 }
 0x33f   :  { %v3817_v23 = vpop.permute.xlu2 %1179 }
 0x344   :  { %852 = vrot.lane.b32.xlu1 %v833_v25, %s3122_s16  ;;  %900 = vrot.lane.b32.xlu0 %v3547_v57, %s3123_s1 }
 0x345   :  { %1111 = vrot.lane.b32.xlu2 %v1086_v8, %s3126_s22 }
 0x346   :  { %v1453_v35 = vpop.permute.xlu1 %1452  ;;  %v3826_v33 = vpop.permute.xlu0 %1008 }
 0x347   :  { %v1457_v34 = vpop.permute.xlu2 %1456 }
 0x348   :  { %v1468_v43 = vsel %vm556_vm5, %v3673_v4, %v1457_v34  ;;  %v1469_v12 = vsel %vm556_vm5, %v1457_v34, %v3781_v32  ;;  %v805_v4 = vld [vmem:[#allocation3 + $0x28] sm:$0x3] }
 0x349   :  { %v1484_v14 = vsel %vm3489_vm14, %v1468_v43, 0.0  ;;  %v1485_v46 = vsel %vm3381_vm0, %v1469_v12, 0.0  ;;  %v826_v10 = vrot.slane %v805_v4, 6 }
 0x34a   :  { %1492 = vst [vmem:[#allocation8 + $0x70] sm:$0x3] %v1484_v14 }
 0x34b   :  { %1493 = vst [vmem:[#allocation8 + $0x30] sm:$0x3] %v1485_v46 }
 0x34c   :  { %838 = vrot.lane.b32.xlu1 %v822_v48, %s3122_s16  ;;  %848 = vrot.lane.b32.xlu0 %v829_v49, %s3122_s16 }
 0x34d   :  { %1101 = vrot.lane.b32.xlu2 %v3547_v57, %s3126_s22 }
 0x34e   :  { %v1274_v61 = vpop.permute.xlu1 %1273  ;;  %v1451_v62 = vpop.permute.xlu0 %1450 }
 0x34f   :  { %v1278_v7 = vpop.permute.xlu2 %1277  ;;  %v3844_v9 = vsel %vm556_vm5, %v3657_v58, %v1451_v62  ;;  %v3847_v56 = vsel %vm556_vm5, %v1451_v62, %v1453_v35  ;;  %v1546_v58 = vld [vmem:[%s4890_s7] sm:$0xff] }
 0x350   :  { %v1289_v44 = vsel %vm457_vm1, %v3698_v18, %v1278_v7  ;;  %v1290_v25 = vsel %vm457_vm1, %v1278_v7, %v3801_v50  ;;  %v821_v18 = vrot.slane %v3547_v57, 6 }
 0x351   :  { %v1305_v8 = vsel %vm3293_vm11, %v1289_v44, 0.0  ;;  %v1306_v27 = vsel %vm3271_vm8, %v1290_v25, 0.0  ;;  %v1540_v34 = vld [vmem:[#allocation8 + $0x70] sm:$0x3]  ;;  %vm4946_vm8 = vcmask 769024  }
 0x352   :  { %v1321_v35 = vrot.slane %v1305_v8, 4  ;;  %v1323_v38 = vrot.slane %v1306_v27, 4  ;;  %2940 = vmatpush.msk.msrb.mxu0 %vm820_vm6, %v1540_v34  ;;  %v1541_v43 = vld [vmem:[#allocation8 + $0x30] sm:$0x3]  ;;  %v827_v14 = vsel %vm820_vm6, %v821_v18, %v826_v10 }
 0x353   :  { %2943 = vmatpush.msk.msra.mxu1 %vm820_vm6, %v1541_v43 }
 0x354   :  { %v1322_v12 = vsel %vm4944_vm15, %v3684_v11, %v1321_v35  ;;  %v1324_v22 = vsel %vm4945_vm7, %v3686_v13, %v1323_v38  ;;  %3085 = vmatpush.msk.msrb.mxu0 %vm3489_vm14, %v3660_v2  ;;  %1550 = vperm.xlu1 %2977, %v1546_v58   ;;  %vm4947_vm15 = vmmov %vm4946_vm8 }
 0x355   :  { %1341 = vst [vmem:[#allocation8 + $0x60] sm:$0x3f] %v1322_v12  ;;  %3086 = vmatpush.msk.msra.mxu1 %vm3381_vm0, %v3664_v40  ;;  %846 = vrot.lane.b32.xlu2 %v827_v14, %s3122_s16  ;;  %vm4948_vm7 = vmmov %vm4946_vm8 }
 0x356   :  { %1342 = vst [vmem:[#allocation8 + $0xc8] sm:$0x3f] %v1324_v22  ;;  %836 = vrot.lane.b32.xlu0 %v821_v18, %s3122_s16  ;;  %1583 = vmatpush.msrb.mxu0 %v1404_v60  ;;  %v1174_v57 = vpop.permute.xlu1 %1173  ;;  %v1272_v11 = vpop.permute.xlu0 %1271 }
 0x357   :  { %v1178_v13 = vpop.permute.xlu2 %1177  ;;  %v1287_v2 = vsel %vm457_vm1, %v3675_v6, %v1272_v11  ;;  %v1288_v46 = vsel %vm457_vm1, %v1272_v11, %v1274_v61 }
 0x358   :  { %v1189_v48 = vsel %vm4946_vm8, %v3708_v26, %v1178_v13  ;;  %v1190_v40 = vsel %vm4947_vm15, %v1178_v13, %v3817_v23  ;;  %v1303_v49 = vsel %vm3275_vm9, %v1287_v2, 0.0  ;;  %v1304_v60 = vsel %vm3281_vm10, %v1288_v46, 0.0  ;;  %vm4949_vm8 = vmmov %vm4948_vm7 }
 0x359   :  { %v1205_v4 = vsel %vm3489_vm14, %v1189_v48, 0.0  ;;  %v1206_v6 = vsel %vm3381_vm0, %v1190_v40, 0.0  ;;  %v3891_v62 = vrot.slane %v1303_v49, 4  ;;  %v3893_v61 = vrot.slane %v1304_v60, 4 }
 0x35a   :  { %v1221_v26 = vrot.slane %v1205_v4, 6  ;;  %v1223_v7 = vrot.slane %v1206_v6, 6  ;;  %vm4950_vm15 = vcmask 1031168   ;;  %v1521_v6 = vld [vmem:[#allocation8 + $0xf8] sm:$0xff] }
 0x35b   :  { %1339 = vst [vmem:[#allocation8 + $0xf0] sm:$0xf0] %v3891_v62 }
 0x35c   :  { %v1222_v10 = vsel %vm820_vm6, %v3719_v1, %v1221_v26  ;;  %v1224_v44 = vsel %vm820_vm6, %v3721_v5, %v1223_v7  ;;  %1340 = vst [vmem:[#allocation8 + $0x140] sm:$0xf0] %v3893_v61  ;;  %v1528_v25 = vld [vmem:[#allocation8 + $0x60] sm:$0xff] }
 0x35d   :  { %1241 = vst [vmem:[#allocation8 + $0xa0] sm:$0xf] %v1222_v10  ;;  %1584 = vmatpush.msrb.mxu0 %v1528_v25  ;;  %v1529_v60 = vld [vmem:[#allocation8 + $0xc8] sm:$0xff] }
 0x35e   :  { %1242 = vst [vmem:[#allocation8 + $0x170] sm:$0xf] %v1224_v44  ;;  %v909_v8 = vpop.permute.xlu1 %908  ;;  %v1172_v27 = vpop.permute.xlu0 %1171 }
 0x35f   :  { %v3901_v34 = vpop.permute.xlu2 %914  ;;  %v1187_v58 = vsel %vm4948_vm7, %v3700_v19, %v1172_v27  ;;  %v1188_v35 = vsel %vm4949_vm8, %v1172_v27, %v1174_v57  ;;  %vm4951_vm7 = vcmask 1043456  }
 0x360   :  { %v925_v1 = vsel %vm4950_vm15, %v3813_v20, %v3901_v34  ;;  %v1203_v5 = vsel %vm3399_vm2, %v1187_v58, 0.0  ;;  %v1204_v38 = vsel %vm3403_vm4, %v1188_v35, 0.0 }
 0x361   :  { %v941_v43 = vsel %vm3381_vm0, %v925_v1, 0.0  ;;  %v3915_v18 = vrot.slane %v1203_v5, 6  ;;  %v3917_v12 = vrot.slane %v1204_v38, 6  ;;  %vm4952_vm0 = vmmov %vm4950_vm15  ;;  %vm4954_vm15 = vcmask 515072  }
 0x362   :  { %v958_v19 = vrot.slane %v941_v43, 4  ;;  %vm4953_vm8 = vmmov %vm4952_vm0 }
 0x363   :  { %1239 = vst [vmem:[#allocation8 + $0x20] sm:$0xfc] %v3915_v18 }
 0x364   :  { %v959_v22 = vsel %vm4951_vm7, %v3740_v47, %v958_v19  ;;  %1240 = vst [vmem:[#allocation8 + $0x88] sm:$0xfc] %v3917_v12  ;;  %v1524_v14 = vld [vmem:[#allocation8 + $0xa0] sm:$0xff]  ;;  %vm4955_vm7 = vmmov %vm4954_vm15 }
 0x365   :  { %977 = vst [vmem:[#allocation8 + $0x100] sm:$0x3f] %v959_v22  ;;  %1585 = vmatpush.msrb.mxu0 %v1524_v14 }
 0x366   :  { %v1110_v57 = vpop.permute.xlu1 %1109  ;;  %v907_v11 = vpop.permute.xlu0 %906 }
 0x367   :  { %v3923_v13 = vpop.permute.xlu2 %1394  ;;  %v922_v0 = vsel %vm4952_vm0, %v3710_v28, %v907_v11  ;;  %v923_v2 = vsel %vm4953_vm8, %v907_v11, %v909_v8  ;;  %v1525_v28 = vld [vmem:[#allocation8 + $0x170] sm:$0xff]  ;;  %vm4956_vm0 = vcmask 777216  }
 0x368   :  { %v1405_v46 = vsel %vm4954_vm15, %v3799_v55, %v3923_v13  ;;  %v938_v47 = vsel %vm3399_vm2, %v922_v0, 0.0  ;;  %v939_v48 = vsel %vm3403_vm4, %v923_v2, 0.0  ;;  %vm4957_vm8 = vmmov %vm4956_vm0  ;;  %vm4958_vm15 = vcmask 785408  }
 0x369   :  { %v3935_v40 = vrot.slane %v938_v47, 4  ;;  %v3937_v49 = vrot.slane %v939_v48, 4  ;;  %1606 = vmatpush.msra.mxu1 %v1405_v46  ;;  %vm4959_vm3 = vmmov %vm4958_vm15 }
 0x36b   :  { %974 = vst [vmem:[#allocation8 + $0x90] sm:$0xf0] %v3935_v40  ;;  %1607 = vmatpush.msra.mxu1 %v1529_v60 }
 0x36c   :  { %975 = vst [vmem:[#allocation8 + $0x118] sm:$0xf0] %v3937_v49  ;;  %v1509_v35 = vld [vmem:[#allocation8 + $0x100] sm:$0xff] }
 0x36d   :  { %1608 = vmatpush.msra.mxu1 %v1525_v28 }
 0x36e   :  { %v1387_v55 = vpop.permute.xlu1 %1386  ;;  %v1108_v4 = vpop.permute.xlu0 %1107 }
 0x36f   :  { %v1007_v26 = vpop.permute.xlu2 %1006  ;;  %v1402_v7 = vsel %vm4955_vm7, %v3747_v53, %v1387_v55  ;;  %v3945_v10 = vsel %vm4956_vm0, %v3731_v41, %v1108_v4  ;;  %v3948_v44 = vsel %vm4957_vm8, %v1108_v4, %v1110_v57  ;;  %1609 = vmatpush.msra.mxu1 %v1521_v6  ;;  %vm4962_vm8 = vmmov %vm4958_vm15 }
 0x370   :  { %v1022_v25 = vsel %vm4958_vm15, %v3696_v17, %v1007_v26  ;;  %v1023_v8 = vsel %vm4959_vm3, %v1007_v26, %v3826_v33  ;;  %1418 = vst [vmem:[#allocation8 + $0x28] sm:$0xc0] %v1402_v7  ;;  %vm4960_vm3 = vcmask 1039360   ;;  %vm4963_vm15 = vmmov %vm4962_vm8 }
 0x371   :  { %v1038_v27 = vsel %vm3275_vm9, %v1022_v25, 0.0  ;;  %v1039_v53 = vsel %vm3281_vm10, %v1023_v8, 0.0  ;;  %1610 = vmatpush.msra.mxu1 %v3771_v45  ;;  %vm4961_vm0 = vmmov %vm4960_vm3 }
 0x372   :  { %v1055_v41 = vrot.slane %v1038_v27, 2  ;;  %v1056_v58 = vrot.slane %v1039_v53, 2 }
 0x373   :  { %1611 = vmatpush.msra.mxu1 %v3789_v42 }
 0x374   :  { %1075 = vst [vmem:[#allocation8 + $0x58] sm:$0xc0] %v1055_v41 }
 0x375   :  { %1076 = vst [vmem:[#allocation8 + $0xd8] sm:$0xc0] %v1056_v58  ;;  %1612 = vmatpush.msra.mxu1 %v1509_v35 }
 0x376   :  { %v843_v17 = vpop.permute.xlu1 %842  ;;  %v1019_v1 = vpop.permute.xlu0 %1018 }
 0x377   :  { %v1389_v33 = vpop.permute.xlu2 %1388  ;;  %v858_v5 = vsel %vm4960_vm3, %v3764_v36, %v843_v17 }
 0x378   :  { %v1403_v38 = vsel %vm4955_vm7, %v1387_v55, %v1389_v33  ;;  %874 = vst [vmem:[#allocation8 + $0x40] sm:$0xfc] %v858_v5  ;;  %vm4966_vm7 = vcmask 1043456  }
 0x379   :  { %1419 = vst [vmem:[#allocation8 + $0x38] sm:$0xc0] %v1403_v38 }
 0x37e   :  { %v1463_v43 = vpop.permute.xlu1 %1462  ;;  %v1120_v45 = vpop.permute.xlu0 %1119 }
 0x37f   :  { %v845_v19 = vpop.permute.xlu2 %844 }
 0x380   :  { %v859_v22 = vsel %vm4961_vm0, %v843_v17, %v845_v19  ;;  %vm4967_vm0 = vmmov %vm4966_vm7 }
 0x381   :  { %875 = vst [vmem:[#allocation8 + $0x178] sm:$0xfc] %v859_v22 }
 0x386   :  { %v1284_v42 = vpop.permute.xlu1 %1283  ;;  %v1461_v14 = vpop.permute.xlu0 %1460 }
 0x387   :  { %v1017_v57 = vpop.permute.xlu2 %1016  ;;  %v1470_v11 = vsel %vm556_vm5, %v3781_v32, %v1461_v14  ;;  %v1471_v0 = vsel %vm556_vm5, %v1461_v14, %v1463_v43  ;;  %vm4964_vm5 = vcmask 777216  }
 0x388   :  { %v1026_v2 = vsel %vm4962_vm8, %v3762_v51, %v1017_v57  ;;  %v1027_v46 = vsel %vm4963_vm15, %v1017_v57, %v1019_v1  ;;  %v1486_v47 = vsel %vm3399_vm2, %v1470_v11, 0.0  ;;  %v1487_v48 = vsel %vm3403_vm4, %v1471_v0, 0.0  ;;  %vm4965_vm3 = vmmov %vm4964_vm5 }
 0x389   :  { %v1042_v60 = vsel %vm3275_vm9, %v1026_v2, 0.0  ;;  %v1043_v28 = vsel %vm3281_vm10, %v1027_v46, 0.0  ;;  %1494 = vst [vmem:[#allocation8 + $0x158] sm:$0x3] %v1486_v47  ;;  %vm4970_vm8 = vcmask 1031168  }
 0x38a   :  { %v1061_v32 = vrot.slane %v1042_v60, 2  ;;  %v1063_v55 = vrot.slane %v1043_v28, 2  ;;  %1495 = vst [vmem:[#allocation8 + $0x150] sm:$0x3] %v1487_v48  ;;  %vm4971_vm15 = vmmov %vm4970_vm8 }
 0x38c   :  { %v3979_v51 = vsel %vm1052_vm12, %v1055_v41, %v1061_v32  ;;  %v3982_v4 = vsel %vm1052_vm12, %v1056_v58, %v1063_v55 }
 0x38e   :  { %v1184_v6 = vpop.permute.xlu1 %1183  ;;  %v1282_v26 = vpop.permute.xlu0 %1281 }
 0x38f   :  { %v1118_v7 = vpop.permute.xlu2 %1117  ;;  %v1291_v25 = vsel %vm457_vm1, %v3801_v50, %v1282_v26  ;;  %v1292_v8 = vsel %vm457_vm1, %v1282_v26, %v1284_v42 }
 0x390   :  { %v1127_v27 = vsel %vm4964_vm5, %v3777_v30, %v1118_v7  ;;  %v1128_v53 = vsel %vm4965_vm3, %v1118_v7, %v1120_v45  ;;  %v1307_v41 = vsel %vm3275_vm9, %v1291_v25, 0.0  ;;  %v1308_v58 = vsel %vm3281_vm10, %v1292_v8, 0.0  ;;  %v1542_v35 = vld [vmem:[#allocation8 + $0x158] sm:$0x3]  ;;  %vm4972_vm5 = vmmov %vm4965_vm3 }
 0x391   :  { %1143 = vst [vmem:[#allocation8 + $0x20] sm:$0x3] %v1127_v27  ;;  %v1325_v17 = vrot.slane %v1307_v41, 4  ;;  %v1327_v1 = vrot.slane %v1308_v58, 4  ;;  %2946 = vmatpush.msk.msrb.mxu2 %vm820_vm6, %v1542_v35  ;;  %v1543_v50 = vld [vmem:[#allocation8 + $0x150] sm:$0x3]  ;;  %vm4973_vm3 = vmmov %vm4967_vm0 }
 0x392   :  { %1144 = vst [vmem:[#allocation8 + $0x88] sm:$0x3] %v1128_v53  ;;  %2949 = vmatpush.msk.msra.mxu3 %vm820_vm6, %v1543_v50  ;;  %vm4968_vm9 = vcmask 769024  }
 0x393   :  { %v1326_v30 = vsel %vm4966_vm7, %v3891_v62, %v1325_v17  ;;  %v1328_v24 = vsel %vm4967_vm0, %v3893_v61, %v1327_v1  ;;  %3087 = vmatpush.msk.msrb.mxu2 %vm3399_vm2, %v3844_v9  ;;  %vm4969_vm10 = vmmov %vm4968_vm9 }
 0x394   :  { %1343 = vst [vmem:[#allocation8 + $0x28] sm:$0x3f] %v1326_v30  ;;  %3088 = vmatpush.msk.msra.mxu3 %vm3403_vm4, %v3847_v56  ;;  %vm4974_vm7 = vmmov %vm4967_vm0  ;;  %vm4975_vm0 = vcmask 515072  }
 0x395   :  { %1344 = vst [vmem:[#allocation8 + $0x38] sm:$0x3f] %v1328_v24 }
 0x396   :  { %v919_v29 = vpop.permute.xlu1 %918  ;;  %v1182_v33 = vpop.permute.xlu0 %1181 }
 0x397   :  { %v4006_v5 = vpop.permute.xlu2 %854  ;;  %v1191_v62 = vsel %vm4968_vm9, %v3817_v23, %v1182_v33  ;;  %v1192_v38 = vsel %vm4969_vm10, %v1182_v33, %v1184_v6  ;;  %vm4978_vm9 = vcmask 785408  }
 0x398   :  { %v1207_v61 = vsel %vm3399_vm2, %v1191_v62, 0.0  ;;  %v1208_v9 = vsel %vm3403_vm4, %v1192_v38, 0.0  ;;  %vm4979_vm10 = vmmov %vm4978_vm9 }
 0x399   :  { %v1225_v43 = vrot.slane %v1207_v61, 6  ;;  %v1227_v45 = vrot.slane %v1208_v9, 6  ;;  %v1523_v26 = vld [vmem:[#allocation8 + $0x88] sm:$0xff]  ;;  %v1502_v9 = vld [vmem:[#allocation8 + $0x40] sm:$0xff] }
 0x39b   :  { %v1226_v56 = vsel %vm820_vm6, %v3915_v18, %v1225_v43  ;;  %v1228_v19 = vsel %vm820_vm6, %v3917_v12, %v1227_v45  ;;  %v1503_v43 = vld [vmem:[#allocation8 + $0x178] sm:$0xff]  ;;  %v1544_v45 = vld [vmem:[%s4889_s6] sm:$0xff] }
 0x39c   :  { %1243 = vst [vmem:[#allocation8 + $0xf0] sm:$0xf] %v1226_v56  ;;  %v1531_v32 = vld [vmem:[#allocation8 + $0x38] sm:$0xff] }
 0x39d   :  { %1244 = vst [vmem:[#allocation8 + $0x140] sm:$0xf] %v1228_v19 }
 0x39e   :  { %v1399_v22 = vpop.permute.xlu1 %1398  ;;  %v917_v23 = vpop.permute.xlu0 %916 }
 0x39f   :  { %v1112_v42 = vpop.permute.xlu2 %1111  ;;  %v926_v14 = vsel %vm4970_vm8, %v3901_v34, %v917_v23  ;;  %v927_v57 = vsel %vm4971_vm15, %v917_v23, %v919_v29  ;;  %v1547_v29 = vld [vmem:[%s4890_s7 + $0x8] sm:$0x3] }
 0x3a0   :  { %v1125_v11 = vsel %vm4972_vm5, %v1112_v42, %v3797_v59  ;;  %v942_v0 = vsel %vm3399_vm2, %v926_v14, 0.0  ;;  %v943_v18 = vsel %vm3403_vm4, %v927_v57, 0.0  ;;  %vm4976_vm2 = vmmov %vm4975_vm0  ;;  %1555 = vperm.xlu2 %2978, %v1547_v29   ;;  %v1545_v14 = vld [vmem:[%s4889_s6 + $0x8] sm:$0x3]  ;;  %s5022_s6 = sld [smem:[#allocation19_spill]] }
 0x3a1   :  { %1141 = vst [vmem:[#allocation8 + $0xe8] sm:$0x3] %v1125_v11  ;;  %v960_v12 = vrot.slane %v942_v0, 4  ;;  %v962_v2 = vrot.slane %v943_v18, 4  ;;  %vm4977_vm4 = vmmov %vm4972_vm5  ;;  %v1497_v11 = vld [vmem:[#allocation8 + $0xd0] sm:$0xff] }
 0x3a2   :  { %vm4982_vm5 = vmmov %vm4970_vm8  ;;  %v1496_v18 = vld [vmem:[#allocation8 + $0xb0] sm:$0xff] }
 0x3a3   :  { %v961_v46 = vsel %vm4973_vm3, %v3935_v40, %v960_v12  ;;  %v963_v34 = vsel %vm4974_vm7, %v3937_v49, %v962_v2  ;;  %v1530_v40 = vld [vmem:[#allocation8 + $0x28] sm:$0xff]  ;;  %v1526_v55 = vld [vmem:[#allocation8 + $0xf0] sm:$0xff] }
 0x3a4   :  { %978 = vst [vmem:[#allocation8 + $0x58] sm:$0x3f] %v961_v46  ;;  %v1527_v6 = vld [vmem:[#allocation8 + $0x140] sm:$0xff] }
 0x3a5   :  { %979 = vst [vmem:[#allocation8 + $0xd8] sm:$0x3f] %v963_v34 }
 0x3a6   :  { %v1011_v47 = vpop.permute.xlu1 %1010  ;;  %v1397_v48 = vpop.permute.xlu0 %1396 }
 0x3a7   :  { %v1102_v59 = vpop.permute.xlu2 %1101  ;;  %v1406_v15 = vsel %vm4975_vm0, %v3923_v13, %v1397_v48  ;;  %v1407_v16 = vsel %vm4976_vm2, %v1397_v48, %v1399_v22  ;;  %v1024_v49 = vsel %vm4978_vm9, %v1011_v47, %v3779_v31  ;;  %v1522_v13 = vld [vmem:[#allocation8 + $0x20] sm:$0xff]  ;;  %vm1558_vm0 = vcmask 736256  }
 0x3a8   :  { %v1121_v60 = vsel %vm4977_vm4, %v1102_v59, %v3766_v63  ;;  %v1520_v28 = vld [vmem:[#allocation8 + $0xe8] sm:$0xff]  ;;  %1629 = vmatpush.msrb.mxu2 %v1406_v15  ;;  %1652 = vmatpush.msra.mxu3 %v1407_v16  ;;  %v1040_v63 = vsel %vm3293_vm11, %v1024_v49, 0.0  ;;  %vm4988_vm4 = vcmask 269312  }
 0x3a9   :  { %1586 = vmatpush.msrb.mxu0 %v1520_v28  ;;  %v1057_v27 = vrot.slane %v1040_v63, 2  ;;  %vm4989_vm9 = vmmov %vm4988_vm4 }
 0x3aa   :  { %1630 = vmatpush.msrb.mxu2 %v1530_v40  ;;  %1653 = vmatpush.msra.mxu3 %v1531_v32 }
 0x3ab   :  { %1587 = vmatpush.msrb.mxu0 %v1121_v60 }
 0x3ac   :  { %1631 = vmatpush.msrb.mxu2 %v1526_v55  ;;  %1654 = vmatpush.msra.mxu3 %v1527_v6  ;;  %v1511_v37 = vld [vmem:[#allocation8 + $0xd8] sm:$0xff] }
 0x3ae   :  { %v911_v7 = vpop.permute.xlu1 %910  ;;  %v1001_v25 = vpop.permute.xlu0 %1000  ;;  %1632 = vmatpush.msrb.mxu2 %v1522_v13  ;;  %1655 = vmatpush.msra.mxu3 %v1523_v26 }
 0x3af   :  { %v1020_v8 = vsel %vm4979_vm10, %v1001_v25, %v3749_v54  ;;  %v924_v41 = vsel %vm4970_vm8, %v911_v7, %v3813_v20  ;;  %v1510_v54 = vld [vmem:[#allocation8 + $0x58] sm:$0xff]  ;;  %v847_v24 = vpop.permute.xlu2 %846  ;;  %vm4990_vm10 = vmmov %vm4988_vm4 }
 0x3b0   :  { %v1036_v31 = vsel %vm3293_vm11, %v1020_v8, 0.0  ;;  %1633 = vmatpush.msrb.mxu2 %v3945_v10  ;;  %1656 = vmatpush.msra.mxu3 %v3948_v44  ;;  %v940_v10 = vsel %vm3489_vm14, %v924_v41, 0.0  ;;  %vm4980_vm11 = vcmask 1039360   ;;  %vm4991_vm8 = vmmov %vm4988_vm4 }
 0x3b1   :  { %v1053_v53 = vrot.slane %v1036_v31, 2  ;;  %vm4981_vm15 = vmmov %vm4980_vm11  ;;  %v956_v1 = vrot.slane %v940_v10, 4 }
 0x3b2   :  { %1634 = vmatpush.msrb.mxu2 %v3979_v51  ;;  %1657 = vmatpush.msra.mxu3 %v3982_v4 }
 0x3b3   :  { %v1058_v58 = vsel %vm1052_vm12, %v1053_v53, %v1057_v27  ;;  %1073 = vst [vmem:[#allocation8 + $0x148] sm:$0xc0] %v1053_v53  ;;  %vm4983_vm12 = vmmov %vm4973_vm3 }
 0x3b4   :  { %1588 = vmatpush.msrb.mxu0 %v1058_v58  ;;  %1635 = vmatpush.msrb.mxu2 %v1510_v54  ;;  %vm4984_vm3 = vmmov %vm4980_vm11 }
 0x3b5   :  { %1658 = vmatpush.msra.mxu3 %v1511_v37  ;;  %vm4985_vm7 = vmmov %vm4984_vm3 }
 0x3b6   :  { %v853_v44 = vpop.permute.xlu1 %852  ;;  %v901_v35 = vpop.permute.xlu0 %900  ;;  %vm4987_vm2 = vmmov %vm4984_vm3 }
 0x3b7   :  { %v862_v51 = vsel %vm4980_vm11, %v3815_v21, %v853_v44  ;;  %v863_v4 = vsel %vm4981_vm15, %v853_v44, %v4006_v5  ;;  %v920_v20 = vsel %vm4982_vm5, %v901_v35, %v3729_v39  ;;  %vm4992_vm11 = vmmov %vm4988_vm4  ;;  %vm4994_vm5 = vcmask 1041672  }
 0x3b8   :  { %878 = vst [vmem:[#allocation8 + $0x90] sm:$0xf] %v862_v51  ;;  %v936_v17 = vsel %vm3489_vm14, %v920_v20, 0.0  ;;  %vm4986_vm14 = vmmov %vm4984_vm3 }
 0x3b9   :  { %879 = vst [vmem:[#allocation8 + $0x118] sm:$0xf] %v863_v4  ;;  %v952_v50 = vrot.slane %v936_v17, 4  ;;  %vm4993_vm15 = vmmov %vm4988_vm4 }
 0x3bb   :  { %v957_v30 = vsel %vm4983_vm12, %v952_v50, %v956_v1  ;;  %972 = vst [vmem:[#allocation8 + $0x108] sm:$0xf0] %v952_v50  ;;  %vm4995_vm12 = vmmov %vm4988_vm4 }
 0x3bc   :  { %976 = vst [vmem:[#allocation8 + $0x148] sm:$0x3f] %v957_v30 }
 0x3be   :  { %v839_v33 = vpop.permute.xlu1 %838  ;;  %v849_v5 = vpop.permute.xlu0 %848 }
 0x3bf   :  { %v857_v39 = vsel %vm4984_vm3, %v839_v33, %v3764_v36  ;;  %v860_v52 = vsel %vm4985_vm7, %v847_v24, %v849_v5  ;;  %v861_v62 = vsel %vm4986_vm14, %v849_v5, %v3815_v21  ;;  %v1506_v38 = vld [vmem:[#allocation8 + $0x90] sm:$0xff]  ;;  %v1499_v21 = vld [vmem:[#allocation8 + $0x48] sm:$0xff]  ;;  %vm4996_vm3 = vcmask 263168   ;;  %vm4998_vm7 = vmmov %vm4987_vm2 }
 0x3c0   :  { %873 = vst [vmem:[#allocation8 + $0x128] sm:$0xfc] %v857_v39  ;;  %1636 = vmatpush.msrb.mxu2 %v1506_v38  ;;  %v1507_v61 = vld [vmem:[#allocation8 + $0x118] sm:$0xff]  ;;  %v1498_v36 = vld [vmem:[#allocation8 + $0x10] sm:$0xff]  ;;  %vm4999_vm14 = vmmov %vm4987_vm2 }
 0x3c1   :  { %876 = vst [vmem:[#allocation8 + $0x108] sm:$0xf] %v860_v52  ;;  %1659 = vmatpush.msra.mxu3 %v1507_v61 }
 0x3c2   :  { %877 = vst [vmem:[#allocation8 + $0x110] sm:$0xf] %v861_v62  ;;  %1637 = vmatpush.msrb.mxu2 %v1502_v9 }
 0x3c3   :  { %1660 = vmatpush.msra.mxu3 %v1503_v43  ;;  %v1508_v56 = vld [vmem:[#allocation8 + $0x148] sm:$0xff] }
 0x3c4   :  { %1638 = vmatpush.msrb.mxu2 %v1498_v36  ;;  %1589 = vmatpush.msrb.mxu0 %v1508_v56 }
 0x3c5   :  { %1661 = vmatpush.msra.mxu3 %v1499_v21  ;;  %2947 = vmatmul.msk.f32.vlgmr.msrb.gmra.mxu2 %vm1558_vm0, %v1544_v45 }
 0x3c6   :  { %2950 = vmatmul.msk.f32.vlgmr.msra.gmra.mxu3 %vm1558_vm0, %v1544_v45  ;;  %v1551_v12 = vpop.permute.xlu1 %1550 }
 0x3c7   :  { %v1501_v57 = vld [vmem:[#allocation8 + $0x128] sm:$0xff] }
 0x3c8   :  { %v837_v19 = vpop.permute.xlu0 %836  ;;  %v1504_v22 = vld [vmem:[#allocation8 + $0x108] sm:$0xff] }
 0x3c9   :  { %v856_v23 = vsel %vm4987_vm2, %v837_v19, %v839_v33  ;;  %1590 = vmatpush.msrb.mxu0 %v1504_v22  ;;  %v1505_v42 = vld [vmem:[#allocation8 + $0x110] sm:$0xff] }
 0x3ca   :  { %872 = vst [vmem:[#allocation8 + $0x160] sm:$0xfc] %v856_v23  ;;  %1613 = vmatpush.msra.mxu1 %v1505_v42 }
 0x3cc   :  { %1614 = vmatpush.msra.mxu1 %v1501_v57 }
 0x3cd   :  { %2948 = vmatmul.msk.f32.gmra.mxu2 %vm1558_vm0, %v1545_v14 }
 0x3ce   :  { %1615 = vmatpush.msra.mxu1 %v1497_v11  ;;  %2951 = vmatmul.msk.f32.gmra.mxu3 %vm1558_vm0, %v1545_v14 }
 0x3cf   :  { %2944 = vmatmul.msk.f32.vlgmr.msra.gmra.mxu1 %vm1558_vm0, %v1544_v45 }
 0x3d1   :  { %v1500_v0 = vld [vmem:[#allocation8 + $0x160] sm:$0xff] }
 0x3d2   :  { %1591 = vmatpush.msrb.mxu0 %v1500_v0 }
 0x3d4   :  { %1592 = vmatpush.msrb.mxu0 %v1496_v18 }
 0x3d5   :  { %2941 = vmatmul.msk.f32.vlgmr.msrb.gmra.mxu0 %vm1558_vm0, %v1544_v45 }
 0x3d7   :  { %2945 = vmatmul.msk.f32.gmra.mxu1 %vm1558_vm0, %v1545_v14 }
 0x3dd   :  { %2942 = vmatmul.msk.f32.gmra.mxu0 %vm1558_vm0, %v1545_v14 }
 0x3fa   :  { %v1556_v60 = vpop.permute.xlu2 %1555 }
 0x448   :  { %v1640_v2 = vpop.f32.mrf.mxu2 }
 0x449   :  { %v1641_v46 = vadd.f32 %v1640_v2, %v1551_v12  ;;  %v1663_v34 = vpop.f32.mrf.mxu3 }
 0x44a   :  { %v1664_v47 = vadd.f32 %v1663_v34, %v1551_v12 }
 0x44b   :  { %v1671_v48 = vmax.f32 %v1641_v46, 0.0 }
 0x44c   :  { %v1672_v59 = vmax.f32 %v1664_v47, 0.0  ;;  %v1617_v15 = vpop.f32.mrf.mxu1 }
 0x44d   :  { %v1618_v16 = vadd.f32 %v1617_v15, %v1551_v12  ;;  %1689 = vrot.lane.b32.xlu1 %v1671_v48, %s3119_s29 }
 0x44e   :  { %1691 = vrot.lane.b32.xlu2 %v1672_v59, %s3119_s29 }
 0x44f   :  { %v1670_v28 = vmax.f32 %v1618_v16, 0.0 }
 0x450   :  { %v1643_v40 = vpop.f32.mrf.mxu2 }
 0x451   :  { %1687 = vrot.lane.b32.xlu0 %v1670_v28, %s3119_s29  ;;  %v1644_v32 = vadd.f32 %v1643_v40, %v1556_v60  ;;  %v1666_v25 = vpop.f32.mrf.mxu3 }
 0x452   :  { %v1594_v49 = vpop.f32.mrf.mxu0  ;;  %v1667_v31 = vadd.f32 %v1666_v25, %v1556_v60 }
 0x453   :  { %v1595_v55 = vadd.f32 %v1594_v49, %v1551_v12  ;;  %v1675_v6 = vmax.f32 %v1644_v32, 0.0 }
 0x454   :  { %v1620_v13 = vpop.f32.mrf.mxu1  ;;  %v1676_v53 = vmax.f32 %v1667_v31, 0.0 }
 0x455   :  { %v1621_v26 = vadd.f32 %v1620_v13, %v1556_v60  ;;  %v1669_v63 = vmax.f32 %v1595_v55, 0.0 }
 0x456   :  { %1697 = vrot.lane.b32.xlu2 %v1675_v6, %s3119_s29 }
 0x457   :  { %v1674_v7 = vmax.f32 %v1621_v26, 0.0 }
 0x459   :  { %1695 = vrot.lane.b32.xlu1 %v1674_v7, %s3119_s29  ;;  %1685 = vrot.lane.b32.xlu0 %v1669_v63, %s3119_s29 }
 0x45a   :  { %v1597_v8 = vpop.f32.mrf.mxu0 }
 0x45b   :  { %v1598_v27 = vadd.f32 %v1597_v8, %v1556_v60 }
 0x45d   :  { %v1673_v41 = vmax.f32 %v1598_v27, 0.0 }
 0x461   :  { %1693 = vrot.lane.b32.xlu1 %v1673_v41, %s3119_s29  ;;  %1699 = vrot.lane.b32.xlu0 %v1676_v53, %s3119_s29  ;;  %s3130_s29 = smov 17  }
 0x4a8   :  { %v1692_v58 = vpop.permute.xlu2 %1691 }
 0x4a9   :  { %1721 = vst.msk [vmem:[#allocation4 + $0x20] sm:$0xff] %vm4988_vm4, %v1692_v58  ;;  %vm5000_vm4 = vmmov %vm4987_vm2 }
 0x4b0   :  { %v1698_v51 = vpop.permute.xlu2 %1697  ;;  %v1731_v29 = vld [vmem:[#allocation4 + $0x20] sm:$0xff] }
 0x4bf   :  { %v1690_v54 = vpop.permute.xlu1 %1689 }
 0x4c0   :  { %v1703_v37 = vsel %vm4989_vm9, %v1690_v54, %v1692_v58  ;;  %vm5001_vm9 = vmmov %vm4987_vm2 }
 0x4c3   :  { %v1688_v10 = vpop.permute.xlu0 %1687 }
 0x4c4   :  { %v1702_v44 = vsel %vm4990_vm10, %v1688_v10, %v1690_v54  ;;  %vm5002_vm10 = vmmov %vm4987_vm2  ;;  %v1884_v54 = vld [vmem:[%s4897_s14 + $0xf8] sm:$0xff] }
 0x4c5   :  { %v2984_v35 = vpack.i.bf16 %v1703_v37, %v1702_v44  ;;  %1986 = vmatpush.msrb.mxu1 %v1884_v54 }
 0x4c7   :  { %2985 = vrot.lane.b32.xlu2 %v2984_v35, %s3122_s16  ;;  %v1883_v35 = vld [vmem:[%s4897_s14 + $0xf0] sm:$0xff] }
 0x4c8   :  { %1987 = vmatpush.msrb.mxu1 %v1883_v35 }
 0x4cb   :  { %v1696_v4 = vpop.permute.xlu1 %1695  ;;  %v1686_v20 = vpop.permute.xlu0 %1685 }
 0x4cc   :  { %v1705_v17 = vsel %vm4991_vm8, %v1696_v4, %v1698_v51  ;;  %v1701_v1 = vsel %vm4992_vm11, %v1686_v20, %v1688_v10  ;;  %1717 = vst.msk [vmem:[#allocation4] sm:$0xff] %vm763_vm13, %v1686_v20  ;;  %vm4997_vm13 = vmmov %vm4987_vm2  ;;  %v1868_v10 = vld [vmem:[%s4897_s14 + $0x78] sm:$0xff]  ;;  %v1915_v20 = vld [vmem:[%s4897_s14 + $0x1f0] sm:$0xff]  ;;  %vm5004_vm11 = vcmask 785408  }
 0x4cd   :  { %1724 = vst [vmem:[#allocation4 + $0x38] sm:$0x3] %v1705_v17  ;;  %vm5003_vm8 = vmmov %vm4987_vm2  ;;  %1963 = vmatpush.msra.mxu0 %v1868_v10  ;;  %v1882_v17 = vld [vmem:[%s4897_s14 + $0xe8] sm:$0xff] }
 0x4ce   :  { %1988 = vmatpush.msrb.mxu1 %v1882_v17  ;;  %v1892_v17 = vld [vmem:[%s4897_s14 + $0x138] sm:$0xff] }
 0x4d3   :  { %v1694_v50 = vpop.permute.xlu1 %1693  ;;  %v1700_v30 = vpop.permute.xlu0 %1699  ;;  %v1727_v24 = vld [vmem:[#allocation4] sm:$0xff] }
 0x4d4   :  { %v1704_v33 = vsel %vm4993_vm15, %v1694_v50, %v1696_v4  ;;  %1722 = vst.msk [vmem:[#allocation4 + $0x28] sm:$0x3] %vm4994_vm5, %v1694_v50  ;;  %v1706_v5 = vsel %vm4995_vm12, %v1698_v51, %v1700_v30  ;;  %v2979_v39 = vpack.i.bf16 %v1727_v24, %v1731_v29  ;;  %v1734_v52 = vld [vmem:[#allocation4 + $0x38] sm:$0x3]  ;;  %v1899_v51 = vld [vmem:[%s4897_s14 + $0x170] sm:$0xff]  ;;  %v1866_v50 = vld [vmem:[%s4897_s14 + $0x68] sm:$0xff] }
 0x4d5   :  { %1723 = vst [vmem:[#allocation4 + $0x30] sm:$0x3] %v1704_v33  ;;  %v2989_v62 = vpack.i.bf16 %v1734_v52, %v1701_v1  ;;  %v1867_v4 = vld [vmem:[%s4897_s14 + $0x70] sm:$0xff]  ;;  %v1865_v33 = vld [vmem:[%s4897_s14 + $0x60] sm:$0xff]  ;;  %vm5005_vm15 = vmmov %vm5004_vm11 }
 0x4d6   :  { %1725 = vst [vmem:[#allocation4 + $0x40] sm:$0x3] %v1706_v5  ;;  %2980 = vrot.lane.b32.xlu0 %v2979_v39, %s3122_s16  ;;  %1964 = vmatpush.msra.mxu0 %v1867_v4  ;;  %v1913_v5 = vld [vmem:[%s4897_s14 + $0x1e0] sm:$0xff]  ;;  %v1880_v39 = vld [vmem:[%s4897_s14 + $0xd8] sm:$0xff]  ;;  %vm5006_vm5 = vmmov %vm5004_vm11 }
 0x4d7   :  { %1726 = vst.msk [vmem:[#allocation4 + $0x48] sm:$0x3] %vm4996_vm3, %v1700_v30  ;;  %2990 = vrot.lane.b32.xlu1 %v2989_v62, %s3122_s16  ;;  %v1914_v30 = vld [vmem:[%s4897_s14 + $0x1e8] sm:$0xff]  ;;  %v1864_v62 = vld [vmem:[%s4897_s14 + $0x58] sm:$0xff]  ;;  %vm5007_vm12 = vmmov %vm5006_vm5 }
 0x4d8   :  { %1965 = vmatpush.msra.mxu0 %v1866_v50  ;;  %vm5008_vm3 = vmmov %vm5006_vm5  ;;  %v1909_v4 = vld [vmem:[%s4897_s14 + $0x1c0] sm:$0xff]  ;;  %v1908_v50 = vld [vmem:[%s4897_s14 + $0x1b8] sm:$0xff] }
 0x4da   :  { %1966 = vmatpush.msra.mxu0 %v1865_v33  ;;  %v1907_v33 = vld [vmem:[%s4897_s14 + $0x1b0] sm:$0xff] }
 0x4db   :  { %v1732_v38 = vld [vmem:[#allocation4 + $0x28] sm:$0x3] }
 0x4dc   :  { %v1733_v61 = vld [vmem:[#allocation4 + $0x30] sm:$0x3]  ;;  %1967 = vmatpush.msra.mxu0 %v1864_v62  ;;  %v1906_v62 = vld [vmem:[%s4897_s14 + $0x1a8] sm:$0xff] }
 0x4dd   :  { %v2999_v9 = vpack.i.bf16 %v1733_v61, %v1732_v38  ;;  %v1735_v43 = vld [vmem:[#allocation4 + $0x40] sm:$0x3] }
 0x4de   :  { %v1736_v45 = vld [vmem:[#allocation4 + $0x48] sm:$0x3] }
 0x4df   :  { %3000 = vrot.lane.b32.xlu0 %v2999_v9, %s3122_s16  ;;  %v2994_v36 = vpack.i.bf16 %v1736_v45, %v1735_v43  ;;  %v1879_v9 = vld [vmem:[%s4897_s14 + $0xd0] sm:$0xff] }
 0x4e1   :  { %2995 = vrot.lane.b32.xlu2 %v2994_v36, %s3122_s16  ;;  %v1911_v36 = vld [vmem:[%s4897_s14 + $0x1d0] sm:$0xff] }
 0x521   :  { %v2986_v56 = vpop.permute.xlu2 %2985 }
 0x522   :  { %v2988_v21 = vunpack.i.h.bf16 %v2986_v56  ;;  %v2987_v19 = vunpack.i.l.bf16 %v2986_v56 }
 0x524   :  { %v1769_v23 = vsel %vm4997_vm13, %v2987_v19, %v2988_v21  ;;  %vm5009_vm13 = vmmov %vm5008_vm3 }
 0x525   :  { %v4110_v2 = vmax.f32 %v1702_v44, %v1769_v23  ;;  %v1916_v44 = vld [vmem:[%s4897_s14 + $0x1f8] sm:$0xff] }
 0x526   :  { %2032 = vmatpush.msrb.mxu3 %v1916_v44 }
 0x528   :  { %2033 = vmatpush.msrb.mxu3 %v1915_v20  ;;  %v1876_v20 = vld [vmem:[%s4897_s14 + $0xb8] sm:$0xff] }
 0x52a   :  { %2034 = vmatpush.msrb.mxu3 %v1914_v30  ;;  %v1875_v30 = vld [vmem:[%s4897_s14 + $0xb0] sm:$0xff] }
 0x52c   :  { %2035 = vmatpush.msrb.mxu3 %v1913_v5  ;;  %v1874_v5 = vld [vmem:[%s4897_s14 + $0xa8] sm:$0xff] }
 0x53b   :  { %v2996_v22 = vpop.permute.xlu2 %2995 }
 0x53c   :  { %v2997_v0 = vunpack.i.l.bf16 %v2996_v22  ;;  %v2998_v46 = vunpack.i.h.bf16 %v2996_v22 }
 0x53e   :  { %v1774_v49 = vsel %vm5001_vm9, %v2997_v0, %v2998_v46  ;;  %v4136_v26 = vmax.f32 %v1736_v45, %v2998_v46  ;;  %v1863_v45 = vld [vmem:[%s4897_s14 + $0x50] sm:$0xff] }
 0x53f   :  { %v4138_v63 = vmax.f32 %v1735_v43, %v1774_v49  ;;  %v1895_v43 = vld [vmem:[%s4897_s14 + $0x150] sm:$0xff]  ;;  %1968 = vmatpush.msra.mxu0 %v1863_v45  ;;  %v1872_v45 = vld [vmem:[%s4897_s14 + $0x98] sm:$0xff] }
 0x541   :  { %v3019_v41 = vpack.i.bf16 %v4136_v26, %v4138_v63 }
 0x548   :  { %v2981_v42 = vpop.permute.xlu0 %2980 }
 0x549   :  { %v2983_v14 = vunpack.i.h.bf16 %v2981_v42  ;;  %v2982_v57 = vunpack.i.l.bf16 %v2981_v42  ;;  %v2991_v11 = vpop.permute.xlu1 %2990 }
 0x54a   :  { %v2993_v18 = vunpack.i.h.bf16 %v2991_v11  ;;  %v2992_v12 = vunpack.i.l.bf16 %v2991_v11 }
 0x54b   :  { %v1770_v34 = vsel %vm4998_vm7, %v2988_v21, %v2982_v57  ;;  %v4118_v16 = vmax.f32 %v1731_v29, %v2982_v57  ;;  %v1897_v29 = vld [vmem:[%s4897_s14 + $0x160] sm:$0xff]  ;;  %vm5010_vm7 = vmmov %vm5008_vm3 }
 0x54c   :  { %v4113_v47 = vmax.f32 %v1703_v37, %v1770_v34  ;;  %v1767_v48 = vsel %vm4999_vm14, %v2983_v14, %v2992_v12  ;;  %v1768_v59 = vsel %vm4987_vm2, %v2992_v12, %v2987_v19  ;;  %v1773_v15 = vsel %vm5000_vm4, %v2993_v18, %v2997_v0  ;;  %v1900_v37 = vld [vmem:[%s4897_s14 + $0x178] sm:$0xff]  ;;  %vm5011_vm14 = vmmov %vm5008_vm3 }
 0x54d   :  { %v4120_v60 = vmax.f32 %v1727_v24, %v1767_v48  ;;  %v4122_v28 = vmax.f32 %v1701_v1, %v1768_v59  ;;  %v4124_v40 = vmax.f32 %v1734_v52, %v1773_v15  ;;  %2009 = vmatpush.msra.mxu2 %v1900_v37  ;;  %v1898_v1 = vld [vmem:[%s4897_s14 + $0x168] sm:$0xff]  ;;  %v1881_v24 = vld [vmem:[%s4897_s14 + $0xe0] sm:$0xff]  ;;  %v1896_v52 = vld [vmem:[%s4897_s14 + $0x158] sm:$0xff]  ;;  %vm5012_vm2 = vcmask 777216  }
 0x54e   :  { %v3009_v32 = vpack.i.bf16 %v4113_v47, %v4110_v2  ;;  %1989 = vmatpush.msrb.mxu1 %v1881_v24  ;;  %v1891_v24 = vld [vmem:[%s4897_s14 + $0x130] sm:$0xff]  ;;  %vm5013_vm4 = vmmov %vm5012_vm2 }
 0x54f   :  { %v3014_v55 = vpack.i.bf16 %v4124_v40, %v4122_v28  ;;  %v3004_v6 = vpack.i.bf16 %v4120_v60, %v4118_v16  ;;  %2010 = vmatpush.msra.mxu2 %v1899_v51  ;;  %v1861_v51 = vld [vmem:[%s4897_s14 + $0x40] sm:$0xff]  ;;  %vm5014_vm9 = vmmov %vm5012_vm2 }
 0x550   :  { %3010 = vrot.lane.b32.xlu1 %v3009_v32, %s3124_s20  ;;  %1990 = vmatpush.msrb.mxu1 %v1880_v39  ;;  %v1890_v39 = vld [vmem:[%s4897_s14 + $0x128] sm:$0xff] }
 0x551   :  { %3015 = vrot.lane.b32.xlu0 %v3014_v55, %s3124_s20  ;;  %v3001_v13 = vpop.permute.xlu0 %3000  ;;  %3005 = vrot.lane.b32.xlu2 %v3004_v6, %s3124_s20 }
 0x552   :  { %v3003_v7 = vunpack.i.h.bf16 %v3001_v13  ;;  %v3002_v25 = vunpack.i.l.bf16 %v3001_v13  ;;  %2011 = vmatpush.msra.mxu2 %v1898_v1  ;;  %1991 = vmatpush.msrb.mxu1 %v1879_v9  ;;  %v1860_v1 = vld [vmem:[%s4897_s14 + $0x38] sm:$0xff]  ;;  %v1857_v9 = vld [vmem:[%s4897_s14 + $0x20] sm:$0xff] }
 0x554   :  { %v1772_v8 = vsel %vm5002_vm10, %v3003_v7, %v2993_v18  ;;  %v1771_v31 = vsel %vm5003_vm8, %v3002_v25, %v3003_v7  ;;  %2012 = vmatpush.msra.mxu2 %v1897_v29  ;;  %v1859_v29 = vld [vmem:[%s4897_s14 + $0x30] sm:$0xff]  ;;  %vm5015_vm10 = vmmov %vm5012_vm2 }
 0x555   :  { %v4142_v27 = vmax.f32 %v1733_v61, %v1772_v8  ;;  %v4144_v53 = vmax.f32 %v1732_v38, %v1771_v31  ;;  %v1912_v38 = vld [vmem:[%s4897_s14 + $0x1d8] sm:$0xff]  ;;  %vm5016_vm8 = vmmov %vm5012_vm2 }
 0x556   :  { %2013 = vmatpush.msra.mxu2 %v1896_v52  ;;  %2036 = vmatpush.msrb.mxu3 %v1912_v38  ;;  %v1858_v52 = vld [vmem:[%s4897_s14 + $0x28] sm:$0xff]  ;;  %v1873_v38 = vld [vmem:[%s4897_s14 + $0xa0] sm:$0xff] }
 0x557   :  { %v3024_v58 = vpack.i.bf16 %v4142_v27, %v4144_v53 }
 0x558   :  { %3020 = vrot.lane.b32.xlu1 %v3019_v41, %s3124_s20  ;;  %2014 = vmatpush.msra.mxu2 %v1895_v43  ;;  %v1905_v43 = vld [vmem:[%s4897_s14 + $0x1a0] sm:$0xff] }
 0x559   :  { %3025 = vrot.lane.b32.xlu2 %v3024_v58, %s3124_s20  ;;  %2037 = vmatpush.msrb.mxu3 %v1911_v36  ;;  %v1888_v36 = vld [vmem:[%s4897_s14 + $0x118] sm:$0xff] }
 0x5ab   :  { %v3006_v61 = vpop.permute.xlu2 %3005 }
 0x5ac   :  { %v3007_v21 = vunpack.i.l.bf16 %v3006_v61  ;;  %v3008_v42 = vunpack.i.h.bf16 %v3006_v61  ;;  %v1889_v61 = vld [vmem:[%s4897_s14 + $0x120] sm:$0xff] }
 0x5ae   :  { %v1847_v48 = vmax.f32 %v4118_v16, %v3007_v21 }
 0x5b3   :  { %v3026_v57 = vpop.permute.xlu2 %3025 }
 0x5b4   :  { %v3028_v15 = vunpack.i.h.bf16 %v3026_v57  ;;  %v3027_v32 = vunpack.i.l.bf16 %v3026_v57  ;;  %v1886_v57 = vld [vmem:[%s4897_s14 + $0x108] sm:$0xff] }
 0x5b6   :  { %v1829_v25 = vsel %vm5009_vm13, %v3027_v32, %v3028_v15  ;;  %vm2083_vm13 = vcmask 131072  }
 0x5b7   :  { %v1848_v37 = vmax.f32 %v4144_v53, %v1829_v25  ;;  %v1893_v53 = vld [vmem:[%s4897_s14 + $0x140] sm:$0xff] }
 0x5c2   :  { %v3011_v56 = vpop.permute.xlu1 %3010 }
 0x5c3   :  { %v3013_v19 = vunpack.i.h.bf16 %v3011_v56  ;;  %v3012_v22 = vunpack.i.l.bf16 %v3011_v56  ;;  %v3016_v23 = vpop.permute.xlu0 %3015  ;;  %v1856_v56 = vld [vmem:[%s4897_s14 + $0x18] sm:$0xff] }
 0x5c4   :  { %v3017_v14 = vunpack.i.l.bf16 %v3016_v23  ;;  %v3018_v46 = vunpack.i.h.bf16 %v3016_v23  ;;  %v1855_v23 = vld [vmem:[%s4897_s14 + $0x10] sm:$0xff] }
 0x5c5   :  { %v1828_v11 = vsel %vm5004_vm11, %v3013_v19, %v3007_v21  ;;  %v1827_v0 = vsel %vm5005_vm15, %v3012_v22, %v3013_v19  ;;  %v1904_v21 = vld [vmem:[%s4897_s14 + $0x198] sm:$0xff]  ;;  %v1871_v19 = vld [vmem:[%s4897_s14 + $0x90] sm:$0xff]  ;;  %vm5017_vm11 = vmmov %vm5012_vm2 }
 0x5c6   :  { %v1846_v18 = vmax.f32 %v4113_v47, %v1828_v11  ;;  %v1845_v12 = vmax.f32 %v4110_v2, %v1827_v0  ;;  %v1825_v34 = vsel %vm5006_vm5, %v3008_v42, %v3017_v14  ;;  %v1830_v6 = vsel %vm5007_vm12, %v3028_v15, %v3018_v46  ;;  %v1903_v42 = vld [vmem:[%s4897_s14 + $0x190] sm:$0xff]  ;;  %v1854_v11 = vld [vmem:[%s4897_s14 + $0x8] sm:$0xff]  ;;  %vm5018_vm15 = vmmov %vm5012_vm2 }
 0x5c7   :  { %v1843_v59 = vmax.f32 %v4120_v60, %v1825_v34  ;;  %v1826_v47 = vsel %vm5008_vm3, %v3017_v14, %v3012_v22  ;;  %v1849_v16 = vmax.f32 %v4142_v27, %v1830_v6  ;;  %v1877_v27 = vld [vmem:[%s4897_s14 + $0xc0] sm:$0xff]  ;;  %v1887_v22 = vld [vmem:[%s4897_s14 + $0x110] sm:$0xff]  ;;  %v1870_v14 = vld [vmem:[%s4897_s14 + $0x88] sm:$0xff]  ;;  %vm93_vm12 = vcmask 272384  }
 0x5c8   :  { %v3029_v49 = vpack.i.bf16 %v1846_v18, %v1845_v12  ;;  %v1844_v41 = vmax.f32 %v4122_v28, %v1826_v47  ;;  %v1894_v28 = vld [vmem:[%s4897_s14 + $0x148] sm:$0xff]  ;;  %v1869_v18 = vld [vmem:[%s4897_s14 + $0x80] sm:$0xff]  ;;  %vm5019_vm5 = vmmov %vm5012_vm2  ;;  %vm2081_vm3 = vcmask 1040520  }
 0x5c9   :  { %v3034_v55 = vpack.i.bf16 %v1843_v59, %v1847_v48  ;;  %v3049_v35 = vpack.i.bf16 %v1849_v16, %v1848_v37  ;;  %2015 = vmatpush.msra.mxu2 %v1894_v28  ;;  %v1902_v0 = vld [vmem:[%s4897_s14 + $0x188] sm:$0xff]  ;;  %v1885_v12 = vld [vmem:[%s4897_s14 + $0x100] sm:$0xff]  ;;  %v2059_v28 = vstv %s5021_s25 }
 0x5ca   :  { %v3021_v13 = vpop.permute.xlu1 %3020  ;;  %3030 = vrot.lane.b32.xlu0 %v3029_v49, %s3126_s22  ;;  %v1901_v34 = vld [vmem:[%s4897_s14 + $0x180] sm:$0xff] }
 0x5cb   :  { %v3023_v7 = vunpack.i.h.bf16 %v3021_v13  ;;  %v3022_v2 = vunpack.i.l.bf16 %v3021_v13  ;;  %3035 = vrot.lane.b32.xlu1 %v3034_v55, %s3126_s22  ;;  %2016 = vmatpush.msra.mxu2 %v1893_v53 }
 0x5cd   :  { %v1852_v60 = vmax.f32 %v4136_v26, %v3023_v7  ;;  %v1832_v8 = vsel %vm5010_vm7, %v3022_v2, %v3023_v7  ;;  %v1831_v31 = vsel %vm5011_vm14, %v3018_v46, %v3022_v2  ;;  %v1878_v26 = vld [vmem:[%s4897_s14 + $0xc8] sm:$0xff]  ;;  %2017 = vmatpush.msra.mxu2 %v1892_v17  ;;  %v1853_v46 = vld [vmem:[%s4897_s14] sm:$0xff]  ;;  %vm90_vm7 = vcmask 277504  }
 0x5ce   :  { %v1851_v58 = vmax.f32 %v4138_v63, %v1832_v8  ;;  %v1850_v54 = vmax.f32 %v4124_v40, %v1831_v31  ;;  %v1862_v40 = vld [vmem:[%s4897_s14 + $0x48] sm:$0xff]  ;;  %1992 = vmatpush.msrb.mxu1 %v1878_v26  ;;  %v2056_v26 = vstv %s5020_s23  ;;  %vm2077_vm14 = vcmask 1041544  }
 0x5cf   :  { %v1910_v63 = vld [vmem:[%s4897_s14 + $0x1c8] sm:$0xff]  ;;  %1969 = vmatpush.msra.mxu0 %v1862_v40  ;;  %2018 = vmatpush.msra.mxu2 %v1891_v24  ;;  %v2062_v40 = vstv %s5022_s6 }
 0x5d0   :  { %v3044_v10 = vpack.i.bf16 %v1852_v60, %v1851_v58  ;;  %v3039_v44 = vpack.i.bf16 %v1850_v54, %v1844_v41  ;;  %2038 = vmatpush.msrb.mxu3 %v1910_v63  ;;  %1993 = vmatpush.msrb.mxu1 %v1877_v27  ;;  %v4384_v63 = vld [vmem:[#allocation5] sm:$0xff]  ;;  %v2060_v27 = vmul.f32 %v2059_v28, %v2056_v26 }
 0x5d1   :  { %1970 = vmatpush.msra.mxu0 %v1861_v51  ;;  %2019 = vmatpush.msra.mxu2 %v1890_v39  ;;  %94 = vst.msk [vmem:[#allocation5 + $0x18] sm:$0x7] %vm93_vm12, %v4384_v63  ;;  %vm5028_vm12 = vcmask 777216  }
 0x5d2   :  { %3045 = vrot.lane.b32.xlu0 %v3044_v10, %s3126_s22  ;;  %3040 = vrot.lane.b32.xlu2 %v3039_v44, %s3126_s22  ;;  %v2063_v53 = vadd.f32 %v2062_v40, %v2060_v27  ;;  %91 = vst.msk [vmem:[#allocation5 + $0x8] sm:$0xff] %vm90_vm7, %v4384_v63 }
 0x5d3   :  { %3050 = vrot.lane.b32.xlu1 %v3049_v35, %s3126_s22  ;;  %2039 = vmatpush.msrb.mxu3 %v1909_v4  ;;  %96 = vst.msk [vmem:[#allocation6 + $0x8] sm:$0xff] %vm90_vm7, %v4384_v63 }
 0x5d4   :  { %1994 = vmatpush.msrb.mxu1 %v1876_v20  ;;  %1971 = vmatpush.msra.mxu0 %v1860_v1  ;;  %v2064_v51 = vmax.f32 %v2063_v53, 0.0  ;;  %101 = vst.msk [vmem:[#allocation7 + $0x8] sm:$0xff] %vm90_vm7, %v4384_v63  ;;  %vm2186_vm7 = vcmask 908288  }
 0x5d5   :  { %2040 = vmatpush.msrb.mxu3 %v1908_v50  ;;  %2020 = vmatpush.msra.mxu2 %v1889_v61  ;;  %v4395_v61 = vld [vmem:[%s4900_s17] sm:$0x1]  ;;  %s3131_s17 = smov 111  }
 0x5d6   :  { %1995 = vmatpush.msrb.mxu1 %v1875_v30  ;;  %1972 = vmatpush.msra.mxu0 %v1859_v29  ;;  %2082 = vst.msk [vmem:[#allocation5 + $0x12] sm:$0x1] %vm2081_vm3, %v2064_v51  ;;  %vm5029_vm3 = vcmask 785408  }
 0x5d7   :  { %2041 = vmatpush.msrb.mxu3 %v1907_v33  ;;  %2021 = vmatpush.msra.mxu2 %v1888_v36  ;;  %2084 = vst.msk [vmem:[#allocation5 + $0x1a] sm:$0x1] %vm2083_vm13, %v2064_v51  ;;  %vm2209_vm13 = vcmask 900096  }
 0x5d8   :  { %1996 = vmatpush.msrb.mxu1 %v1874_v5  ;;  %1973 = vmatpush.msra.mxu0 %v1858_v52 }
 0x5d9   :  { %2042 = vmatpush.msrb.mxu3 %v1906_v62  ;;  %2022 = vmatpush.msra.mxu2 %v1887_v22 }
 0x5da   :  { %1997 = vmatpush.msrb.mxu1 %v1873_v38  ;;  %1974 = vmatpush.msra.mxu0 %v1857_v9 }
 0x5db   :  { %2043 = vmatpush.msrb.mxu3 %v1905_v43  ;;  %2023 = vmatpush.msra.mxu2 %v1886_v57 }
 0x5dc   :  { %1998 = vmatpush.msrb.mxu1 %v1872_v45  ;;  %1975 = vmatpush.msra.mxu0 %v1856_v56 }
 0x5dd   :  { %2044 = vmatpush.msrb.mxu3 %v1904_v21  ;;  %2024 = vmatpush.msra.mxu2 %v1885_v12 }
 0x5de   :  { %1999 = vmatpush.msrb.mxu1 %v1871_v19  ;;  %1976 = vmatpush.msra.mxu0 %v1855_v23 }
 0x5df   :  { %2045 = vmatpush.msrb.mxu3 %v1903_v42 }
 0x5e0   :  { %2000 = vmatpush.msrb.mxu1 %v1870_v14  ;;  %1977 = vmatpush.msra.mxu0 %v1854_v11 }
 0x5e1   :  { %2046 = vmatpush.msrb.mxu3 %v1902_v0 }
 0x5e2   :  { %2001 = vmatpush.msrb.mxu1 %v1869_v18  ;;  %1978 = vmatpush.msra.mxu0 %v1853_v46 }
 0x5e3   :  { %2047 = vmatpush.msrb.mxu3 %v1901_v34 }
 0x62c   :  { %v3041_v48 = vpop.permute.xlu2 %3040 }
 0x62d   :  { %v3042_v15 = vunpack.i.l.bf16 %v3041_v48  ;;  %v3043_v60 = vunpack.i.h.bf16 %v3041_v48 }
 0x63c   :  { %v3031_v59 = vpop.permute.xlu0 %3030 }
 0x63d   :  { %v3033_v32 = vunpack.i.h.bf16 %v3031_v59  ;;  %v3032_v49 = vunpack.i.l.bf16 %v3031_v59  ;;  %v3036_v55 = vpop.permute.xlu1 %3035 }
 0x63e   :  { %v3038_v6 = vunpack.i.h.bf16 %v3036_v55  ;;  %v3037_v13 = vunpack.i.l.bf16 %v3036_v55  ;;  %v2304_v55 = vld [vmem:[%s4892_s9 + $0x8] sm:$0x3] }
 0x63f   :  { %v1948_v47 = vsel %vm5012_vm2, %v3042_v15, %v3032_v49  ;;  %v1949_v7 = vsel %vm5013_vm4, %v3032_v49, %v3033_v32  ;;  %vm2079_vm2 = vcmask 132096   ;;  %vm2087_vm4 = vcmp.ge.f32.partialorder %v4395_v61, 1.0 }
 0x640   :  { %2002 = vmatmul.f32.vlgmr.msrb.gmra.mxu1 %v1948_v47  ;;  %2025 = vmatmul.f32.vlgmr.msra.gmra.mxu2 %v1949_v7  ;;  %v1947_v2 = vsel %vm5014_vm9, %v3038_v6, %v3042_v15  ;;  %v1950_v25 = vsel %vm5015_vm10, %v3033_v32, %v3037_v13  ;;  %v2088_v43 = vsel %vm2087_vm4, 1, %v3121_v3  ;;  %vm2073_vm10 = vcmask 1047688   ;;  %v2303_v47 = vld [vmem:[%s4892_s9] sm:$0xff] }
 0x641   :  { %1979 = vmatmul.f32.vlgmr.msra.gmra.mxu0 %v1947_v2  ;;  %2048 = vmatmul.f32.vlgmr.msrb.gmra.mxu3 %v1950_v25  ;;  %v2089_v45 = vperm.slane %v2088_v43, 0  ;;  %vm2161_vm4 = vcmask 916480  }
 0x643   :  { %vm4401_vm9 = vcmp.eq.s32.totalorder %v2089_v45, 1 }
 0x644   :  { %v3046_v16 = vpop.permute.xlu0 %3045 }
 0x645   :  { %v3048_v8 = vunpack.i.h.bf16 %v3046_v16  ;;  %v3047_v31 = vunpack.i.l.bf16 %v3046_v16  ;;  %v3051_v41 = vpop.permute.xlu1 %3050 }
 0x646   :  { %v3053_v58 = vunpack.i.h.bf16 %v3051_v41  ;;  %v3052_v54 = vunpack.i.l.bf16 %v3051_v41 }
 0x647   :  { %v1953_v37 = vsel %vm5016_vm8, %v3043_v60, %v3047_v31  ;;  %v1954_v10 = vsel %vm5017_vm11, %v3047_v31, %v3048_v8  ;;  %vm2075_vm8 = vcmask 138240   ;;  %vm2121_vm11 = vcmp.le.f32.partialorder %v4395_v61, 14.0 }
 0x648   :  { %2028 = vmatmul.f32.gmra.mxu2 %v1953_v37  ;;  %v1951_v44 = vsel %vm5018_vm15, %v3052_v54, %v3053_v58  ;;  %v1952_v35 = vsel %vm5019_vm5, %v3053_v58, %v3043_v60  ;;  %v2122_v25 = vsel %vm2121_vm11, 1, %v3121_v3  ;;  %vm5027_vm5 = vcmask 769024   ;;  %v2566_v60 = vld [vmem:[%s4893_s10] sm:$0xff] }
 0x649   :  { %1982 = vmatmul.f32.gmra.mxu0 %v1951_v44  ;;  %2005 = vmatmul.f32.gmra.mxu1 %v1952_v35  ;;  %v2123_v16 = vperm.slane %v2122_v25, 0  ;;  %vm5030_vm11 = vmmov %vm5027_vm5 }
 0x64a   :  { %2051 = vmatmul.f32.gmra.mxu3 %v1954_v10 }
 0x64b   :  { %vm4459_vm15 = vcmp.eq.s32.totalorder %v2123_v16, 1 }
 0x6bd   :  { %v2003_v4 = vpop.f32.mrf.mxu1 }
 0x6be   :  { %v1980_v20 = vpop.f32.mrf.mxu0 }
 0x6bf   :  { %v2004_v17 = vadd.f32 %v2003_v4, %v1980_v20 }
 0x6c3   :  { %v2026_v1 = vpop.f32.mrf.mxu2 }
 0x6c4   :  { %v2027_v50 = vadd.f32 %v2026_v1, %v2004_v17  ;;  %v2049_v30 = vpop.f32.mrf.mxu3 }
 0x6c6   :  { %v2050_v24 = vadd.f32 %v2049_v30, %v2027_v50  ;;  %v1983_v29 = vpop.f32.mrf.mxu0  ;;  %v2006_v33 = vpop.f32.mrf.mxu1 }
 0x6c7   :  { %v2007_v5 = vadd.f32 %v2006_v33, %v1983_v29 }
 0x6c8   :  { %2067 = vrot.lane.b32.xlu0 %v2050_v24, %s3130_s29 }
 0x6cb   :  { %v2029_v39 = vpop.f32.mrf.mxu2 }
 0x6cc   :  { %v2030_v52 = vadd.f32 %v2029_v39, %v2007_v5 }
 0x6cd   :  { %v2052_v62 = vpop.f32.mrf.mxu3 }
 0x6ce   :  { %v2053_v38 = vadd.f32 %v2052_v62, %v2030_v52 }
 0x6d0   :  { %2069 = vrot.lane.b32.xlu2 %v2053_v38, %s3130_s29 }
 0x72a   :  { %v2070_v9 = vpop.permute.xlu2 %2069 }
 0x72b   :  { %2078 = vst.msk [vmem:[#allocation5 + $0x10] sm:$0x3] %vm2077_vm14, %v2070_v9 }
 0x72c   :  { %2080 = vst.msk [vmem:[#allocation5 + $0x18] sm:$0x3] %vm2079_vm2, %v2070_v9 }
 0x732   :  { %v2086_v36 = vld [vmem:[#allocation5 + $0x10] sm:$0x7] }
 0x733   :  { %v2092_v21 = vsel %vm4401_vm9, %v2086_v36, 0.0  ;;  %v2267_v42 = vld [vmem:[#allocation5 + $0x18] sm:$0x7]  ;;  %v2220_v57 = vld [vmem:[#allocation5 + $0x10] sm:$0x7] }
 0x734   :  { %2094 = vst [vmem:[#allocation9 + $0x8] sm:$0x7] %v2092_v21  ;;  %v2245_v14 = vld [vmem:[#allocation5 + $0x18] sm:$0x7]  ;;  %v2266_v11 = vld [vmem:[#allocation5 + $0x10] sm:$0x7] }
 0x735   :  { %v2196_v0 = vld [vmem:[#allocation5 + $0x18] sm:$0x7]  ;;  %v2244_v18 = vld [vmem:[#allocation5 + $0x10] sm:$0x7] }
 0x736   :  { %v2221_v12 = vld [vmem:[#allocation5 + $0x18] sm:$0x7]  ;;  %v2195_v34 = vld [vmem:[#allocation5 + $0x10] sm:$0x7] }
 0x737   :  { %v2173_v46 = vld [vmem:[#allocation5 + $0x18] sm:$0x7]  ;;  %v2147_v59 = vld [vmem:[#allocation5 + $0x10] sm:$0x7] }
 0x738   :  { %v2148_v48 = vld [vmem:[#allocation5 + $0x18] sm:$0x7]  ;;  %v2172_v15 = vld [vmem:[#allocation5 + $0x10] sm:$0x7] }
 0x739   :  { %v2120_v32 = vld [vmem:[#allocation5 + $0x18] sm:$0x7]  ;;  %v2119_v49 = vld [vmem:[#allocation5 + $0x10] sm:$0x7] }
 0x73a   :  { %v2068_v19 = vpop.permute.xlu0 %2067  ;;  %v2098_v6 = vld [vmem:[#allocation5 + $0x18] sm:$0x7]  ;;  %v2097_v13 = vld [vmem:[#allocation5 + $0x10] sm:$0x7] }
 0x73b   :  { %2074 = vst.msk [vmem:[#allocation5] sm:$0xff] %vm2073_vm10, %v2068_v19 }
 0x73c   :  { %2076 = vst.msk [vmem:[#allocation5 + $0x8] sm:$0xff] %vm2075_vm8, %v2068_v19 }
 0x742   :  { %v4409_v22 = vld [vmem:[#allocation5] sm:$0xff] }
 0x743   :  { %v2265_v23 = vld [vmem:[#allocation5 + $0x8] sm:$0xff]  ;;  %2272 = vrot.lane.b32.xlu0 %v4409_v22, %s3125_s21  ;;  %2250 = vrot.lane.b32.xlu2 %v4409_v22, %s3126_s22 }
 0x744   :  { %2274 = vrot.lane.b32.xlu1 %v2265_v23, %s3125_s21 }
 0x74b   :  { %2252 = vrot.lane.b32.xlu0 %v2265_v23, %s3126_s22  ;;  %2178 = vrot.lane.b32.xlu2 %v4409_v22, %s3131_s17 }
 0x74c   :  { %2228 = vrot.lane.b32.xlu1 %v2265_v23, %s3124_s20 }
 0x753   :  { %2226 = vrot.lane.b32.xlu0 %v4409_v22, %s3124_s20  ;;  %2103 = vrot.lane.b32.xlu2 %v4409_v22, %s3122_s16 }
 0x754   :  { %2203 = vrot.lane.b32.xlu1 %v2265_v23, %s3132_s0 }
 0x75b   :  { %2201 = vrot.lane.b32.xlu0 %v4409_v22, %s3132_s0  ;;  %2278 = vrot.lane.b32.xlu2 %v2267_v42, %s3125_s21 }
 0x75c   :  { %2155 = vrot.lane.b32.xlu1 %v2265_v23, %s3133_s3 }
 0x763   :  { %2180 = vrot.lane.b32.xlu0 %v2265_v23, %s3131_s17  ;;  %2256 = vrot.lane.b32.xlu2 %v2245_v14, %s3126_s22 }
 0x764   :  { %2131 = vrot.lane.b32.xlu1 %v2265_v23, %s3123_s1 }
 0x76b   :  { %2153 = vrot.lane.b32.xlu0 %v4409_v22, %s3133_s3  ;;  %2230 = vrot.lane.b32.xlu2 %v2220_v57, %s3124_s20 }
 0x76c   :  { %2276 = vrot.lane.b32.xlu1 %v2266_v11, %s3125_s21 }
 0x773   :  { %2129 = vrot.lane.b32.xlu0 %v4409_v22, %s3123_s1  ;;  %2207 = vrot.lane.b32.xlu2 %v2196_v0, %s3132_s0 }
 0x774   :  { %2254 = vrot.lane.b32.xlu1 %v2244_v18, %s3126_s22 }
 0x77b   :  { %2232 = vrot.lane.b32.xlu0 %v2221_v12, %s3124_s20  ;;  %2184 = vrot.lane.b32.xlu2 %v2173_v46, %s3131_s17 }
 0x77c   :  { %2205 = vrot.lane.b32.xlu1 %v2195_v34, %s3132_s0 }
 0x783   :  { %2159 = vrot.lane.b32.xlu0 %v2148_v48, %s3133_s3  ;;  %2157 = vrot.lane.b32.xlu2 %v2147_v59, %s3133_s3 }
 0x784   :  { %2182 = vrot.lane.b32.xlu1 %v2172_v15, %s3131_s17 }
 0x78b   :  { %2105 = vrot.lane.b32.xlu0 %v2265_v23, %s3122_s16  ;;  %2135 = vrot.lane.b32.xlu2 %v2120_v32, %s3123_s1 }
 0x78c   :  { %2133 = vrot.lane.b32.xlu1 %v2119_v49, %s3123_s1 }
 0x793   :  { %2312 = vperm.xlu0 %2976, %v2304_v55   ;;  %2109 = vrot.lane.b32.xlu2 %v2098_v6, %s3122_s16 }
 0x794   :  { %2107 = vrot.lane.b32.xlu1 %v2097_v13, %s3122_s16 }
 0x79c   :  { %2307 = vperm.xlu1 %2977, %v2303_v47  }
 0x79d   :  { %v2251_v7 = vpop.permute.xlu2 %2250 }
 0x7a5   :  { %v2179_v2 = vpop.permute.xlu2 %2178 }
 0x7ad   :  { %v4463_v31 = vpop.permute.xlu2 %2103 }
 0x7b5   :  { %v2273_v8 = vpop.permute.xlu0 %2272  ;;  %v2279_v3 = vpop.permute.xlu2 %2278 }
 0x7b6   :  { %v2275_v41 = vpop.permute.xlu1 %2274 }
 0x7b7   :  { %v2280_v58 = vsel %vm5027_vm5, %v2273_v8, %v2275_v41  ;;  %vm5031_vm5 = vcmask 1031168  }
 0x7b8   :  { %v2284_v54 = vsel %vm4459_vm15, %v2280_v58, 0.0 }
 0x7b9   :  { %2286 = vst [vmem:[#allocation9 + $0x58] sm:$0xff] %v2284_v54 }
 0x7bd   :  { %v2253_v37 = vpop.permute.xlu0 %2252  ;;  %v2257_v27 = vpop.permute.xlu2 %2256 }
 0x7be   :  { %v2229_v10 = vpop.permute.xlu1 %2228  ;;  %v2258_v44 = vsel %vm5028_vm12, %v2251_v7, %v2253_v37 }
 0x7bf   :  { %2262 = vst [vmem:[#allocation9 + $0x4d] sm:$0xff] %v2258_v44  ;;  %v2301_v44 = vld [vmem:[%s4891_s8] sm:$0xff] }
 0x7c5   :  { %v2227_v35 = vpop.permute.xlu0 %2226  ;;  %v2231_v17 = vpop.permute.xlu2 %2230 }
 0x7c6   :  { %v2204_v26 = vpop.permute.xlu1 %2203  ;;  %v2234_v28 = vsel %vm5029_vm3, %v2227_v35, %v2229_v10  ;;  %vm5032_vm3 = vcmask 1042432  }
 0x7c7   :  { %v2238_v40 = vsel %vm4401_vm9, %v2234_v28, 0.0 }
 0x7c8   :  { %2240 = vst [vmem:[#allocation9 + $0x42] sm:$0xff] %v2238_v40 }
 0x7cd   :  { %v2202_v53 = vpop.permute.xlu0 %2201  ;;  %v2208_v29 = vpop.permute.xlu2 %2207 }
 0x7ce   :  { %v2156_v51 = vpop.permute.xlu1 %2155  ;;  %v2210_v4 = vsel %vm2209_vm13, %v2202_v53, %v2204_v26 }
 0x7cf   :  { %v2214_v20 = vsel %vm4459_vm15, %v2210_v4, 0.0 }
 0x7d0   :  { %2216 = vst [vmem:[#allocation9 + $0x37] sm:$0xff] %v2214_v20 }
 0x7d5   :  { %v2181_v1 = vpop.permute.xlu0 %2180  ;;  %v2185_v36 = vpop.permute.xlu2 %2184 }
 0x7d6   :  { %v2132_v50 = vpop.permute.xlu1 %2131  ;;  %v2187_v30 = vsel %vm2186_vm7, %v2179_v2, %v2181_v1 }
 0x7d7   :  { %2191 = vst [vmem:[#allocation9 + $0x2c] sm:$0xff] %v2187_v30 }
 0x7dd   :  { %v2154_v24 = vpop.permute.xlu0 %2153  ;;  %v2158_v18 = vpop.permute.xlu2 %2157 }
 0x7de   :  { %v2162_v33 = vsel %vm2161_vm4, %v2154_v24, %v2156_v51  ;;  %v2277_v5 = vpop.permute.xlu1 %2276 }
 0x7df   :  { %v2166_v39 = vsel %vm4401_vm9, %v2162_v33, 0.0  ;;  %v2281_v52 = vsel %vm5030_vm11, %v2277_v5, %v2279_v3  ;;  %vm5033_vm11 = vcmask 785408   ;;  %v2302_v3 = vld [vmem:[%s4891_s8 + $0x8] sm:$0x3] }
 0x7e0   :  { %2168 = vst [vmem:[#allocation9 + $0x21] sm:$0xff] %v2166_v39  ;;  %v2285_v62 = vsel %vm4459_vm15, %v2281_v52, 0.0 }
 0x7e1   :  { %2287 = vst [vmem:[#allocation9 + $0x60] sm:$0x7] %v2285_v62 }
 0x7e5   :  { %v2130_v38 = vpop.permute.xlu0 %2129  ;;  %v2136_v55 = vpop.permute.xlu2 %2135 }
 0x7e6   :  { %v2137_v61 = vsel %vm5031_vm5, %v2130_v38, %v2132_v50  ;;  %v2255_v9 = vpop.permute.xlu1 %2254  ;;  %vm5034_vm5 = vcmask 1039360  }
 0x7e7   :  { %v2141_v43 = vsel %vm4459_vm15, %v2137_v61, 0.0  ;;  %v2259_v45 = vsel %vm5028_vm12, %v2255_v9, %v2257_v27  ;;  %vm5035_vm12 = vcmask 1031168  }
 0x7e8   :  { %2143 = vst [vmem:[#allocation9 + $0x16] sm:$0xff] %v2141_v43  ;;  %v2300_v21 = vld [vmem:[#allocation9 + $0x60] sm:$0x7] }
 0x7e9   :  { %2263 = vst [vmem:[#allocation9 + $0x55] sm:$0x7] %v2259_v45  ;;  %2952 = vmatpush.msk.msrb.mxu0 %vm5032_vm3, %v2300_v21  ;;  %vm5036_vm3 = vmmov %vm5034_vm5  ;;  %v2568_v21 = vld [vmem:[%s4894_s11] sm:$0xff] }
 0x7eb   :  { %3089 = vmatpush.msk.msrb.mxu0 %vm4459_vm15, %v2280_v58 }
 0x7ed   :  { %v2233_v19 = vpop.permute.xlu0 %2232  ;;  %v2110_v8 = vpop.permute.xlu2 %2109 }
 0x7ee   :  { %v2235_v23 = vsel %vm5033_vm11, %v2231_v17, %v2233_v19  ;;  %v2206_v42 = vpop.permute.xlu1 %2205  ;;  %vm2315_vm11 = vcmask 809984  }
 0x7ef   :  { %v2239_v14 = vsel %vm4401_vm9, %v2235_v23, 0.0  ;;  %v2211_v57 = vsel %vm2209_vm13, %v2206_v42, %v2208_v29  ;;  %v2569_v42 = vld [vmem:[%s4894_s11 + $0x8] sm:$0x3] }
 0x7f0   :  { %2241 = vst [vmem:[#allocation9 + $0x4a] sm:$0x7] %v2239_v14  ;;  %v2215_v11 = vsel %vm4459_vm15, %v2211_v57, 0.0  ;;  %v2298_v0 = vld [vmem:[#allocation9 + $0x50] sm:$0xff] }
 0x7f1   :  { %2217 = vst [vmem:[#allocation9 + $0x3f] sm:$0x7] %v2215_v11  ;;  %2330 = vmatpush.msrb.mxu0 %v2298_v0 }
 0x7f5   :  { %v2160_v12 = vpop.permute.xlu0 %2159 }
 0x7f6   :  { %v2163_v46 = vsel %vm2161_vm4, %v2158_v18, %v2160_v12  ;;  %v2183_v34 = vpop.permute.xlu1 %2182 }
 0x7f7   :  { %v2167_v48 = vsel %vm4401_vm9, %v2163_v46, 0.0  ;;  %v2188_v59 = vsel %vm2186_vm7, %v2183_v34, %v2185_v36  ;;  %v2297_v15 = vld [vmem:[#allocation9 + $0x48] sm:$0xff] }
 0x7f8   :  { %2169 = vst [vmem:[#allocation9 + $0x29] sm:$0x7] %v2167_v48  ;;  %2331 = vmatpush.msrb.mxu0 %v2297_v15  ;;  %v2296_v32 = vld [vmem:[#allocation9 + $0x40] sm:$0xff]  ;;  %v2295_v49 = vld [vmem:[#allocation9 + $0x38] sm:$0xff] }
 0x7f9   :  { %2192 = vst [vmem:[#allocation9 + $0x34] sm:$0x7] %v2188_v59 }
 0x7fa   :  { %2332 = vmatpush.msrb.mxu0 %v2296_v32 }
 0x7fc   :  { %2333 = vmatpush.msrb.mxu0 %v2295_v49 }
 0x7fd   :  { %v2106_v6 = vpop.permute.xlu0 %2105 }
 0x7fe   :  { %v2111_v13 = vsel %vm5034_vm5, %v4463_v31, %v2106_v6  ;;  %v2134_v47 = vpop.permute.xlu1 %2133  ;;  %vm98_vm5 = vcmask 271360  }
 0x7ff   :  { %2115 = vst [vmem:[#allocation9 + $0xb] sm:$0xff] %v2111_v13  ;;  %v2138_v7 = vsel %vm5035_vm12, %v2134_v47, %v2136_v55  ;;  %v2293_v16 = vld [vmem:[#allocation9 + $0x28] sm:$0xff]  ;;  %vm5037_vm12 = vcmask 769024  }
 0x800   :  { %v2142_v2 = vsel %vm4459_vm15, %v2138_v7, 0.0  ;;  %v2294_v25 = vld [vmem:[#allocation9 + $0x30] sm:$0xff]  ;;  %99 = vst.msk [vmem:[#allocation6 + $0x18] sm:$0x3] %vm98_vm5, %v4384_v63 }
 0x801   :  { %2144 = vst [vmem:[#allocation9 + $0x1e] sm:$0x7] %v2142_v2  ;;  %2334 = vmatpush.msrb.mxu0 %v2294_v25 }
 0x802   :  { %103 = vst.msk [vmem:[#allocation7 + $0x18] sm:$0x3] %vm98_vm5, %v4384_v63 }
 0x803   :  { %2335 = vmatpush.msrb.mxu0 %v2293_v16 }
 0x805   :  { %v2313_v27 = vpop.permute.xlu0 %2312 }
 0x806   :  { %v2108_v41 = vpop.permute.xlu1 %2107  ;;  %v2289_v10 = vld [vmem:[#allocation9 + $0x8] sm:$0xff] }
 0x807   :  { %v2112_v58 = vsel %vm5036_vm3, %v2108_v41, %v2110_v8  ;;  %vm5038_vm3 = vcmask 777216  }
 0x808   :  { %2116 = vst [vmem:[#allocation9 + $0x13] sm:$0x7] %v2112_v58  ;;  %v2292_v54 = vld [vmem:[#allocation9 + $0x20] sm:$0xff]  ;;  %v2291_v31 = vld [vmem:[#allocation9 + $0x18] sm:$0xff] }
 0x809   :  { %2336 = vmatpush.msrb.mxu0 %v2292_v54 }
 0x80b   :  { %2337 = vmatpush.msrb.mxu0 %v2291_v31 }
 0x80e   :  { %v2308_v35 = vpop.permute.xlu1 %2307 }
 0x80f   :  { %v2290_v37 = vld [vmem:[#allocation9 + $0x10] sm:$0xff] }
 0x810   :  { %2338 = vmatpush.msrb.mxu0 %v2290_v37 }
 0x812   :  { %2339 = vmatpush.msrb.mxu0 %v2289_v10 }
 0x814   :  { %3090 = vmatpush.msk.msrb.mxu0 %vm4401_vm9, %v4409_v22 }
 0x815   :  { %2953 = vmatmul.msk.f32.vlgmr.msrb.gmra.mxu0 %vm2315_vm11, %v2301_v44 }
 0x81d   :  { %2954 = vmatmul.msk.f32.gmra.mxu0 %vm2315_vm11, %v2302_v3  ;;  %vm5039_vm11 = vcmask 785408  }
 0x81e   :  { %vm5040_vm5 = vmmov %vm5039_vm11 }
 0x892   :  { %v2342_v26 = vpop.f32.mrf.mxu0 }
 0x893   :  { %v2343_v28 = vadd.f32 %v2342_v26, %v2308_v35 }
 0x895   :  { %v2348_v40 = vmax.f32 %v2343_v28, 0.0 }
 0x897   :  { %2352 = vrot.lane.b32.xlu0 %v2348_v40, %s3130_s29 }
 0x89a   :  { %v2345_v53 = vpop.f32.mrf.mxu0 }
 0x89b   :  { %v2346_v22 = vadd.f32 %v2345_v53, %v2313_v27 }
 0x89d   :  { %v2349_v51 = vmax.f32 %v2346_v22, 0.0 }
 0x89f   :  { %2354 = vrot.lane.b32.xlu2 %v2349_v51, %s3130_s29 }
 0x8f9   :  { %v2355_v4 = vpop.permute.xlu2 %2354 }
 0x8fa   :  { %2360 = vst.msk [vmem:[#allocation6 + $0x10] sm:$0x3] %vm2077_vm14, %v2355_v4 }
 0x8fb   :  { %2361 = vst.msk [vmem:[#allocation6 + $0x18] sm:$0x3] %vm2079_vm2, %v2355_v4 }
 0x901   :  { %v2363_v20 = vld [vmem:[#allocation6 + $0x10] sm:$0x3] }
 0x902   :  { %v2365_v63 = vsel %vm4401_vm9, %v2363_v20, 0.0  ;;  %v2487_v30 = vld [vmem:[#allocation6 + $0x18] sm:$0x3]  ;;  %v2462_v24 = vld [vmem:[#allocation6 + $0x10] sm:$0x3] }
 0x903   :  { %2367 = vst [vmem:[#allocation9 + $0x8] sm:$0x3] %v2365_v63  ;;  %v2533_v29 = vld [vmem:[#allocation6 + $0x18] sm:$0x3]  ;;  %v2532_v39 = vld [vmem:[#allocation6 + $0x10] sm:$0x3] }
 0x904   :  { %v2441_v33 = vld [vmem:[#allocation6 + $0x18] sm:$0x3]  ;;  %v2486_v62 = vld [vmem:[#allocation6 + $0x10] sm:$0x3] }
 0x905   :  { %v2511_v5 = vld [vmem:[#allocation6 + $0x18] sm:$0x3]  ;;  %v2510_v38 = vld [vmem:[#allocation6 + $0x10] sm:$0x3] }
 0x906   :  { %v2417_v52 = vld [vmem:[#allocation6 + $0x18] sm:$0x3]  ;;  %v2392_v61 = vld [vmem:[#allocation6 + $0x10] sm:$0x3] }
 0x907   :  { %v2440_v9 = vld [vmem:[#allocation6 + $0x10] sm:$0x3]  ;;  %v2463_v43 = vld [vmem:[#allocation6 + $0x18] sm:$0x3] }
 0x908   :  { %v2416_v45 = vld [vmem:[#allocation6 + $0x10] sm:$0x3]  ;;  %v2393_v36 = vld [vmem:[#allocation6 + $0x18] sm:$0x3] }
 0x909   :  { %v2353_v17 = vpop.permute.xlu0 %2352  ;;  %v2371_v19 = vld [vmem:[#allocation6 + $0x18] sm:$0x3]  ;;  %v2370_v23 = vld [vmem:[#allocation6 + $0x10] sm:$0x3] }
 0x90a   :  { %2358 = vst.msk [vmem:[#allocation6] sm:$0xff] %vm2073_vm10, %v2353_v17 }
 0x90b   :  { %2359 = vst.msk [vmem:[#allocation6 + $0x8] sm:$0xff] %vm2075_vm8, %v2353_v17 }
 0x911   :  { %v4524_v1 = vld [vmem:[#allocation6] sm:$0xff] }
 0x912   :  { %v2531_v50 = vld [vmem:[#allocation6 + $0x8] sm:$0xff]  ;;  %2538 = vrot.lane.b32.xlu0 %v4524_v1, %s3125_s21  ;;  %2516 = vrot.lane.b32.xlu2 %v4524_v1, %s3126_s22 }
 0x913   :  { %2540 = vrot.lane.b32.xlu1 %v2531_v50, %s3125_s21 }
 0x91a   :  { %2518 = vrot.lane.b32.xlu0 %v2531_v50, %s3126_s22  ;;  %2470 = vrot.lane.b32.xlu2 %v2531_v50, %s3132_s0 }
 0x91b   :  { %2494 = vrot.lane.b32.xlu1 %v2531_v50, %s3124_s20 }
 0x922   :  { %2448 = vrot.lane.b32.xlu2 %v2531_v50, %s3131_s17  ;;  %2492 = vrot.lane.b32.xlu0 %v4524_v1, %s3124_s20 }
 0x923   :  { %2468 = vrot.lane.b32.xlu1 %v4524_v1, %s3132_s0 }
 0x92a   :  { %2400 = vrot.lane.b32.xlu2 %v2531_v50, %s3123_s1  ;;  %2422 = vrot.lane.b32.xlu0 %v4524_v1, %s3133_s3 }
 0x92b   :  { %2446 = vrot.lane.b32.xlu1 %v4524_v1, %s3131_s17 }
 0x932   :  { %2498 = vrot.lane.b32.xlu0 %v2487_v30, %s3124_s20  ;;  %2376 = vrot.lane.b32.xlu2 %v4524_v1, %s3122_s16 }
 0x933   :  { %2424 = vrot.lane.b32.xlu1 %v2531_v50, %s3133_s3 }
 0x93a   :  { %2472 = vrot.lane.b32.xlu0 %v2462_v24, %s3132_s0  ;;  %2544 = vrot.lane.b32.xlu2 %v2533_v29, %s3125_s21 }
 0x93b   :  { %2398 = vrot.lane.b32.xlu1 %v4524_v1, %s3123_s1 }
 0x942   :  { %2452 = vrot.lane.b32.xlu0 %v2441_v33, %s3131_s17  ;;  %2522 = vrot.lane.b32.xlu2 %v2511_v5, %s3126_s22 }
 0x943   :  { %2542 = vrot.lane.b32.xlu1 %v2532_v39, %s3125_s21 }
 0x94a   :  { %2428 = vrot.lane.b32.xlu0 %v2417_v52, %s3133_s3  ;;  %2496 = vrot.lane.b32.xlu2 %v2486_v62, %s3124_s20 }
 0x94b   :  { %2520 = vrot.lane.b32.xlu1 %v2510_v38, %s3126_s22 }
 0x952   :  { %2402 = vrot.lane.b32.xlu0 %v2392_v61, %s3123_s1  ;;  %2450 = vrot.lane.b32.xlu2 %v2440_v9, %s3131_s17 }
 0x953   :  { %2474 = vrot.lane.b32.xlu1 %v2463_v43, %s3132_s0  ;;  %s3135_s0 = smov [#allocation14]  }
 0x954   :  { %s2917_s19 = sshll.u32 %s3135_s0, 4  ;;  %s2918_s19 = int_to_ptr.vmem [resolvable:$true] %s2917_s19 }
 0x95a   :  { %2378 = vrot.lane.b32.xlu0 %v2531_v50, %s3122_s16  ;;  %2426 = vrot.lane.b32.xlu2 %v2416_v45, %s3133_s3 }
 0x95b   :  { %2404 = vrot.lane.b32.xlu1 %v2393_v36, %s3123_s1 }
 0x962   :  { %2572 = vperm.xlu0 %2976, %v2568_v21   ;;  %2382 = vrot.lane.b32.xlu2 %v2371_v19, %s3122_s16 }
 0x963   :  { %2380 = vrot.lane.b32.xlu1 %v2370_v23, %s3122_s16 }
 0x96a   :  { %2577 = vperm.xlu2 %2978, %v2569_v42  }
 0x96c   :  { %v2517_v14 = vpop.permute.xlu2 %2516 }
 0x974   :  { %v2471_v57 = vpop.permute.xlu2 %2470 }
 0x97c   :  { %v2449_v11 = vpop.permute.xlu2 %2448 }
 0x984   :  { %v2539_v0 = vpop.permute.xlu0 %2538  ;;  %v2401_v18 = vpop.permute.xlu2 %2400 }
 0x985   :  { %v2541_v12 = vpop.permute.xlu1 %2540 }
 0x986   :  { %v2546_v46 = vsel %vm5037_vm12, %v2539_v0, %v2541_v12  ;;  %vm5041_vm12 = vcmask 1031168  }
 0x987   :  { %v2550_v34 = vsel %vm4459_vm15, %v2546_v46, 0.0 }
 0x988   :  { %2552 = vst [vmem:[#allocation9 + $0x50] sm:$0xff] %v2550_v34 }
 0x98c   :  { %v2519_v48 = vpop.permute.xlu0 %2518  ;;  %v2377_v59 = vpop.permute.xlu2 %2376 }
 0x98d   :  { %v2495_v15 = vpop.permute.xlu1 %2494  ;;  %v2524_v32 = vsel %vm5038_vm3, %v2517_v14, %v2519_v48  ;;  %vm5042_vm3 = vcmask 769024  }
 0x98e   :  { %2528 = vst [vmem:[#allocation9 + $0x46] sm:$0xff] %v2524_v32 }
 0x994   :  { %v2493_v49 = vpop.permute.xlu0 %2492  ;;  %v2545_v55 = vpop.permute.xlu2 %2544 }
 0x995   :  { %v2500_v6 = vsel %vm5039_vm11, %v2493_v49, %v2495_v15  ;;  %v2469_v13 = vpop.permute.xlu1 %2468  ;;  %vm5043_vm11 = vcmask 777216  }
 0x996   :  { %v2504_v47 = vsel %vm4401_vm9, %v2500_v6, 0.0  ;;  %v2476_v7 = vsel %vm2209_vm13, %v2469_v13, %v2471_v57 }
 0x997   :  { %2506 = vst [vmem:[#allocation9 + $0x3c] sm:$0xff] %v2504_v47  ;;  %v2480_v2 = vsel %vm4459_vm15, %v2476_v7, 0.0 }
 0x998   :  { %2482 = vst [vmem:[#allocation9 + $0x32] sm:$0xff] %v2480_v2 }
 0x99c   :  { %v2423_v25 = vpop.permute.xlu0 %2422  ;;  %v2523_v16 = vpop.permute.xlu2 %2522 }
 0x99d   :  { %v2447_v8 = vpop.permute.xlu1 %2446 }
 0x99e   :  { %v2454_v41 = vsel %vm2186_vm7, %v2447_v8, %v2449_v11 }
 0x99f   :  { %2458 = vst [vmem:[#allocation9 + $0x28] sm:$0xff] %v2454_v41 }
 0x9a4   :  { %v2499_v58 = vpop.permute.xlu0 %2498  ;;  %v2497_v54 = vpop.permute.xlu2 %2496 }
 0x9a5   :  { %v2425_v31 = vpop.permute.xlu1 %2424  ;;  %v2501_v37 = vsel %vm5040_vm5, %v2497_v54, %v2499_v58  ;;  %vm5044_vm5 = vcmask 1039360  }
 0x9a6   :  { %v2430_v10 = vsel %vm2161_vm4, %v2423_v25, %v2425_v31  ;;  %v2505_v44 = vsel %vm4401_vm9, %v2501_v37, 0.0 }
 0x9a7   :  { %v2434_v3 = vsel %vm4401_vm9, %v2430_v10, 0.0  ;;  %2507 = vst [vmem:[#allocation9 + $0x44] sm:$0x3] %v2505_v44 }
 0x9a8   :  { %2436 = vst [vmem:[#allocation9 + $0x1e] sm:$0xff] %v2434_v3 }
 0x9ac   :  { %v2473_v35 = vpop.permute.xlu0 %2472  ;;  %v2451_v27 = vpop.permute.xlu2 %2450 }
 0x9ad   :  { %v2399_v26 = vpop.permute.xlu1 %2398 }
 0x9ae   :  { %v2406_v28 = vsel %vm5041_vm12, %v2399_v26, %v2401_v18  ;;  %v2562_v61 = vld [vmem:[#allocation9 + $0x40] sm:$0xff] }
 0x9af   :  { %v2410_v40 = vsel %vm4459_vm15, %v2406_v28, 0.0 }
 0x9b0   :  { %2412 = vst [vmem:[#allocation9 + $0x14] sm:$0xff] %v2410_v40 }
 0x9b4   :  { %v2453_v53 = vpop.permute.xlu0 %2452  ;;  %v2427_v63 = vpop.permute.xlu2 %2426 }
 0x9b5   :  { %v2455_v22 = vsel %vm2186_vm7, %v2451_v27, %v2453_v53  ;;  %v2543_v51 = vpop.permute.xlu1 %2542  ;;  %v2689_v53 = vld [vmem:[%s4898_s15 + $0x78] sm:$0xff] }
 0x9b6   :  { %2459 = vst [vmem:[#allocation9 + $0x30] sm:$0x3] %v2455_v22  ;;  %v2547_v4 = vsel %vm5042_vm3, %v2543_v51, %v2545_v55  ;;  %v2688_v22 = vld [vmem:[%s4898_s15 + $0x70] sm:$0xff]  ;;  %2706 = vmatpush.msrb.mxu2 %v2689_v53  ;;  %v2687_v51 = vld [vmem:[%s4898_s15 + $0x68] sm:$0xff]  ;;  %v2812_v53 = vld [vmem:[%s4895_s12 + $0x58] sm:$0xff] }
 0x9b7   :  { %v2551_v20 = vsel %vm4459_vm15, %v2547_v4, 0.0  ;;  %v2686_v4 = vld [vmem:[%s4898_s15 + $0x60] sm:$0xff] }
 0x9b8   :  { %2553 = vst [vmem:[#allocation9 + $0x58] sm:$0x3] %v2551_v20  ;;  %2707 = vmatpush.msrb.mxu2 %v2688_v22  ;;  %v2685_v20 = vld [vmem:[%s4898_s15 + $0x58] sm:$0xff] }
 0x9b9   :  { %v2828_v22 = vld [vmem:[%s4895_s12 + $0xd8] sm:$0xff] }
 0x9ba   :  { %2708 = vmatpush.msrb.mxu2 %v2687_v51 }
 0x9bc   :  { %v2429_v17 = vpop.permute.xlu0 %2428  ;;  %v2383_v42 = vpop.permute.xlu2 %2382  ;;  %2709 = vmatpush.msrb.mxu2 %v2686_v4 }
 0x9bd   :  { %v2431_v50 = vsel %vm2161_vm4, %v2427_v63, %v2429_v17  ;;  %v2521_v30 = vpop.permute.xlu1 %2520  ;;  %v2560_v23 = vld [vmem:[#allocation9 + $0x30] sm:$0xff] }
 0x9be   :  { %v2435_v24 = vsel %vm4401_vm9, %v2431_v50, 0.0  ;;  %v2525_v29 = vsel %vm5043_vm11, %v2521_v30, %v2523_v16  ;;  %v2684_v63 = vld [vmem:[%s4898_s15 + $0x50] sm:$0xff]  ;;  %2710 = vmatpush.msrb.mxu2 %v2685_v20  ;;  %v2683_v17 = vld [vmem:[%s4898_s15 + $0x48] sm:$0xff]  ;;  %v2682_v50 = vld [vmem:[%s4898_s15 + $0x40] sm:$0xff] }
 0x9bf   :  { %2437 = vst [vmem:[#allocation9 + $0x26] sm:$0x3] %v2435_v24  ;;  %v2565_v33 = vld [vmem:[#allocation9 + $0x58] sm:$0x3]  ;;  %v2681_v30 = vld [vmem:[%s4898_s15 + $0x38] sm:$0xff] }
 0x9c0   :  { %2529 = vst [vmem:[#allocation9 + $0x4e] sm:$0x3] %v2525_v29  ;;  %2955 = vmatpush.msk.msra.mxu1 %vm820_vm6, %v2565_v33  ;;  %vm5045_vm6 = vmmov %vm5041_vm12  ;;  %2711 = vmatpush.msrb.mxu2 %v2684_v63  ;;  %v2680_v29 = vld [vmem:[%s4898_s15 + $0x30] sm:$0xff] }
 0x9c1   :  { %v2811_v20 = vld [vmem:[%s4895_s12 + $0x50] sm:$0xff] }
 0x9c2   :  { %3091 = vmatpush.msk.msra.mxu1 %vm4459_vm15, %v2546_v46  ;;  %v2567_v46 = vld [vmem:[%s4893_s10 + $0x8] sm:$0x3]  ;;  %2712 = vmatpush.msrb.mxu2 %v2683_v17  ;;  %v2827_v63 = vld [vmem:[%s4895_s12 + $0xd0] sm:$0xff] }
 0x9c3   :  { %v2810_v17 = vld [vmem:[%s4895_s12 + $0x48] sm:$0xff] }
 0x9c4   :  { %v2403_v5 = vpop.permute.xlu0 %2402  ;;  %v2578_v32 = vpop.permute.xlu2 %2577  ;;  %2713 = vmatpush.msrb.mxu2 %v2682_v50  ;;  %v2826_v50 = vld [vmem:[%s4895_s12 + $0xc8] sm:$0xff] }
 0x9c5   :  { %v2475_v39 = vpop.permute.xlu1 %2474 }
 0x9c6   :  { %v2477_v52 = vsel %vm2209_vm13, %v2473_v35, %v2475_v39  ;;  %v2558_v57 = vld [vmem:[#allocation9 + $0x20] sm:$0xff]  ;;  %vm5046_vm13 = vmmov %vm5044_vm5  ;;  %2714 = vmatpush.msrb.mxu2 %v2681_v30  ;;  %v2679_v39 = vld [vmem:[%s4898_s15 + $0x28] sm:$0xff] }
 0x9c7   :  { %v2481_v62 = vsel %vm4459_vm15, %v2477_v52, 0.0  ;;  %v2563_v38 = vld [vmem:[#allocation9 + $0x48] sm:$0xff] }
 0x9c8   :  { %2483 = vst [vmem:[#allocation9 + $0x3a] sm:$0x3] %v2481_v62  ;;  %2595 = vmatpush.msra.mxu1 %v2563_v38  ;;  %2715 = vmatpush.msrb.mxu2 %v2680_v29  ;;  %v2825_v29 = vld [vmem:[%s4895_s12 + $0xc0] sm:$0xff] }
 0x9ca   :  { %2596 = vmatpush.msra.mxu1 %v2562_v61  ;;  %v2678_v61 = vld [vmem:[%s4898_s15 + $0x20] sm:$0xff]  ;;  %2716 = vmatpush.msrb.mxu2 %v2679_v39  ;;  %v2840_v39 = vld [vmem:[%s4895_s12 + $0x138] sm:$0xff] }
 0x9cb   :  { %2898 = vmatpush.msra.mxu0 %v2840_v39 }
 0x9cc   :  { %v2379_v9 = vpop.permute.xlu0 %2378  ;;  %2717 = vmatpush.msrb.mxu2 %v2678_v61  ;;  %v2838_v61 = vld [vmem:[%s4895_s12 + $0x128] sm:$0xff] }
 0x9cd   :  { %v2384_v43 = vsel %vm5044_vm5, %v2377_v59, %v2379_v9  ;;  %v2405_v45 = vpop.permute.xlu1 %2404 }
 0x9ce   :  { %2388 = vst [vmem:[#allocation9 + $0xa] sm:$0xff] %v2384_v43  ;;  %v2407_v36 = vsel %vm5045_vm6, %v2403_v5, %v2405_v45  ;;  %v2677_v43 = vld [vmem:[%s4898_s15 + $0x18] sm:$0xff] }
 0x9cf   :  { %v2411_v21 = vsel %vm4459_vm15, %v2407_v36, 0.0  ;;  %v2561_v19 = vld [vmem:[#allocation9 + $0x38] sm:$0xff]  ;;  %2718 = vmatpush.msrb.mxu2 %v2677_v43  ;;  %v2822_v43 = vld [vmem:[%s4895_s12 + $0xa8] sm:$0xff] }
 0x9d0   :  { %2413 = vst [vmem:[#allocation9 + $0x1c] sm:$0x3] %v2411_v21  ;;  %2597 = vmatpush.msra.mxu1 %v2561_v19  ;;  %v2676_v36 = vld [vmem:[%s4898_s15 + $0x10] sm:$0xff] }
 0x9d1   :  { %2719 = vmatpush.msrb.mxu2 %v2676_v36  ;;  %v2821_v36 = vld [vmem:[%s4895_s12 + $0xa0] sm:$0xff] }
 0x9d2   :  { %2598 = vmatpush.msra.mxu1 %v2560_v23 }
 0x9d4   :  { %2599 = vmatpush.msra.mxu1 %v2454_v41  ;;  %v2573_v34 = vpop.permute.xlu0 %2572 }
 0x9d5   :  { %v2381_v14 = vpop.permute.xlu1 %2380  ;;  %v2555_v12 = vld [vmem:[#allocation9 + $0x8] sm:$0xff] }
 0x9d6   :  { %v2385_v11 = vsel %vm5046_vm13, %v2381_v14, %v2383_v42  ;;  %2600 = vmatpush.msra.mxu1 %v2558_v57 }
 0x9d7   :  { %2389 = vst [vmem:[#allocation9 + $0x12] sm:$0x3] %v2385_v11  ;;  %v2557_v0 = vld [vmem:[#allocation9 + $0x18] sm:$0xff]  ;;  %v2675_v11 = vld [vmem:[%s4898_s15 + $0x8] sm:$0xff] }
 0x9d8   :  { %2601 = vmatpush.msra.mxu1 %v2557_v0  ;;  %v2674_v0 = vld [vmem:[%s4898_s15] sm:$0xff]  ;;  %2720 = vmatpush.msrb.mxu2 %v2675_v11  ;;  %s3134_s15 = smov 32   ;;  %v2835_v11 = vld [vmem:[%s4895_s12 + $0x110] sm:$0xff] }
 0x9da   :  { %2721 = vmatpush.msrb.mxu2 %v2674_v0  ;;  %v2802_v0 = vld [vmem:[%s4895_s12 + $0x8] sm:$0xff] }
 0x9de   :  { %v2556_v18 = vld [vmem:[#allocation9 + $0x10] sm:$0xff] }
 0x9df   :  { %2602 = vmatpush.msra.mxu1 %v2556_v18 }
 0x9e1   :  { %2603 = vmatpush.msra.mxu1 %v2555_v12 }
 0x9e3   :  { %3092 = vmatpush.msk.msra.mxu1 %vm4401_vm9, %v4524_v1 }
 0x9e4   :  { %2956 = vmatmul.msk.f32.vlgmr.msra.gmra.mxu1 %vm1558_vm0, %v2566_v60 }
 0x9ec   :  { %2957 = vmatmul.msk.f32.gmra.mxu1 %vm1558_vm0, %v2567_v46  ;;  %vm5047_vm0 = vmmov %vm5044_vm5  ;;  %vm2910_vm5 = vcmask 32768  }
 0xa61   :  { %v2606_v48 = vpop.f32.mrf.mxu1 }
 0xa62   :  { %v2607_v59 = vadd.f32 %v2606_v48, %v2573_v34 }
 0xa64   :  { %v2612_v15 = vmax.f32 %v2607_v59, 0.0 }
 0xa66   :  { %2616 = vrot.lane.b32.xlu1 %v2612_v15, %s3130_s29 }
 0xa69   :  { %v2609_v49 = vpop.f32.mrf.mxu1 }
 0xa6a   :  { %v2610_v55 = vadd.f32 %v2609_v49, %v2578_v32  ;;  %v2729_v32 = vlaneseq }
 0xa6c   :  { %v2613_v6 = vmax.f32 %v2610_v55, 0.0  ;;  %vm2741_vm9 = vcmp.ge.s32.totalorder %v2729_v32, 32  ;;  %vm4726_vm15 = vcmp.ge.s32.totalorder %v2729_v32, 64  ;;  %vm4757_vm12 = vcmp.ge.s32.totalorder %v2729_v32, 96 }
 0xa6d   :  { %vm4761_vm3 = vcmp.lt.s32.totalorder %v2729_v32, 128 }
 0xa6e   :  { %2618 = vrot.lane.b32.xlu1 %v2613_v6, %s3130_s29  ;;  %vm2763_vm11 = vmand %vm4757_vm12, %vm4761_vm3 }
 0xad8   :  { %v2617_v56 = vpop.permute.xlu1 %2616 }
 0xad9   :  { %2622 = vst.msk [vmem:[#allocation7] sm:$0xff] %vm2073_vm10, %v2617_v56  ;;  %vm2742_vm10 = vcmp.lt.s32.totalorder %v2729_v32, 64 }
 0xada   :  { %2623 = vst.msk [vmem:[#allocation7 + $0x8] sm:$0xff] %vm2075_vm8, %v2617_v56  ;;  %vm4720_vm8 = vmand %vm2741_vm9, %vm2742_vm10 }
 0xae0   :  { %v2619_v1 = vpop.permute.xlu1 %2618  ;;  %v2626_v13 = vld [vmem:[#allocation7] sm:$0xff] }
 0xae1   :  { %2624 = vst.msk [vmem:[#allocation7 + $0x10] sm:$0x3] %vm2077_vm14, %v2619_v1  ;;  %v2627_v47 = vld [vmem:[#allocation7 + $0x8] sm:$0xff]  ;;  %vm5048_vm14 = vmmov %vm5047_vm0 }
 0xae2   :  { %2625 = vst.msk [vmem:[#allocation7 + $0x18] sm:$0x3] %vm2079_vm2, %v2619_v1  ;;  %v3054_v7 = vpack.i.bf16 %v2627_v47, %v2626_v13  ;;  %vm4688_vm2 = vcmp.lt.s32.totalorder %v2729_v32, 32 }
 0xae4   :  { %3055 = vrot.lane.b32.xlu0 %v3054_v7, %s3122_s16 }
 0xae8   :  { %v2628_v2 = vld [vmem:[#allocation7 + $0x10] sm:$0x3] }
 0xae9   :  { %v2629_v25 = vld [vmem:[#allocation7 + $0x18] sm:$0x3] }
 0xaea   :  { %v3064_v16 = vpack.i.bf16 %v2629_v25, %v2628_v2 }
 0xaec   :  { %3065 = vrot.lane.b32.xlu0 %v3064_v16, %s3122_s16 }
 0xb56   :  { %v3056_v8 = vpop.permute.xlu0 %3055 }
 0xb57   :  { %v3058_v41 = vunpack.i.h.bf16 %v3056_v8  ;;  %v3057_v58 = vunpack.i.l.bf16 %v3056_v8  ;;  %v2816_v8 = vld [vmem:[%s4895_s12 + $0x78] sm:$0xff] }
 0xb58   :  { %2850 = vmatpush.msra.mxu3 %v2816_v8 }
 0xb59   :  { %v2649_v54 = vmax.f32 %v2627_v47, %v3058_v41  ;;  %v2642_v31 = vsel %vm5047_vm0, %v3057_v58, %v3058_v41  ;;  %v2832_v41 = vld [vmem:[%s4895_s12 + $0xf8] sm:$0xff]  ;;  %v2815_v58 = vld [vmem:[%s4895_s12 + $0x70] sm:$0xff] }
 0xb5a   :  { %v2648_v37 = vmax.f32 %v2626_v13, %v2642_v31  ;;  %2870 = vmatpush.msrb.mxu1 %v2832_v41  ;;  %v2814_v31 = vld [vmem:[%s4895_s12 + $0x68] sm:$0xff]  ;;  %2851 = vmatpush.msra.mxu3 %v2815_v58 }
 0xb5c   :  { %v3059_v10 = vpack.i.bf16 %v2649_v54, %v2648_v37  ;;  %2852 = vmatpush.msra.mxu3 %v2814_v31 }
 0xb5e   :  { %3060 = vrot.lane.b32.xlu2 %v3059_v10, %s3133_s3  ;;  %v3066_v44 = vpop.permute.xlu0 %3065 }
 0xb5f   :  { %v3068_v3 = vunpack.i.h.bf16 %v3066_v44  ;;  %v3067_v35 = vunpack.i.l.bf16 %v3066_v44 }
 0xb61   :  { %v2651_v26 = vmax.f32 %v2629_v25, %v3068_v3  ;;  %v2643_v28 = vsel %vm5048_vm14, %v3067_v35, %v3068_v3 }
 0xb62   :  { %v2650_v40 = vmax.f32 %v2628_v2, %v2643_v28 }
 0xb64   :  { %v3074_v27 = vpack.i.bf16 %v2651_v26, %v2650_v40 }
 0xb66   :  { %3075 = vrot.lane.b32.xlu2 %v3074_v27, %s3133_s3  ;;  %v2829_v27 = vld [vmem:[%s4895_s12 + $0xe0] sm:$0xff]  ;;  %s2919_s3 = sshll.u32 %s4901_s18, 4  ;;  %s2920_s3 = int_to_ptr.hbm [resolvable:$true] %s2919_s3 }
 0xbb8   :  { %v3061_v24 = vpop.permute.xlu2 %3060 }
 0xbb9   :  { %v3063_v33 = vunpack.i.h.bf16 %v3061_v24  ;;  %v3062_v5 = vunpack.i.l.bf16 %v3061_v24  ;;  %v2809_v24 = vld [vmem:[%s4895_s12 + $0x40] sm:$0xff] }
 0xbbb   :  { %v2671_v52 = vmax.f32 %v2649_v54, %v3063_v33  ;;  %v2664_v62 = vsel %vm2161_vm4, %v3062_v5, %v3063_v33  ;;  %v2831_v54 = vld [vmem:[%s4895_s12 + $0xf0] sm:$0xff]  ;;  %v2808_v33 = vld [vmem:[%s4895_s12 + $0x38] sm:$0xff] }
 0xbbc   :  { %v2670_v38 = vmax.f32 %v2648_v37, %v2664_v62  ;;  %v2830_v37 = vld [vmem:[%s4895_s12 + $0xe8] sm:$0xff]  ;;  %2871 = vmatpush.msrb.mxu1 %v2831_v54  ;;  %v2824_v5 = vld [vmem:[%s4895_s12 + $0xb8] sm:$0xff]  ;;  %v2823_v62 = vld [vmem:[%s4895_s12 + $0xb0] sm:$0xff] }
 0xbbe   :  { %v3069_v9 = vpack.i.bf16 %v2671_v52, %v2670_v38  ;;  %2872 = vmatpush.msrb.mxu1 %v2830_v37  ;;  %v2807_v52 = vld [vmem:[%s4895_s12 + $0x30] sm:$0xff] }
 0xbbf   :  { %v2839_v38 = vld [vmem:[%s4895_s12 + $0x130] sm:$0xff] }
 0xbc0   :  { %3070 = vrot.lane.b32.xlu1 %v3069_v9, %s3131_s17  ;;  %v3076_v45 = vpop.permute.xlu2 %3075  ;;  %2873 = vmatpush.msrb.mxu1 %v2829_v27  ;;  %v2806_v9 = vld [vmem:[%s4895_s12 + $0x28] sm:$0xff] }
 0xbc1   :  { %v3078_v21 = vunpack.i.h.bf16 %v3076_v45  ;;  %v3077_v19 = vunpack.i.l.bf16 %v3076_v45  ;;  %2899 = vmatpush.msra.mxu0 %v2839_v38  ;;  %v2805_v45 = vld [vmem:[%s4895_s12 + $0x20] sm:$0xff] }
 0xbc2   :  { %2874 = vmatpush.msrb.mxu1 %v2828_v22 }
 0xbc3   :  { %v2673_v23 = vmax.f32 %v2651_v26, %v3078_v21  ;;  %v2665_v42 = vsel %vm2161_vm4, %v3077_v19, %v3078_v21  ;;  %2900 = vmatpush.msra.mxu0 %v2838_v61  ;;  %v2837_v21 = vld [vmem:[%s4895_s12 + $0x120] sm:$0xff]  ;;  %v2804_v19 = vld [vmem:[%s4895_s12 + $0x18] sm:$0xff] }
 0xbc4   :  { %v2672_v14 = vmax.f32 %v2650_v40, %v2665_v42  ;;  %v2813_v40 = vld [vmem:[%s4895_s12 + $0x60] sm:$0xff]  ;;  %2875 = vmatpush.msrb.mxu1 %v2827_v63  ;;  %v2836_v42 = vld [vmem:[%s4895_s12 + $0x118] sm:$0xff] }
 0xbc5   :  { %2853 = vmatpush.msra.mxu3 %v2813_v40  ;;  %2901 = vmatpush.msra.mxu0 %v2837_v21 }
 0xbc6   :  { %v3079_v57 = vpack.i.bf16 %v2673_v23, %v2672_v14  ;;  %2876 = vmatpush.msrb.mxu1 %v2826_v50  ;;  %v2820_v23 = vld [vmem:[%s4895_s12 + $0x98] sm:$0xff]  ;;  %v2803_v14 = vld [vmem:[%s4895_s12 + $0x10] sm:$0xff] }
 0xbc7   :  { %2854 = vmatpush.msra.mxu3 %v2812_v53  ;;  %2902 = vmatpush.msra.mxu0 %v2836_v42 }
 0xbc8   :  { %3080 = vrot.lane.b32.xlu0 %v3079_v57, %s3131_s17  ;;  %2877 = vmatpush.msrb.mxu1 %v2825_v29  ;;  %v2819_v57 = vld [vmem:[%s4895_s12 + $0x90] sm:$0xff] }
 0xbc9   :  { %2855 = vmatpush.msra.mxu3 %v2811_v20  ;;  %2903 = vmatpush.msra.mxu0 %v2835_v11 }
 0xbca   :  { %2878 = vmatpush.msrb.mxu1 %v2824_v5 }
 0xbcb   :  { %2856 = vmatpush.msra.mxu3 %v2810_v17 }
 0xbcc   :  { %2879 = vmatpush.msrb.mxu1 %v2823_v62 }
 0xbcd   :  { %2857 = vmatpush.msra.mxu3 %v2809_v24 }
 0xbce   :  { %2880 = vmatpush.msrb.mxu1 %v2822_v43 }
 0xbcf   :  { %2858 = vmatpush.msra.mxu3 %v2808_v33 }
 0xbd0   :  { %2881 = vmatpush.msrb.mxu1 %v2821_v36 }
 0xbd1   :  { %2859 = vmatpush.msra.mxu3 %v2807_v52 }
 0xbd2   :  { %2882 = vmatpush.msrb.mxu1 %v2820_v23 }
 0xbd3   :  { %2860 = vmatpush.msra.mxu3 %v2806_v9 }
 0xbd4   :  { %2883 = vmatpush.msrb.mxu1 %v2819_v57 }
 0xbd5   :  { %2861 = vmatpush.msra.mxu3 %v2805_v45 }
 0xbd7   :  { %2862 = vmatpush.msra.mxu3 %v2804_v19 }
 0xbd9   :  { %2863 = vmatpush.msra.mxu3 %v2803_v14 }
 0xbdb   :  { %2864 = vmatpush.msra.mxu3 %v2802_v0 }
 0xc32   :  { %v3071_v18 = vpop.permute.xlu1 %3070 }
 0xc33   :  { %v3073_v12 = vunpack.i.h.bf16 %v3071_v18  ;;  %v3072_v60 = vunpack.i.l.bf16 %v3071_v18  ;;  %v2818_v18 = vld [vmem:[%s4895_s12 + $0x88] sm:$0xff] }
 0xc34   :  { %2884 = vmatpush.msrb.mxu1 %v2818_v18 }
 0xc35   :  { %v2702_v46 = vsel %vm2186_vm7, %v3072_v60, %v3073_v12  ;;  %v2834_v12 = vld [vmem:[%s4895_s12 + $0x108] sm:$0xff]  ;;  %v2801_v60 = vld [vmem:[%s4895_s12] sm:$0xff] }
 0xc36   :  { %2722 = vmatmul.f32.vlgmr.msrb.gmra.mxu2 %v2702_v46  ;;  %v2817_v46 = vld [vmem:[%s4895_s12 + $0x80] sm:$0xff]  ;;  %2904 = vmatpush.msra.mxu0 %v2834_v12 }
 0xc37   :  { %2865 = vmatpush.msra.mxu3 %v2801_v60  ;;  %2885 = vmatpush.msrb.mxu1 %v2817_v46 }
 0xc3a   :  { %v3081_v34 = vpop.permute.xlu0 %3080 }
 0xc3b   :  { %v3083_v48 = vunpack.i.h.bf16 %v3081_v34  ;;  %v3082_v59 = vunpack.i.l.bf16 %v3081_v34  ;;  %v2833_v34 = vld [vmem:[%s4895_s12 + $0x100] sm:$0xff] }
 0xc3c   :  { %2905 = vmatpush.msra.mxu0 %v2833_v34 }
 0xc3d   :  { %v2703_v15 = vsel %vm2186_vm7, %v3082_v59, %v3083_v48  ;;  %vm4730_vm7 = vcmp.lt.s32.totalorder %v2729_v32, 96 }
 0xc3e   :  { %2725 = vmatmul.f32.gmra.mxu2 %v2703_v15  ;;  %vm2753_vm4 = vmand %vm4726_vm15, %vm4730_vm7 }
 0xcb9   :  { %v2723_v55 = vpop.f32.mrf.mxu2 }
 0xcba   :  { %2735 = vst [vmem:[#allocation1] sm:$0xff] %v2723_v55 }
 0xcbb   :  { %2733 = vst.msk [vmem:[#allocation10] sm:$0x1] %vm4688_vm2, %v2723_v55 }
 0xcc1   :  { %v2726_v6 = vpop.f32.mrf.mxu2  ;;  %v2737_v56 = vld [vmem:[#allocation1 + $0x1] ss:$9 sm:$0xff] }
 0xcc2   :  { %2791 = vst.msk [vmem:[#allocation10 + $0x2] sm:$0x1] %vm4688_vm2, %v2726_v6  ;;  %2738 = vrot.lane.b32.xlu1 %v2737_v56, %s3134_s15  ;;  %v2841_v56 = vld [vmem:[%s4896_s13] sm:$0x1] }
 0xcc3   :  { %2745 = vst [vmem:[#allocation1] sm:$0xff] %v2723_v55 }
 0xcca   :  { %v2747_v1 = vld [vmem:[#allocation1 + $0x2] ss:$9 sm:$0xff] }
 0xccb   :  { %2748 = vrot.lane.b32.xlu0 %v2747_v1, %s3127_s2  ;;  %2755 = vst [vmem:[#allocation1] sm:$0xff] %v2723_v55 }
 0xcd2   :  { %v2757_v13 = vld [vmem:[#allocation1 + $0x3] ss:$9 sm:$0xff] }
 0xcd3   :  { %2765 = vst [vmem:[#allocation1] sm:$0xff] %v2723_v55 }
 0xcda   :  { %v2767_v47 = vld [vmem:[#allocation1 + $0x4] ss:$9 sm:$0xff] }
 0xcdb   :  { %2770 = vst [vmem:[#allocation1] sm:$0xff] %v2723_v55 }
 0xcdc   :  { %2769 = vst.msk [vmem:[#allocation10 + $0x1] sm:$0x1] %vm4688_vm2, %v2767_v47 }
 0xce2   :  { %v2772_v7 = vld [vmem:[#allocation1 + $0x5] ss:$9 sm:$0xff] }
 0xce3   :  { %2773 = vrot.lane.b32.xlu2 %v2772_v7, %s3134_s15  ;;  %2777 = vst [vmem:[#allocation1] sm:$0xff] %v2723_v55 }
 0xcea   :  { %v2779_v2 = vld [vmem:[#allocation1 + $0x6] ss:$9 sm:$0xff] }
 0xceb   :  { %2758 = vrot.lane.b32.xlu2 %v2757_v13, %s3124_s20  ;;  %2780 = vrot.lane.b32.xlu1 %v2779_v2, %s3127_s2  ;;  %2784 = vst [vmem:[#allocation1] sm:$0xff] %v2723_v55 }
 0xcf2   :  { %v2786_v25 = vld [vmem:[#allocation1 + $0x7] ss:$9 sm:$0xff] }
 0xcf3   :  { %2787 = vrot.lane.b32.xlu0 %v2786_v25, %s3124_s20  ;;  %2793 = vst [vmem:[#allocation1] sm:$0xff] %v2726_v6 }
 0xcfa   :  { %v2795_v16 = vld [vmem:[#allocation1 + $0x1] ss:$9 sm:$0xff] }
 0xcfb   :  { %2796 = vrot.lane.b32.xlu1 %v2795_v16, %s3134_s15 }
 0xd34   :  { %v2739_v44 = vpop.permute.xlu1 %2738 }
 0xd35   :  { %2744 = vst.msk [vmem:[#allocation10] sm:$0x1] %vm4720_vm8, %v2739_v44 }
 0xd3d   :  { %v2749_v26 = vpop.permute.xlu0 %2748  ;;  %v2774_v28 = vpop.permute.xlu2 %2773 }
 0xd3e   :  { %2754 = vst.msk [vmem:[#allocation10] sm:$0x1] %vm2753_vm4, %v2749_v26 }
 0xd3f   :  { %2776 = vst.msk [vmem:[#allocation10 + $0x1] sm:$0x1] %vm4720_vm8, %v2774_v28 }
 0xd45   :  { %v2759_v30 = vpop.permute.xlu2 %2758 }
 0xd46   :  { %2764 = vst.msk [vmem:[#allocation10] sm:$0x1] %vm2763_vm11, %v2759_v30 }
 0xd5d   :  { %v2781_v48 = vpop.permute.xlu1 %2780 }
 0xd5e   :  { %2783 = vst.msk [vmem:[#allocation10 + $0x1] sm:$0x1] %vm2753_vm4, %v2781_v48 }
 0xd65   :  { %v2788_v59 = vpop.permute.xlu0 %2787 }
 0xd66   :  { %2790 = vst.msk [vmem:[#allocation10 + $0x1] sm:$0x1] %vm2763_vm11, %v2788_v59 }
 0xd6d   :  { %v2797_v15 = vpop.permute.xlu1 %2796 }
 0xd6e   :  { %2799 = vst.msk [vmem:[#allocation10 + $0x2] sm:$0x1] %vm4720_vm8, %v2797_v15 }
 0xd75   :  { %v2800_v32 = vld [vmem:[#allocation10] sm:$0x7] }
 0xd76   :  { %v2843_v49 = vperm.slane %v2800_v32, 0  ;;  %v2844_v55 = vperm.slane %v2800_v32, 1  ;;  %v2845_v6 = vperm.slane %v2800_v32, 2 }
 0xd78   :  { %2866 = vmatmul.f32.vlgmr.msra.gmra.mxu3 %v2843_v49  ;;  %2886 = vmatmul.f32.vlgmr.msrb.gmra.mxu1 %v2844_v55 }
 0xd79   :  { %2958 = vmatmul.msk.f32.vlgmr.msra.gmra.mxu0 %vm457_vm1, %v2845_v6 }
 0xdf5   :  { %v2887_v47 = vpop.f32.mrf.mxu1 }
 0xdf6   :  { %v2907_v2 = vpop.f32.mrf.mxu0 }
 0xdfb   :  { %v2867_v1 = vpop.f32.mrf.mxu3 }
 0xdfc   :  { %v2868_v13 = vadd.f32 %v2867_v1, %v2841_v56 }
 0xdfe   :  { %v2888_v7 = vadd.f32 %v2887_v47, %v2868_v13 }
 0xe00   :  { %v2908_v25 = vadd.f32 %v2907_v2, %v2888_v7 }
 0xe02   :  { %2911 = vst.msk [vmem:[#allocation14] sm:$0x1] %vm2910_vm5, %v2908_v25 }
 0xe03   :  { %2922 = dma.vmem_to_hbm [thread:$0]  %s2918_s19, 16, %s2920_s3, [#allocation15]  }
 0xe04   :  { %3117 = dma.done.wait [#allocation15], 16  }
 0xe05   :  { %3118 = vsyncadd [#allocation15], 4294967280 }
 0xe06   :  { %2927 = vsyncpa [#allocation15], 1 }

</bundles_post_ra>
